<compile_context>
chip_gen: v5e
topology: v5e:2x2
jax: 0.10.0
libtpu: 0.0.40
codegen_flags: <defaults>
</compile_context>

<pallas_src>
import functools
import math

import jax
import jax.numpy as jnp
from jax.experimental import pallas as pl
from jax.experimental.pallas import tpu as pltpu


def _round_up(x, m):
    return ((x + m - 1) // m) * m


def _block_bytes(shape, dtype):
    """Bytes of a VMEM block after (sublane, lane) tile padding."""
    dt = jnp.dtype(dtype)
    s = list(shape)
    s[-1] = _round_up(s[-1], 128)
    if len(s) >= 2:
        s[-2] = _round_up(s[-2], 8 * max(1, 4 // dt.itemsize))
    n = 1
    for d in s:
        n *= d
    return n * dt.itemsize


def _vmem_limit(blocks):
    """Scoped-VMEM budget: double-buffered blocks + slack for temporaries."""
    total = 2 * sum(_block_bytes(s, d) for s, d in blocks) + (8 << 20)
    return int(min(total, 64 << 20))        # stay inside v7x's 64 MiB VMEM


def _pick_band(n_rows, target=8):
    """Largest divisor of n_rows that is <= target (output-row band size)."""
    best = 1
    for d in range(1, min(n_rows, target) + 1):
        if n_rows % d == 0:
            best = d
    return best


# ---------------------------------------------------------------------------
# Pallas kernels
# ---------------------------------------------------------------------------

def _conv_pool_kernel(xe_ref, xo_ref, w_ref, b_ref, o_ref, *, ci_pad, rb):
    """5x5 valid conv + bias + ReLU + fused 2x2 max-pool for one row band.

    xe_ref/xo_ref: (Hin*CIp, Win//2)  even / odd input columns, W on lanes.
    w_ref        : (KW, COp, KH*CIp) the kh/ci taps folded into the K dim.
    b_ref        : (COp, 1)
    o_ref        : (RB*COp, OWp)     RB pooled output rows of one sample.
    """
    kw_taps, co_pad, k5 = w_ref.shape
    ow_p = o_ref.shape[-1]
    band = pl.program_id(1)

    w_all = w_ref[...]                      # small, hoisted out of the row loop
    bias = b_ref[...]

    @pl.loop(0, rb)
    def _(rr):
        r = band * rb + rr                  # global pooled output row
        res = None
        for d in range(2):                  # the two conv rows under pool row r
            row0 = (2 * r + d) * ci_pad
            if ci_pad % 8 == 0:
                row0 = pl.multiple_of(row0, 8)
            blk_e = xe_ref[pl.ds(row0, k5), :]      # (KH*CIp, OWp + 2)
            blk_o = xo_ref[pl.ds(row0, k5), :]
            acc_e = jnp.zeros((co_pad, ow_p), jnp.float32)   # even conv columns
            acc_o = jnp.zeros((co_pad, ow_p), jnp.float32)   # odd  conv columns
            for kw in range(kw_taps):
                wk = w_all[kw]                      # (COp, KH*CIp)
                m = kw // 2
                if kw % 2 == 0:
                    acc_e += jnp.dot(wk, blk_e[:, m:m + ow_p],
                                     preferred_element_type=jnp.float32)
                    acc_o += jnp.dot(wk, blk_o[:, m:m + ow_p],
                                     preferred_element_type=jnp.float32)
                else:
                    acc_e += jnp.dot(wk, blk_o[:, m:m + ow_p],
                                     preferred_element_type=jnp.float32)
                    acc_o += jnp.dot(wk, blk_e[:, m + 1:m + 1 + ow_p],
                                     preferred_element_type=jnp.float32)
            cur = jnp.maximum(acc_e, acc_o)         # horizontal 2x max, in regs
            res = cur if d == 0 else jnp.maximum(res, cur)   # vertical 2x max
        out = jnp.maximum(res + bias, 0.0)          # pool/bias/ReLU commute
        o_ref[pl.ds(pl.multiple_of(rr * co_pad, 8), co_pad), :] = (
            out.astype(o_ref.dtype))


def _conv_kernel(x_ref, w_ref, b_ref, o_ref, *, ci_pad, rb):
    """5x5 valid conv + bias + ReLU (no pool) for one row band of one sample."""
    kw_taps, co_pad, k5 = w_ref.shape
    ow = o_ref.shape[-1]
    band = pl.program_id(1)

    w_all = w_ref[...]
    bias = b_ref[...]

    @pl.loop(0, rb)
    def _(rr):
        r = band * rb + rr
        row0 = r * ci_pad
        if ci_pad % 8 == 0:
            row0 = pl.multiple_of(row0, 8)
        blk = x_ref[pl.ds(row0, k5), :]             # (KH*CIp, OW + KW - 1)
        acc = jnp.zeros((co_pad, ow), jnp.float32)
        for kw in range(kw_taps):
            acc += jnp.dot(w_all[kw], blk[:, kw:kw + ow],
                           preferred_element_type=jnp.float32)
        out = jnp.maximum(acc + bias, 0.0)
        o_ref[pl.ds(pl.multiple_of(rr * co_pad, 8), co_pad), :] = (
            out.astype(o_ref.dtype))


def _fc1_partial_kernel(a_ref, w_ref, o_ref, *, kt, nk):
    """One K tile of a partial (M, K) @ (K, 128): bf16 in, f32 accumulation."""
    p = pl.program_id(0)
    k = pl.program_id(1)

    @pl.when(k == 0)
    def _():
        o_ref[...] = jnp.zeros_like(o_ref)

    @pl.when(p * kt + k < nk)                       # skip the padded tail tile
    def _():
        o_ref[...] += jnp.dot(a_ref[...], w_ref[...],
                              preferred_element_type=jnp.float32)


def _fc_head_kernel(part_ref, b1_ref, w2_ref, b2_ref, o_ref):
    """Combine the K-split partial sums, then bias + ReLU + fused Linear(84,2)."""
    h = part_ref[0]
    for s in range(1, part_ref.shape[0]):
        h = h + part_ref[s]
    h = jnp.maximum(h + b1_ref[...], 0.0)
    y = jnp.dot(h, w2_ref[...], preferred_element_type=jnp.float32) + b2_ref[...]
    o_ref[...] = y.astype(o_ref.dtype)


# ---------------------------------------------------------------------------
# Pallas wrappers
# ---------------------------------------------------------------------------

def conv_relu_pool(x, wk, bias, *, ci_pad, pool, out_dtype=jnp.float32,
                   band_rows=8):
    """One LeNet conv stage on (N, Hin*CIp, Win) activations (W on lanes)."""
    N, HC, Win = x.shape
    kw_taps, co_pad, k5 = wk.shape
    kh = k5 // ci_pad
    h_in = HC // ci_pad
    oh, ow = h_in - kh + 1, Win - kw_taps + 1

    if pool:
        assert Win % 2 == 0 and oh % 2 == 0 and ow % 2 == 0
        oh_o, ow_o = oh // 2, ow // 2
        # De-interleave columns once in XLA so the fused 2x2 max-pool only needs
        # contiguous lane slices + elementwise maxes inside the kernel.
        acts = (x[:, :, 0::2], x[:, :, 1::2])
        w_blk = Win // 2
    else:
        oh_o, ow_o = oh, ow
        acts = (x,)
        w_blk = Win

    rb = _pick_band(oh_o, band_rows)
    nb = oh_o // rb
    if pool:
        kernel = functools.partial(_conv_pool_kernel, ci_pad=ci_pad, rb=rb)
    else:
        kernel = functools.partial(_conv_kernel, ci_pad=ci_pad, rb=rb)

    act_spec = pl.BlockSpec((None, HC, w_blk), lambda n, b: (n, 0, 0))
    in_specs = [act_spec] * len(acts) + [
        pl.BlockSpec((kw_taps, co_pad, k5), lambda n, b: (0, 0, 0)),
        pl.BlockSpec((co_pad, 1), lambda n, b: (0, 0)),
    ]
    out_spec = pl.BlockSpec((None, rb * co_pad, ow_o), lambda n, b: (n, b, 0))

    vmem = _vmem_limit(
        [((HC, w_blk), x.dtype)] * len(acts)
        + [(wk.shape, wk.dtype), (bias.shape, bias.dtype),
           ((rb * co_pad, ow_o), out_dtype)])

    return pl.pallas_call(
        kernel,
        out_shape=jax.ShapeDtypeStruct((N, oh_o * co_pad, ow_o), out_dtype),
        grid_spec=pltpu.PrefetchScalarGridSpec(
            num_scalar_prefetch=0,
            grid=(N, nb),
            in_specs=in_specs,
            out_specs=out_spec,
        ),
        compiler_params=pltpu.CompilerParams(
            dimension_semantics=("parallel", "parallel"),
            vmem_limit_bytes=vmem,
        ),
    )(*acts, wk, bias)


def _choose_tk(K, n_out, itemsize, budget_bytes=6 << 20, min_tiles=2):
    """Largest lane-aligned K tile that divides K, fits the weight-tile budget
    and (if possible) still leaves >= min_tiles tiles for the K split."""
    if K % 128 != 0:
        return K
    n = K // 128
    fits = [d for d in range(1, n + 1)
            if n % d == 0 and 128 * d * n_out * itemsize <= budget_bytes]
    if not fits:
        return 128
    multi = [d for d in fits if n // d >= min_tiles]
    return 128 * max(multi if multi else fits)


def fc1_partial(a, w, *, nsplit=2):
    """Partial sums of a @ w with the reduction split over `nsplit` parallel
    grid programs (one per v7x TensorCore).  a: (M, K) bf16, w: (K, 128) bf16."""
    M, K = a.shape
    K2, n_out = w.shape
    assert K == K2
    tk = _choose_tk(K, n_out, jnp.dtype(w.dtype).itemsize, min_tiles=nsplit)
    assert K % tk == 0
    nk = K // tk
    kt = pl.cdiv(nk, nsplit)

    def a_map(p, k):
        return (0, jnp.minimum(p * kt + k, nk - 1))

    def w_map(p, k):
        return (jnp.minimum(p * kt + k, nk - 1), 0)

    vmem = _vmem_limit([((M, tk), a.dtype), ((tk, n_out), w.dtype),
                        ((M, n_out), jnp.float32)])

    return pl.pallas_call(
        functools.partial(_fc1_partial_kernel, kt=kt, nk=nk),
        out_shape=jax.ShapeDtypeStruct((nsplit, M, n_out), jnp.float32),
        grid_spec=pltpu.PrefetchScalarGridSpec(
            num_scalar_prefetch=0,
            grid=(nsplit, kt),
            in_specs=[
                pl.BlockSpec((M, tk), a_map),
                pl.BlockSpec((tk, n_out), w_map),
            ],
            out_specs=pl.BlockSpec((None, M, n_out), lambda p, k: (p, 0, 0)),
        ),
        compiler_params=pltpu.CompilerParams(
            dimension_semantics=("parallel", "arbitrary"),
            vmem_limit_bytes=vmem,
        ),
    )(a, w)


def fc_head(parts, b1, w2, b2):
    """sum(partials) -> +bias -> ReLU -> Linear(84, 2) (+bias), in one kernel."""
    ns, M, n_hid = parts.shape
    n_out = w2.shape[1]
    vmem = _vmem_limit([(parts.shape, parts.dtype), (b1.shape, b1.dtype),
                        (w2.shape, w2.dtype), (b2.shape, b2.dtype),
                        ((M, n_out), jnp.float32)])
    return pl.pallas_call(
        _fc_head_kernel,
        out_shape=jax.ShapeDtypeStruct((M, n_out), jnp.float32),
        grid_spec=pltpu.PrefetchScalarGridSpec(
            num_scalar_prefetch=0,
            grid=(1,),
            in_specs=[
                pl.BlockSpec((ns, M, n_hid), lambda i: (0, 0, 0)),
                pl.BlockSpec((1, n_hid), lambda i: (0, 0)),
                pl.BlockSpec((n_hid, n_out), lambda i: (0, 0)),
                pl.BlockSpec((1, n_out), lambda i: (0, 0)),
            ],
            out_specs=pl.BlockSpec((M, n_out), lambda i: (0, 0)),
        ),
        compiler_params=pltpu.CompilerParams(
            dimension_semantics=("arbitrary",),
            vmem_limit_bytes=vmem,
        ),
    )(parts, b1, w2, b2)


# ---------------------------------------------------------------------------
# LeNet forward + parameters
# ---------------------------------------------------------------------------

def lenet_forward(prep, x):
    """x: (N, 1, H, W) float32 (PyTorch NCHW layout)."""
    N, _, H0, W0 = x.shape
    h = x.reshape(N, H0, W0)                                  # CI=1 -> (H, W), W on lanes
    h = conv_relu_pool(h, prep["wk1"], prep["b1"], ci_pad=1, pool=True)
    h = conv_relu_pool(h, prep["wk2"], prep["b2"], ci_pad=8, pool=True)
    h = conv_relu_pool(h, prep["wk3"], prep["b3"], ci_pad=16, pool=False,
                       out_dtype=jnp.bfloat16)                # bf16 feeds bf16 FC1
    a = h.reshape(N, -1)                                      # (h, c, w) flatten, free
    parts = fc1_partial(a, prep["wf1"])                       # Linear(K, 84) partials
    return fc_head(parts, prep["bf1"], prep["wf2"], prep["bf2"])


def feature_dims(H0, W0):
    H1, W1 = (H0 - 4) // 2, (W0 - 4) // 2
    H2, W2 = (H1 - 4) // 2, (W1 - 4) // 2
    return H2 - 4, W2 - 4


def init_params(key, in_features):
    """PyTorch-style params: conv weights OIHW, linear weights stored (in, out)."""
    def uni(k, shape, fan_in):
        bound = 1.0 / math.sqrt(fan_in)
        return jax.random.uniform(k, shape, jnp.float32, -bound, bound)
    ks = jax.random.split(key, 10)
    return {
        "w1": uni(ks[0], (6, 1, 5, 5), 25),        "b1": uni(ks[1], (6,), 25),
        "w2": uni(ks[2], (16, 6, 5, 5), 150),      "b2": uni(ks[3], (16,), 150),
        "w3": uni(ks[4], (120, 16, 5, 5), 400),    "b3": uni(ks[5], (120,), 400),
        "wf1": uni(ks[6], (in_features, 84), in_features),
        "bf1": uni(ks[7], (84,), in_features),
        "wf2": uni(ks[8], (84, 2), 84),            "bf2": uni(ks[9], (2,), 84),
    }


def prepare_params(p, feat_hw):
    """One-time layout prep (runs at init, NOT per forward pass)."""
    H3, W3 = feat_hw

    def prep_conv(w, b, ci_pad, co_pad):
        CO, CI, KH, KW = w.shape
        wt = jnp.transpose(w, (3, 0, 2, 1))                       # (KW, CO, KH, CI)
        wt = jnp.pad(wt, ((0, 0), (0, co_pad - CO), (0, 0), (0, ci_pad - CI)))
        wt = wt.reshape(KW, co_pad, KH * ci_pad).astype(jnp.float32)
        bt = jnp.pad(b, ((0, co_pad - CO),)).reshape(co_pad, 1).astype(jnp.float32)
        return wt, bt

    wk1, b1 = prep_conv(p["w1"], p["b1"], 1, 8)
    wk2, b2 = prep_conv(p["w2"], p["b2"], 8, 16)
    wk3, b3 = prep_conv(p["w3"], p["b3"], 16, 128)

    CO3 = p["w3"].shape[0]          # 120
    CO3p = 128
    F = p["wf1"].shape[1]           # 84
    Fp = _round_up(F, 128)          # 128 (lane-dense bf16 output tiles)
    # FC1 rows permuted from NCHW flatten to our (h, c, w) flatten, c padded,
    # stored bf16 (halves HBM bytes of the bandwidth-bound FC1).
    wf1 = p["wf1"].reshape(CO3, H3, W3, F).transpose(1, 0, 2, 3)   # (h, c, w, o)
    wf1 = jnp.pad(wf1, ((0, 0), (0, CO3p - CO3), (0, 0), (0, Fp - F)))
    wf1 = wf1.reshape(H3 * CO3p * W3, Fp).astype(jnp.bfloat16)
    bf1 = jnp.pad(p["bf1"], ((0, Fp - F),)).reshape(1, Fp).astype(jnp.float32)
    wf2 = jnp.pad(p["wf2"], ((0, Fp - F), (0, 0))).astype(jnp.float32)   # (128, 2)
    bf2 = p["bf2"].reshape(1, 2).astype(jnp.float32)

    return {
        "wk1": wk1, "b1": b1,
        "wk2": wk2, "b2": b2,
        "wk3": wk3, "b3": b3,
        "wf1": wf1, "bf1": bf1,
        "wf2": wf2, "bf2": bf2,
    }


def reference_forward(p, x):
    """Pure-JAX reference matching the PyTorch module (NCHW everywhere)."""
    def conv(x, w, b):
        y = jax.lax.conv_general_dilated(
            x, w, window_strides=(1, 1), padding="VALID",
            dimension_numbers=("NCHW", "OIHW", "NCHW"))
        return jax.nn.relu(y + b[None, :, None, None])

    def pool(x):
        N, C, H, W = x.shape
        return jnp.max(x.reshape(N, C, H // 2, 2, W // 2, 2), axis=(3, 5))

    h = pool(conv(x, p["w1"], p["b1"]))
    h = pool(conv(h, p["w2"], p["b2"]))
    h = conv(h, p["w3"], p["b3"])
    h = h.reshape(h.shape[0], -1)                        # NCHW flatten (PyTorch)
    h = jax.nn.relu(h @ p["wf1"] + p["bf1"])
    return h @ p["wf2"] + p["bf2"]


if __name__ == "__main__":
    key = jax.random.PRNGKey(0)
    pkey, xkey = jax.random.split(key)

    # Small, fast demo shapes: batch=2, 1x64x64.  The original module's
    # Linear(1756920, 84) corresponds to a 1x512x512 input; the same code path
    # handles it unchanged (set H0 = W0 = 512).
    N, H0, W0 = 2, 64, 64
    H3, W3 = feature_dims(H0, W0)                        # conv3 output spatial
    params = init_params(pkey, 120 * H3 * W3)
    prep = prepare_params(params, (H3, W3))

    x = jax.random.normal(xkey, (N, 1, H0, W0), dtype=jnp.float32)

    out = jax.block_until_ready(jax.jit(lenet_forward)(prep, x))
    assert out.shape == (N, 2) and out.dtype == jnp.float32

    with jax.default_matmul_precision("highest"):
        ref = jax.block_until_ready(jax.jit(reference_forward)(params, x))
    err = float(jnp.max(jnp.abs(out - ref)))
    assert err < 3e-2, f"mismatch vs reference: max abs err = {err}"

    print("KERNEL_OK")
</pallas_src>

<mosaic_0001>
module attributes {stable_mosaic.version = 11 : i64} {
  func.func @_conv_pool_kernel(%arg0: i32, %arg1: i32, %arg2: memref<1x64x32xf32, #tpu.memory_space<vmem>>, %arg3: memref<1x64x32xf32, #tpu.memory_space<vmem>>, %arg4: memref<5x8x5xf32, #tpu.memory_space<vmem>>, %arg5: memref<8x1xf32, #tpu.memory_space<vmem>>, %arg6: memref<1x48x30xf32, #tpu.memory_space<vmem>>) attributes {dimension_semantics = [#tpu.dimension_semantics<parallel>, #tpu.dimension_semantics<parallel>], iteration_bounds = array<i64: 2, 5>, scalar_prefetch = 0 : i64, scratch_operands = 0 : i64, tpu.core_type = #tpu.core_type<tc>, window_params = [{transform_indices = @transform_0, window_bounds = array<i64: 1, 64, 32>}, {transform_indices = @transform_1, window_bounds = array<i64: 1, 64, 32>}, {pipeline_mode = #tpu.pipeline_mode<synchronous>, transform_indices = @transform_2, window_bounds = array<i64: 5, 8, 5>}, {pipeline_mode = #tpu.pipeline_mode<synchronous>, transform_indices = @transform_3, window_bounds = array<i64: 8, 1>}, {transform_indices = @transform_4, window_bounds = array<i64: 1, 48, 30>}]} {
    %c0 = arith.constant 0 : index
    %c0_0 = arith.constant 0 : index
    %c0_1 = arith.constant 0 : index
    %0 = vector.load %arg4[%c0, %c0_0, %c0_1] : memref<5x8x5xf32, #tpu.memory_space<vmem>>, vector<5x8x5xf32>
    %c0_2 = arith.constant 0 : index
    %c0_3 = arith.constant 0 : index
    %1 = vector.load %arg5[%c0_2, %c0_3] : memref<8x1xf32, #tpu.memory_space<vmem>>, vector<8x1xf32>
    %c0_i32 = arith.constant 0 : i32
    %c6_i32 = arith.constant 6 : i32
    %2 = arith.addi %c0_i32, %c6_i32 : i32
    %c1_i32 = arith.constant 1 : i32
    scf.for %arg7 = %c0_i32 to %2 step %c1_i32  : i32 {
      %c1_i32_5 = arith.constant 1 : i32
      %3 = arith.muli %arg7, %c1_i32_5 : i32
      %c0_i32_6 = arith.constant 0 : i32
      %4 = arith.addi %c0_i32_6, %3 : i32
      %c6_i32_7 = arith.constant 6 : i32
      %5 = arith.muli %arg1, %c6_i32_7 : i32
      %6 = arith.addi %5, %4 : i32
      %c2_i32 = arith.constant 2 : i32
      %7 = arith.muli %c2_i32, %6 : i32
      %c0_i32_8 = arith.constant 0 : i32
      %8 = arith.addi %7, %c0_i32_8 : i32
      %c1_i32_9 = arith.constant 1 : i32
      %9 = arith.muli %8, %c1_i32_9 : i32
      %c0_10 = arith.constant 0 : index
      %10 = arith.index_cast %9 : i32 to index
      %c0_11 = arith.constant 0 : index
      %11 = vector.load %arg2[%c0_10, %10, %c0_11] : memref<1x64x32xf32, #tpu.memory_space<vmem>>, vector<1x5x32xf32>
      %12 = vector.shape_cast %11 : vector<1x5x32xf32> to vector<5x32xf32>
      %c0_12 = arith.constant 0 : index
      %13 = arith.index_cast %9 : i32 to index
      %c0_13 = arith.constant 0 : index
      %14 = vector.load %arg3[%c0_12, %13, %c0_13] : memref<1x64x32xf32, #tpu.memory_space<vmem>>, vector<1x5x32xf32>
      %15 = vector.shape_cast %14 : vector<1x5x32xf32> to vector<5x32xf32>
      %cst = arith.constant 0.000000e+00 : f32
      %16 = vector.broadcast %cst : f32 to vector<8x30xf32>
      %cst_14 = arith.constant 0.000000e+00 : f32
      %17 = vector.broadcast %cst_14 : f32 to vector<8x30xf32>
      %18 = vector.extract_strided_slice %0 {offsets = [0, 0, 0], sizes = [1, 8, 5], strides = [1, 1, 1]} : vector<5x8x5xf32> to vector<1x8x5xf32>
      %19 = vector.shape_cast %18 : vector<1x8x5xf32> to vector<8x5xf32>
      %20 = vector.extract_strided_slice %12 {offsets = [0, 0], sizes = [5, 30], strides = [1, 1]} : vector<5x32xf32> to vector<5x30xf32>
      %cst_15 = arith.constant dense<0.000000e+00> : vector<8x30xf32>
      %21 = tpu.matmul %19, %20, %cst_15 {dimension_numbers = #tpu.dot_dimension_numbers<[1], [0], [0], [1], [0, 0, 1, 1], [], []>} : vector<8x5xf32>, vector<5x30xf32>, vector<8x30xf32> -> vector<8x30xf32>
      %22 = arith.addf %16, %21 : vector<8x30xf32>
      %23 = vector.extract_strided_slice %15 {offsets = [0, 0], sizes = [5, 30], strides = [1, 1]} : vector<5x32xf32> to vector<5x30xf32>
      %cst_16 = arith.constant dense<0.000000e+00> : vector<8x30xf32>
      %24 = tpu.matmul %19, %23, %cst_16 {dimension_numbers = #tpu.dot_dimension_numbers<[1], [0], [0], [1], [0, 0, 1, 1], [], []>} : vector<8x5xf32>, vector<5x30xf32>, vector<8x30xf32> -> vector<8x30xf32>
      %25 = arith.addf %17, %24 : vector<8x30xf32>
      %26 = vector.extract_strided_slice %0 {offsets = [1, 0, 0], sizes = [1, 8, 5], strides = [1, 1, 1]} : vector<5x8x5xf32> to vector<1x8x5xf32>
      %27 = vector.shape_cast %26 : vector<1x8x5xf32> to vector<8x5xf32>
      %28 = vector.extract_strided_slice %15 {offsets = [0, 0], sizes = [5, 30], strides = [1, 1]} : vector<5x32xf32> to vector<5x30xf32>
      %cst_17 = arith.constant dense<0.000000e+00> : vector<8x30xf32>
      %29 = tpu.matmul %27, %28, %cst_17 {dimension_numbers = #tpu.dot_dimension_numbers<[1], [0], [0], [1], [0, 0, 1, 1], [], []>} : vector<8x5xf32>, vector<5x30xf32>, vector<8x30xf32> -> vector<8x30xf32>
      %30 = arith.addf %22, %29 : vector<8x30xf32>
      %31 = vector.extract_strided_slice %12 {offsets = [0, 1], sizes = [5, 30], strides = [1, 1]} : vector<5x32xf32> to vector<5x30xf32>
      %cst_18 = arith.constant dense<0.000000e+00> : vector<8x30xf32>
      %32 = tpu.matmul %27, %31, %cst_18 {dimension_numbers = #tpu.dot_dimension_numbers<[1], [0], [0], [1], [0, 0, 1, 1], [], []>} : vector<8x5xf32>, vector<5x30xf32>, vector<8x30xf32> -> vector<8x30xf32>
      %33 = arith.addf %25, %32 : vector<8x30xf32>
      %34 = vector.extract_strided_slice %0 {offsets = [2, 0, 0], sizes = [1, 8, 5], strides = [1, 1, 1]} : vector<5x8x5xf32> to vector<1x8x5xf32>
      %35 = vector.shape_cast %34 : vector<1x8x5xf32> to vector<8x5xf32>
      %36 = vector.extract_strided_slice %12 {offsets = [0, 1], sizes = [5, 30], strides = [1, 1]} : vector<5x32xf32> to vector<5x30xf32>
      %cst_19 = arith.constant dense<0.000000e+00> : vector<8x30xf32>
      %37 = tpu.matmul %35, %36, %cst_19 {dimension_numbers = #tpu.dot_dimension_numbers<[1], [0], [0], [1], [0, 0, 1, 1], [], []>} : vector<8x5xf32>, vector<5x30xf32>, vector<8x30xf32> -> vector<8x30xf32>
      %38 = arith.addf %30, %37 : vector<8x30xf32>
      %39 = vector.extract_strided_slice %15 {offsets = [0, 1], sizes = [5, 30], strides = [1, 1]} : vector<5x32xf32> to vector<5x30xf32>
      %cst_20 = arith.constant dense<0.000000e+00> : vector<8x30xf32>
      %40 = tpu.matmul %35, %39, %cst_20 {dimension_numbers = #tpu.dot_dimension_numbers<[1], [0], [0], [1], [0, 0, 1, 1], [], []>} : vector<8x5xf32>, vector<5x30xf32>, vector<8x30xf32> -> vector<8x30xf32>
      %41 = arith.addf %33, %40 : vector<8x30xf32>
      %42 = vector.extract_strided_slice %0 {offsets = [3, 0, 0], sizes = [1, 8, 5], strides = [1, 1, 1]} : vector<5x8x5xf32> to vector<1x8x5xf32>
      %43 = vector.shape_cast %42 : vector<1x8x5xf32> to vector<8x5xf32>
      %44 = vector.extract_strided_slice %15 {offsets = [0, 1], sizes = [5, 30], strides = [1, 1]} : vector<5x32xf32> to vector<5x30xf32>
      %cst_21 = arith.constant dense<0.000000e+00> : vector<8x30xf32>
      %45 = tpu.matmul %43, %44, %cst_21 {dimension_numbers = #tpu.dot_dimension_numbers<[1], [0], [0], [1], [0, 0, 1, 1], [], []>} : vector<8x5xf32>, vector<5x30xf32>, vector<8x30xf32> -> vector<8x30xf32>
      %46 = arith.addf %38, %45 : vector<8x30xf32>
      %47 = vector.extract_strided_slice %12 {offsets = [0, 2], sizes = [5, 30], strides = [1, 1]} : vector<5x32xf32> to vector<5x30xf32>
      %cst_22 = arith.constant dense<0.000000e+00> : vector<8x30xf32>
      %48 = tpu.matmul %43, %47, %cst_22 {dimension_numbers = #tpu.dot_dimension_numbers<[1], [0], [0], [1], [0, 0, 1, 1], [], []>} : vector<8x5xf32>, vector<5x30xf32>, vector<8x30xf32> -> vector<8x30xf32>
      %49 = arith.addf %41, %48 : vector<8x30xf32>
      %50 = vector.extract_strided_slice %0 {offsets = [4, 0, 0], sizes = [1, 8, 5], strides = [1, 1, 1]} : vector<5x8x5xf32> to vector<1x8x5xf32>
      %51 = vector.shape_cast %50 : vector<1x8x5xf32> to vector<8x5xf32>
      %52 = vector.extract_strided_slice %12 {offsets = [0, 2], sizes = [5, 30], strides = [1, 1]} : vector<5x32xf32> to vector<5x30xf32>
      %cst_23 = arith.constant dense<0.000000e+00> : vector<8x30xf32>
      %53 = tpu.matmul %51, %52, %cst_23 {dimension_numbers = #tpu.dot_dimension_numbers<[1], [0], [0], [1], [0, 0, 1, 1], [], []>} : vector<8x5xf32>, vector<5x30xf32>, vector<8x30xf32> -> vector<8x30xf32>
      %54 = arith.addf %46, %53 : vector<8x30xf32>
      %55 = vector.extract_strided_slice %15 {offsets = [0, 2], sizes = [5, 30], strides = [1, 1]} : vector<5x32xf32> to vector<5x30xf32>
      %cst_24 = arith.constant dense<0.000000e+00> : vector<8x30xf32>
      %56 = tpu.matmul %51, %55, %cst_24 {dimension_numbers = #tpu.dot_dimension_numbers<[1], [0], [0], [1], [0, 0, 1, 1], [], []>} : vector<8x5xf32>, vector<5x30xf32>, vector<8x30xf32> -> vector<8x30xf32>
      %57 = arith.addf %49, %56 : vector<8x30xf32>
      %58 = arith.maximumf %54, %57 : vector<8x30xf32>
      %c2_i32_25 = arith.constant 2 : i32
      %59 = arith.muli %c2_i32_25, %6 : i32
      %c1_i32_26 = arith.constant 1 : i32
      %60 = arith.addi %59, %c1_i32_26 : i32
      %c1_i32_27 = arith.constant 1 : i32
      %61 = arith.muli %60, %c1_i32_27 : i32
      %c0_28 = arith.constant 0 : index
      %62 = arith.index_cast %61 : i32 to index
      %c0_29 = arith.constant 0 : index
      %63 = vector.load %arg2[%c0_28, %62, %c0_29] : memref<1x64x32xf32, #tpu.memory_space<vmem>>, vector<1x5x32xf32>
      %64 = vector.shape_cast %63 : vector<1x5x32xf32> to vector<5x32xf32>
      %c0_30 = arith.constant 0 : index
      %65 = arith.index_cast %61 : i32 to index
      %c0_31 = arith.constant 0 : index
      %66 = vector.load %arg3[%c0_30, %65, %c0_31] : memref<1x64x32xf32, #tpu.memory_space<vmem>>, vector<1x5x32xf32>
      %67 = vector.shape_cast %66 : vector<1x5x32xf32> to vector<5x32xf32>
      %cst_32 = arith.constant 0.000000e+00 : f32
      %68 = vector.broadcast %cst_32 : f32 to vector<8x30xf32>
      %cst_33 = arith.constant 0.000000e+00 : f32
      %69 = vector.broadcast %cst_33 : f32 to vector<8x30xf32>
      %70 = vector.extract_strided_slice %0 {offsets = [0, 0, 0], sizes = [1, 8, 5], strides = [1, 1, 1]} : vector<5x8x5xf32> to vector<1x8x5xf32>
      %71 = vector.shape_cast %70 : vector<1x8x5xf32> to vector<8x5xf32>
      %72 = vector.extract_strided_slice %64 {offsets = [0, 0], sizes = [5, 30], strides = [1, 1]} : vector<5x32xf32> to vector<5x30xf32>
      %cst_34 = arith.constant dense<0.000000e+00> : vector<8x30xf32>
      %73 = tpu.matmul %71, %72, %cst_34 {dimension_numbers = #tpu.dot_dimension_numbers<[1], [0], [0], [1], [0, 0, 1, 1], [], []>} : vector<8x5xf32>, vector<5x30xf32>, vector<8x30xf32> -> vector<8x30xf32>
      %74 = arith.addf %68, %73 : vector<8x30xf32>
      %75 = vector.extract_strided_slice %67 {offsets = [0, 0], sizes = [5, 30], strides = [1, 1]} : vector<5x32xf32> to vector<5x30xf32>
      %cst_35 = arith.constant dense<0.000000e+00> : vector<8x30xf32>
      %76 = tpu.matmul %71, %75, %cst_35 {dimension_numbers = #tpu.dot_dimension_numbers<[1], [0], [0], [1], [0, 0, 1, 1], [], []>} : vector<8x5xf32>, vector<5x30xf32>, vector<8x30xf32> -> vector<8x30xf32>
      %77 = arith.addf %69, %76 : vector<8x30xf32>
      %78 = vector.extract_strided_slice %0 {offsets = [1, 0, 0], sizes = [1, 8, 5], strides = [1, 1, 1]} : vector<5x8x5xf32> to vector<1x8x5xf32>
      %79 = vector.shape_cast %78 : vector<1x8x5xf32> to vector<8x5xf32>
      %80 = vector.extract_strided_slice %67 {offsets = [0, 0], sizes = [5, 30], strides = [1, 1]} : vector<5x32xf32> to vector<5x30xf32>
      %cst_36 = arith.constant dense<0.000000e+00> : vector<8x30xf32>
      %81 = tpu.matmul %79, %80, %cst_36 {dimension_numbers = #tpu.dot_dimension_numbers<[1], [0], [0], [1], [0, 0, 1, 1], [], []>} : vector<8x5xf32>, vector<5x30xf32>, vector<8x30xf32> -> vector<8x30xf32>
      %82 = arith.addf %74, %81 : vector<8x30xf32>
      %83 = vector.extract_strided_slice %64 {offsets = [0, 1], sizes = [5, 30], strides = [1, 1]} : vector<5x32xf32> to vector<5x30xf32>
      %cst_37 = arith.constant dense<0.000000e+00> : vector<8x30xf32>
      %84 = tpu.matmul %79, %83, %cst_37 {dimension_numbers = #tpu.dot_dimension_numbers<[1], [0], [0], [1], [0, 0, 1, 1], [], []>} : vector<8x5xf32>, vector<5x30xf32>, vector<8x30xf32> -> vector<8x30xf32>
      %85 = arith.addf %77, %84 : vector<8x30xf32>
      %86 = vector.extract_strided_slice %0 {offsets = [2, 0, 0], sizes = [1, 8, 5], strides = [1, 1, 1]} : vector<5x8x5xf32> to vector<1x8x5xf32>
      %87 = vector.shape_cast %86 : vector<1x8x5xf32> to vector<8x5xf32>
      %88 = vector.extract_strided_slice %64 {offsets = [0, 1], sizes = [5, 30], strides = [1, 1]} : vector<5x32xf32> to vector<5x30xf32>
      %cst_38 = arith.constant dense<0.000000e+00> : vector<8x30xf32>
      %89 = tpu.matmul %87, %88, %cst_38 {dimension_numbers = #tpu.dot_dimension_numbers<[1], [0], [0], [1], [0, 0, 1, 1], [], []>} : vector<8x5xf32>, vector<5x30xf32>, vector<8x30xf32> -> vector<8x30xf32>
      %90 = arith.addf %82, %89 : vector<8x30xf32>
      %91 = vector.extract_strided_slice %67 {offsets = [0, 1], sizes = [5, 30], strides = [1, 1]} : vector<5x32xf32> to vector<5x30xf32>
      %cst_39 = arith.constant dense<0.000000e+00> : vector<8x30xf32>
      %92 = tpu.matmul %87, %91, %cst_39 {dimension_numbers = #tpu.dot_dimension_numbers<[1], [0], [0], [1], [0, 0, 1, 1], [], []>} : vector<8x5xf32>, vector<5x30xf32>, vector<8x30xf32> -> vector<8x30xf32>
      %93 = arith.addf %85, %92 : vector<8x30xf32>
      %94 = vector.extract_strided_slice %0 {offsets = [3, 0, 0], sizes = [1, 8, 5], strides = [1, 1, 1]} : vector<5x8x5xf32> to vector<1x8x5xf32>
      %95 = vector.shape_cast %94 : vector<1x8x5xf32> to vector<8x5xf32>
      %96 = vector.extract_strided_slice %67 {offsets = [0, 1], sizes = [5, 30], strides = [1, 1]} : vector<5x32xf32> to vector<5x30xf32>
      %cst_40 = arith.constant dense<0.000000e+00> : vector<8x30xf32>
      %97 = tpu.matmul %95, %96, %cst_40 {dimension_numbers = #tpu.dot_dimension_numbers<[1], [0], [0], [1], [0, 0, 1, 1], [], []>} : vector<8x5xf32>, vector<5x30xf32>, vector<8x30xf32> -> vector<8x30xf32>
      %98 = arith.addf %90, %97 : vector<8x30xf32>
      %99 = vector.extract_strided_slice %64 {offsets = [0, 2], sizes = [5, 30], strides = [1, 1]} : vector<5x32xf32> to vector<5x30xf32>
      %cst_41 = arith.constant dense<0.000000e+00> : vector<8x30xf32>
      %100 = tpu.matmul %95, %99, %cst_41 {dimension_numbers = #tpu.dot_dimension_numbers<[1], [0], [0], [1], [0, 0, 1, 1], [], []>} : vector<8x5xf32>, vector<5x30xf32>, vector<8x30xf32> -> vector<8x30xf32>
      %101 = arith.addf %93, %100 : vector<8x30xf32>
      %102 = vector.extract_strided_slice %0 {offsets = [4, 0, 0], sizes = [1, 8, 5], strides = [1, 1, 1]} : vector<5x8x5xf32> to vector<1x8x5xf32>
      %103 = vector.shape_cast %102 : vector<1x8x5xf32> to vector<8x5xf32>
      %104 = vector.extract_strided_slice %64 {offsets = [0, 2], sizes = [5, 30], strides = [1, 1]} : vector<5x32xf32> to vector<5x30xf32>
      %cst_42 = arith.constant dense<0.000000e+00> : vector<8x30xf32>
      %105 = tpu.matmul %103, %104, %cst_42 {dimension_numbers = #tpu.dot_dimension_numbers<[1], [0], [0], [1], [0, 0, 1, 1], [], []>} : vector<8x5xf32>, vector<5x30xf32>, vector<8x30xf32> -> vector<8x30xf32>
      %106 = arith.addf %98, %105 : vector<8x30xf32>
      %107 = vector.extract_strided_slice %67 {offsets = [0, 2], sizes = [5, 30], strides = [1, 1]} : vector<5x32xf32> to vector<5x30xf32>
      %cst_43 = arith.constant dense<0.000000e+00> : vector<8x30xf32>
      %108 = tpu.matmul %103, %107, %cst_43 {dimension_numbers = #tpu.dot_dimension_numbers<[1], [0], [0], [1], [0, 0, 1, 1], [], []>} : vector<8x5xf32>, vector<5x30xf32>, vector<8x30xf32> -> vector<8x30xf32>
      %109 = arith.addf %101, %108 : vector<8x30xf32>
      %110 = arith.maximumf %106, %109 : vector<8x30xf32>
      %111 = arith.maximumf %58, %110 : vector<8x30xf32>
      %112 = vector.broadcast %1 : vector<8x1xf32> to vector<8x30xf32>
      %113 = arith.addf %111, %112 : vector<8x30xf32>
      %cst_44 = arith.constant 0.000000e+00 : f32
      %114 = vector.broadcast %cst_44 : f32 to vector<8x30xf32>
      %115 = arith.maximumf %113, %114 : vector<8x30xf32>
      %c8_i32 = arith.constant 8 : i32
      %116 = arith.muli %4, %c8_i32 : i32
      %117 = tpu.assume_multiple %116, 8 : i32
      %c0_45 = arith.constant 0 : index
      %118 = arith.index_cast %117 : i32 to index
      %c0_46 = arith.constant 0 : index
      %119 = vector.load %arg6[%c0_45, %118, %c0_46] : memref<1x48x30xf32, #tpu.memory_space<vmem>>, vector<1x8x30xf32>
      %120 = vector.shape_cast %119 : vector<1x8x30xf32> to vector<8x30xf32>
      %121 = vector.shape_cast %115 : vector<8x30xf32> to vector<1x8x30xf32>
      tpu.vector_store %arg6[%c0_45, %118, %c0_46], %121 {strides = array<i32>} : memref<1x48x30xf32, #tpu.memory_space<vmem>>, vector<1x8x30xf32>,
    }
    %c6_i32_4 = arith.constant 6 : i32
    return
  }
  func.func @transform_0(%arg0: i32, %arg1: i32) -> (i32, i32, i32) {
    %c0_i32 = arith.constant 0 : i32
    %c0_i32_0 = arith.constant 0 : i32
    %c0_i32_1 = arith.constant 0 : i32
    return %arg0, %c0_i32, %c0_i32_0 : i32, i32, i32
  }
  func.func @transform_1(%arg0: i32, %arg1: i32) -> (i32, i32, i32) {
    %c0_i32 = arith.constant 0 : i32
    %c0_i32_0 = arith.constant 0 : i32
    %c0_i32_1 = arith.constant 0 : i32
    return %arg0, %c0_i32, %c0_i32_0 : i32, i32, i32
  }
  func.func @transform_2(%arg0: i32, %arg1: i32) -> (i32, i32, i32) {
    %c0_i32 = arith.constant 0 : i32
    %c0_i32_0 = arith.constant 0 : i32
    %c0_i32_1 = arith.constant 0 : i32
    %c0_i32_2 = arith.constant 0 : i32
    return %c0_i32, %c0_i32_0, %c0_i32_1 : i32, i32, i32
  }
  func.func @transform_3(%arg0: i32, %arg1: i32) -> (i32, i32) {
    %c0_i32 = arith.constant 0 : i32
    %c0_i32_0 = arith.constant 0 : i32
    %c0_i32_1 = arith.constant 0 : i32
    return %c0_i32, %c0_i32_0 : i32, i32
  }
  func.func @transform_4(%arg0: i32, %arg1: i32) -> (i32, i32, i32) {
    %c0_i32 = arith.constant 0 : i32
    %c0_i32_0 = arith.constant 0 : i32
    return %arg0, %arg1, %c0_i32 : i32, i32, i32
  }
}

module attributes {stable_mosaic.version = 11 : i64} {
  func.func @_conv_kernel(%arg0: i32, %arg1: i32, %arg2: memref<1x208x13xf32, #tpu.memory_space<vmem>>, %arg3: memref<5x128x80xf32, #tpu.memory_space<vmem>>, %arg4: memref<128x1xf32, #tpu.memory_space<vmem>>, %arg5: memref<1x384x9xbf16, #tpu.memory_space<vmem>>) attributes {dimension_semantics = [#tpu.dimension_semantics<parallel>, #tpu.dimension_semantics<parallel>], iteration_bounds = array<i64: 2, 3>, scalar_prefetch = 0 : i64, scratch_operands = 0 : i64, tpu.core_type = #tpu.core_type<tc>, window_params = [{transform_indices = @transform_0, window_bounds = array<i64: 1, 208, 13>}, {pipeline_mode = #tpu.pipeline_mode<synchronous>, transform_indices = @transform_1, window_bounds = array<i64: 5, 128, 80>}, {pipeline_mode = #tpu.pipeline_mode<synchronous>, transform_indices = @transform_2, window_bounds = array<i64: 128, 1>}, {transform_indices = @transform_3, window_bounds = array<i64: 1, 384, 9>}]} {
    %c0 = arith.constant 0 : index
    %c0_0 = arith.constant 0 : index
    %c0_1 = arith.constant 0 : index
    %0 = vector.load %arg3[%c0, %c0_0, %c0_1] : memref<5x128x80xf32, #tpu.memory_space<vmem>>, vector<5x128x80xf32>
    %c0_2 = arith.constant 0 : index
    %c0_3 = arith.constant 0 : index
    %1 = vector.load %arg4[%c0_2, %c0_3] : memref<128x1xf32, #tpu.memory_space<vmem>>, vector<128x1xf32>
    %c0_i32 = arith.constant 0 : i32
    %c3_i32 = arith.constant 3 : i32
    %2 = arith.addi %c0_i32, %c3_i32 : i32
    %c1_i32 = arith.constant 1 : i32
    scf.for %arg6 = %c0_i32 to %2 step %c1_i32  : i32 {
      %c1_i32_5 = arith.constant 1 : i32
      %3 = arith.muli %arg6, %c1_i32_5 : i32
      %c0_i32_6 = arith.constant 0 : i32
      %4 = arith.addi %c0_i32_6, %3 : i32
      %c3_i32_7 = arith.constant 3 : i32
      %5 = arith.muli %arg1, %c3_i32_7 : i32
      %6 = arith.addi %5, %4 : i32
      %c16_i32 = arith.constant 16 : i32
      %7 = arith.muli %6, %c16_i32 : i32
      %8 = tpu.assume_multiple %7, 8 : i32
      %c0_8 = arith.constant 0 : index
      %9 = arith.index_cast %8 : i32 to index
      %c0_9 = arith.constant 0 : index
      %10 = vector.load %arg2[%c0_8, %9, %c0_9] : memref<1x208x13xf32, #tpu.memory_space<vmem>>, vector<1x80x13xf32>
      %11 = vector.shape_cast %10 : vector<1x80x13xf32> to vector<80x13xf32>
      %cst = arith.constant 0.000000e+00 : f32
      %12 = vector.broadcast %cst : f32 to vector<128x9xf32>
      %13 = vector.extract_strided_slice %0 {offsets = [0, 0, 0], sizes = [1, 128, 80], strides = [1, 1, 1]} : vector<5x128x80xf32> to vector<1x128x80xf32>
      %14 = vector.shape_cast %13 : vector<1x128x80xf32> to vector<128x80xf32>
      %15 = vector.extract_strided_slice %11 {offsets = [0, 0], sizes = [80, 9], strides = [1, 1]} : vector<80x13xf32> to vector<80x9xf32>
      %cst_10 = arith.constant dense<0.000000e+00> : vector<128x9xf32>
      %16 = tpu.matmul %14, %15, %cst_10 {dimension_numbers = #tpu.dot_dimension_numbers<[1], [0], [0], [1], [0, 0, 1, 1], [], []>} : vector<128x80xf32>, vector<80x9xf32>, vector<128x9xf32> -> vector<128x9xf32>
      %17 = arith.addf %12, %16 : vector<128x9xf32>
      %18 = vector.extract_strided_slice %0 {offsets = [1, 0, 0], sizes = [1, 128, 80], strides = [1, 1, 1]} : vector<5x128x80xf32> to vector<1x128x80xf32>
      %19 = vector.shape_cast %18 : vector<1x128x80xf32> to vector<128x80xf32>
      %20 = vector.extract_strided_slice %11 {offsets = [0, 1], sizes = [80, 9], strides = [1, 1]} : vector<80x13xf32> to vector<80x9xf32>
      %cst_11 = arith.constant dense<0.000000e+00> : vector<128x9xf32>
      %21 = tpu.matmul %19, %20, %cst_11 {dimension_numbers = #tpu.dot_dimension_numbers<[1], [0], [0], [1], [0, 0, 1, 1], [], []>} : vector<128x80xf32>, vector<80x9xf32>, vector<128x9xf32> -> vector<128x9xf32>
      %22 = arith.addf %17, %21 : vector<128x9xf32>
      %23 = vector.extract_strided_slice %0 {offsets = [2, 0, 0], sizes = [1, 128, 80], strides = [1, 1, 1]} : vector<5x128x80xf32> to vector<1x128x80xf32>
      %24 = vector.shape_cast %23 : vector<1x128x80xf32> to vector<128x80xf32>
      %25 = vector.extract_strided_slice %11 {offsets = [0, 2], sizes = [80, 9], strides = [1, 1]} : vector<80x13xf32> to vector<80x9xf32>
      %cst_12 = arith.constant dense<0.000000e+00> : vector<128x9xf32>
      %26 = tpu.matmul %24, %25, %cst_12 {dimension_numbers = #tpu.dot_dimension_numbers<[1], [0], [0], [1], [0, 0, 1, 1], [], []>} : vector<128x80xf32>, vector<80x9xf32>, vector<128x9xf32> -> vector<128x9xf32>
      %27 = arith.addf %22, %26 : vector<128x9xf32>
      %28 = vector.extract_strided_slice %0 {offsets = [3, 0, 0], sizes = [1, 128, 80], strides = [1, 1, 1]} : vector<5x128x80xf32> to vector<1x128x80xf32>
      %29 = vector.shape_cast %28 : vector<1x128x80xf32> to vector<128x80xf32>
      %30 = vector.extract_strided_slice %11 {offsets = [0, 3], sizes = [80, 9], strides = [1, 1]} : vector<80x13xf32> to vector<80x9xf32>
      %cst_13 = arith.constant dense<0.000000e+00> : vector<128x9xf32>
      %31 = tpu.matmul %29, %30, %cst_13 {dimension_numbers = #tpu.dot_dimension_numbers<[1], [0], [0], [1], [0, 0, 1, 1], [], []>} : vector<128x80xf32>, vector<80x9xf32>, vector<128x9xf32> -> vector<128x9xf32>
      %32 = arith.addf %27, %31 : vector<128x9xf32>
      %33 = vector.extract_strided_slice %0 {offsets = [4, 0, 0], sizes = [1, 128, 80], strides = [1, 1, 1]} : vector<5x128x80xf32> to vector<1x128x80xf32>
      %34 = vector.shape_cast %33 : vector<1x128x80xf32> to vector<128x80xf32>
      %35 = vector.extract_strided_slice %11 {offsets = [0, 4], sizes = [80, 9], strides = [1, 1]} : vector<80x13xf32> to vector<80x9xf32>
      %cst_14 = arith.constant dense<0.000000e+00> : vector<128x9xf32>
      %36 = tpu.matmul %34, %35, %cst_14 {dimension_numbers = #tpu.dot_dimension_numbers<[1], [0], [0], [1], [0, 0, 1, 1], [], []>} : vector<128x80xf32>, vector<80x9xf32>, vector<128x9xf32> -> vector<128x9xf32>
      %37 = arith.addf %32, %36 : vector<128x9xf32>
      %38 = vector.broadcast %1 : vector<128x1xf32> to vector<128x9xf32>
      %39 = arith.addf %37, %38 : vector<128x9xf32>
      %cst_15 = arith.constant 0.000000e+00 : f32
      %40 = vector.broadcast %cst_15 : f32 to vector<128x9xf32>
      %41 = arith.maximumf %39, %40 : vector<128x9xf32>
      %42 = arith.truncf %41 : vector<128x9xf32> to vector<128x9xbf16>
      %c128_i32 = arith.constant 128 : i32
      %43 = arith.muli %4, %c128_i32 : i32
      %44 = tpu.assume_multiple %43, 8 : i32
      %c0_16 = arith.constant 0 : index
      %45 = arith.index_cast %44 : i32 to index
      %c0_17 = arith.constant 0 : index
      %46 = vector.load %arg5[%c0_16, %45, %c0_17] : memref<1x384x9xbf16, #tpu.memory_space<vmem>>, vector<1x128x9xbf16>
      %47 = vector.shape_cast %46 : vector<1x128x9xbf16> to vector<128x9xbf16>
      %48 = vector.shape_cast %42 : vector<128x9xbf16> to vector<1x128x9xbf16>
      tpu.vector_store %arg5[%c0_16, %45, %c0_17], %48 {strides = array<i32>} : memref<1x384x9xbf16, #tpu.memory_space<vmem>>, vector<1x128x9xbf16>,
    }
    %c3_i32_4 = arith.constant 3 : i32
    return
  }
  func.func @transform_0(%arg0: i32, %arg1: i32) -> (i32, i32, i32) {
    %c0_i32 = arith.constant 0 : i32
    %c0_i32_0 = arith.constant 0 : i32
    %c0_i32_1 = arith.constant 0 : i32
    return %arg0, %c0_i32, %c0_i32_0 : i32, i32, i32
  }
  func.func @transform_1(%arg0: i32, %arg1: i32) -> (i32, i32, i32) {
    %c0_i32 = arith.constant 0 : i32
    %c0_i32_0 = arith.constant 0 : i32
    %c0_i32_1 = arith.constant 0 : i32
    %c0_i32_2 = arith.constant 0 : i32
    return %c0_i32, %c0_i32_0, %c0_i32_1 : i32, i32, i32
  }
  func.func @transform_2(%arg0: i32, %arg1: i32) -> (i32, i32) {
    %c0_i32 = arith.constant 0 : i32
    %c0_i32_0 = arith.constant 0 : i32
    %c0_i32_1 = arith.constant 0 : i32
    return %c0_i32, %c0_i32_0 : i32, i32
  }
  func.func @transform_3(%arg0: i32, %arg1: i32) -> (i32, i32, i32) {
    %c0_i32 = arith.constant 0 : i32
    %c0_i32_0 = arith.constant 0 : i32
    return %arg0, %arg1, %c0_i32 : i32, i32, i32
  }
}

module attributes {stable_mosaic.version = 11 : i64} {
  func.func @_conv_pool_kernel(%arg0: i32, %arg1: i32, %arg2: memref<1x240x15xf32, #tpu.memory_space<vmem>>, %arg3: memref<1x240x15xf32, #tpu.memory_space<vmem>>, %arg4: memref<5x16x40xf32, #tpu.memory_space<vmem>>, %arg5: memref<16x1xf32, #tpu.memory_space<vmem>>, %arg6: memref<1x16x13xf32, #tpu.memory_space<vmem>>) attributes {dimension_semantics = [#tpu.dimension_semantics<parallel>, #tpu.dimension_semantics<parallel>], iteration_bounds = array<i64: 2, 13>, scalar_prefetch = 0 : i64, scratch_operands = 0 : i64, tpu.core_type = #tpu.core_type<tc>, window_params = [{transform_indices = @transform_0, window_bounds = array<i64: 1, 240, 15>}, {transform_indices = @transform_1, window_bounds = array<i64: 1, 240, 15>}, {pipeline_mode = #tpu.pipeline_mode<synchronous>, transform_indices = @transform_2, window_bounds = array<i64: 5, 16, 40>}, {pipeline_mode = #tpu.pipeline_mode<synchronous>, transform_indices = @transform_3, window_bounds = array<i64: 16, 1>}, {transform_indices = @transform_4, window_bounds = array<i64: 1, 16, 13>}]} {
    %c0 = arith.constant 0 : index
    %c0_0 = arith.constant 0 : index
    %c0_1 = arith.constant 0 : index
    %0 = vector.load %arg4[%c0, %c0_0, %c0_1] : memref<5x16x40xf32, #tpu.memory_space<vmem>>, vector<5x16x40xf32>
    %c0_2 = arith.constant 0 : index
    %c0_3 = arith.constant 0 : index
    %1 = vector.load %arg5[%c0_2, %c0_3] : memref<16x1xf32, #tpu.memory_space<vmem>>, vector<16x1xf32>
    %c0_i32 = arith.constant 0 : i32
    %c1_i32 = arith.constant 1 : i32
    %2 = arith.muli %c0_i32, %c1_i32 : i32
    %c0_i32_4 = arith.constant 0 : i32
    %3 = arith.addi %c0_i32_4, %2 : i32
    %c1_i32_5 = arith.constant 1 : i32
    %4 = arith.muli %arg1, %c1_i32_5 : i32
    %5 = arith.addi %4, %3 : i32
    %c2_i32 = arith.constant 2 : i32
    %6 = arith.muli %c2_i32, %5 : i32
    %c0_i32_6 = arith.constant 0 : i32
    %7 = arith.addi %6, %c0_i32_6 : i32
    %c8_i32 = arith.constant 8 : i32
    %8 = arith.muli %7, %c8_i32 : i32
    %9 = tpu.assume_multiple %8, 8 : i32
    %c0_7 = arith.constant 0 : index
    %10 = arith.index_cast %9 : i32 to index
    %c0_8 = arith.constant 0 : index
    %11 = vector.load %arg2[%c0_7, %10, %c0_8] : memref<1x240x15xf32, #tpu.memory_space<vmem>>, vector<1x40x15xf32>
    %12 = vector.shape_cast %11 : vector<1x40x15xf32> to vector<40x15xf32>
    %c0_9 = arith.constant 0 : index
    %13 = arith.index_cast %9 : i32 to index
    %c0_10 = arith.constant 0 : index
    %14 = vector.load %arg3[%c0_9, %13, %c0_10] : memref<1x240x15xf32, #tpu.memory_space<vmem>>, vector<1x40x15xf32>
    %15 = vector.shape_cast %14 : vector<1x40x15xf32> to vector<40x15xf32>
    %cst = arith.constant 0.000000e+00 : f32
    %16 = vector.broadcast %cst : f32 to vector<16x13xf32>
    %cst_11 = arith.constant 0.000000e+00 : f32
    %17 = vector.broadcast %cst_11 : f32 to vector<16x13xf32>
    %18 = vector.extract_strided_slice %0 {offsets = [0, 0, 0], sizes = [1, 16, 40], strides = [1, 1, 1]} : vector<5x16x40xf32> to vector<1x16x40xf32>
    %19 = vector.shape_cast %18 : vector<1x16x40xf32> to vector<16x40xf32>
    %20 = vector.extract_strided_slice %12 {offsets = [0, 0], sizes = [40, 13], strides = [1, 1]} : vector<40x15xf32> to vector<40x13xf32>
    %cst_12 = arith.constant dense<0.000000e+00> : vector<16x13xf32>
    %21 = tpu.matmul %19, %20, %cst_12 {dimension_numbers = #tpu.dot_dimension_numbers<[1], [0], [0], [1], [0, 0, 1, 1], [], []>} : vector<16x40xf32>, vector<40x13xf32>, vector<16x13xf32> -> vector<16x13xf32>
    %22 = arith.addf %16, %21 : vector<16x13xf32>
    %23 = vector.extract_strided_slice %15 {offsets = [0, 0], sizes = [40, 13], strides = [1, 1]} : vector<40x15xf32> to vector<40x13xf32>
    %cst_13 = arith.constant dense<0.000000e+00> : vector<16x13xf32>
    %24 = tpu.matmul %19, %23, %cst_13 {dimension_numbers = #tpu.dot_dimension_numbers<[1], [0], [0], [1], [0, 0, 1, 1], [], []>} : vector<16x40xf32>, vector<40x13xf32>, vector<16x13xf32> -> vector<16x13xf32>
    %25 = arith.addf %17, %24 : vector<16x13xf32>
    %26 = vector.extract_strided_slice %0 {offsets = [1, 0, 0], sizes = [1, 16, 40], strides = [1, 1, 1]} : vector<5x16x40xf32> to vector<1x16x40xf32>
    %27 = vector.shape_cast %26 : vector<1x16x40xf32> to vector<16x40xf32>
    %28 = vector.extract_strided_slice %15 {offsets = [0, 0], sizes = [40, 13], strides = [1, 1]} : vector<40x15xf32> to vector<40x13xf32>
    %cst_14 = arith.constant dense<0.000000e+00> : vector<16x13xf32>
    %29 = tpu.matmul %27, %28, %cst_14 {dimension_numbers = #tpu.dot_dimension_numbers<[1], [0], [0], [1], [0, 0, 1, 1], [], []>} : vector<16x40xf32>, vector<40x13xf32>, vector<16x13xf32> -> vector<16x13xf32>
    %30 = arith.addf %22, %29 : vector<16x13xf32>
    %31 = vector.extract_strided_slice %12 {offsets = [0, 1], sizes = [40, 13], strides = [1, 1]} : vector<40x15xf32> to vector<40x13xf32>
    %cst_15 = arith.constant dense<0.000000e+00> : vector<16x13xf32>
    %32 = tpu.matmul %27, %31, %cst_15 {dimension_numbers = #tpu.dot_dimension_numbers<[1], [0], [0], [1], [0, 0, 1, 1], [], []>} : vector<16x40xf32>, vector<40x13xf32>, vector<16x13xf32> -> vector<16x13xf32>
    %33 = arith.addf %25, %32 : vector<16x13xf32>
    %34 = vector.extract_strided_slice %0 {offsets = [2, 0, 0], sizes = [1, 16, 40], strides = [1, 1, 1]} : vector<5x16x40xf32> to vector<1x16x40xf32>
    %35 = vector.shape_cast %34 : vector<1x16x40xf32> to vector<16x40xf32>
    %36 = vector.extract_strided_slice %12 {offsets = [0, 1], sizes = [40, 13], strides = [1, 1]} : vector<40x15xf32> to vector<40x13xf32>
    %cst_16 = arith.constant dense<0.000000e+00> : vector<16x13xf32>
    %37 = tpu.matmul %35, %36, %cst_16 {dimension_numbers = #tpu.dot_dimension_numbers<[1], [0], [0], [1], [0, 0, 1, 1], [], []>} : vector<16x40xf32>, vector<40x13xf32>, vector<16x13xf32> -> vector<16x13xf32>
    %38 = arith.addf %30, %37 : vector<16x13xf32>
    %39 = vector.extract_strided_slice %15 {offsets = [0, 1], sizes = [40, 13], strides = [1, 1]} : vector<40x15xf32> to vector<40x13xf32>
    %cst_17 = arith.constant dense<0.000000e+00> : vector<16x13xf32>
    %40 = tpu.matmul %35, %39, %cst_17 {dimension_numbers = #tpu.dot_dimension_numbers<[1], [0], [0], [1], [0, 0, 1, 1], [], []>} : vector<16x40xf32>, vector<40x13xf32>, vector<16x13xf32> -> vector<16x13xf32>
    %41 = arith.addf %33, %40 : vector<16x13xf32>
    %42 = vector.extract_strided_slice %0 {offsets = [3, 0, 0], sizes = [1, 16, 40], strides = [1, 1, 1]} : vector<5x16x40xf32> to vector<1x16x40xf32>
    %43 = vector.shape_cast %42 : vector<1x16x40xf32> to vector<16x40xf32>
    %44 = vector.extract_strided_slice %15 {offsets = [0, 1], sizes = [40, 13], strides = [1, 1]} : vector<40x15xf32> to vector<40x13xf32>
    %cst_18 = arith.constant dense<0.000000e+00> : vector<16x13xf32>
    %45 = tpu.matmul %43, %44, %cst_18 {dimension_numbers = #tpu.dot_dimension_numbers<[1], [0], [0], [1], [0, 0, 1, 1], [], []>} : vector<16x40xf32>, vector<40x13xf32>, vector<16x13xf32> -> vector<16x13xf32>
    %46 = arith.addf %38, %45 : vector<16x13xf32>
    %47 = vector.extract_strided_slice %12 {offsets = [0, 2], sizes = [40, 13], strides = [1, 1]} : vector<40x15xf32> to vector<40x13xf32>
    %cst_19 = arith.constant dense<0.000000e+00> : vector<16x13xf32>
    %48 = tpu.matmul %43, %47, %cst_19 {dimension_numbers = #tpu.dot_dimension_numbers<[1], [0], [0], [1], [0, 0, 1, 1], [], []>} : vector<16x40xf32>, vector<40x13xf32>, vector<16x13xf32> -> vector<16x13xf32>
    %49 = arith.addf %41, %48 : vector<16x13xf32>
    %50 = vector.extract_strided_slice %0 {offsets = [4, 0, 0], sizes = [1, 16, 40], strides = [1, 1, 1]} : vector<5x16x40xf32> to vector<1x16x40xf32>
    %51 = vector.shape_cast %50 : vector<1x16x40xf32> to vector<16x40xf32>
    %52 = vector.extract_strided_slice %12 {offsets = [0, 2], sizes = [40, 13], strides = [1, 1]} : vector<40x15xf32> to vector<40x13xf32>
    %cst_20 = arith.constant dense<0.000000e+00> : vector<16x13xf32>
    %53 = tpu.matmul %51, %52, %cst_20 {dimension_numbers = #tpu.dot_dimension_numbers<[1], [0], [0], [1], [0, 0, 1, 1], [], []>} : vector<16x40xf32>, vector<40x13xf32>, vector<16x13xf32> -> vector<16x13xf32>
    %54 = arith.addf %46, %53 : vector<16x13xf32>
    %55 = vector.extract_strided_slice %15 {offsets = [0, 2], sizes = [40, 13], strides = [1, 1]} : vector<40x15xf32> to vector<40x13xf32>
    %cst_21 = arith.constant dense<0.000000e+00> : vector<16x13xf32>
    %56 = tpu.matmul %51, %55, %cst_21 {dimension_numbers = #tpu.dot_dimension_numbers<[1], [0], [0], [1], [0, 0, 1, 1], [], []>} : vector<16x40xf32>, vector<40x13xf32>, vector<16x13xf32> -> vector<16x13xf32>
    %57 = arith.addf %49, %56 : vector<16x13xf32>
    %58 = arith.maximumf %54, %57 : vector<16x13xf32>
    %c2_i32_22 = arith.constant 2 : i32
    %59 = arith.muli %c2_i32_22, %5 : i32
    %c1_i32_23 = arith.constant 1 : i32
    %60 = arith.addi %59, %c1_i32_23 : i32
    %c8_i32_24 = arith.constant 8 : i32
    %61 = arith.muli %60, %c8_i32_24 : i32
    %62 = tpu.assume_multiple %61, 8 : i32
    %c0_25 = arith.constant 0 : index
    %63 = arith.index_cast %62 : i32 to index
    %c0_26 = arith.constant 0 : index
    %64 = vector.load %arg2[%c0_25, %63, %c0_26] : memref<1x240x15xf32, #tpu.memory_space<vmem>>, vector<1x40x15xf32>
    %65 = vector.shape_cast %64 : vector<1x40x15xf32> to vector<40x15xf32>
    %c0_27 = arith.constant 0 : index
    %66 = arith.index_cast %62 : i32 to index
    %c0_28 = arith.constant 0 : index
    %67 = vector.load %arg3[%c0_27, %66, %c0_28] : memref<1x240x15xf32, #tpu.memory_space<vmem>>, vector<1x40x15xf32>
    %68 = vector.shape_cast %67 : vector<1x40x15xf32> to vector<40x15xf32>
    %cst_29 = arith.constant 0.000000e+00 : f32
    %69 = vector.broadcast %cst_29 : f32 to vector<16x13xf32>
    %cst_30 = arith.constant 0.000000e+00 : f32
    %70 = vector.broadcast %cst_30 : f32 to vector<16x13xf32>
    %71 = vector.extract_strided_slice %0 {offsets = [0, 0, 0], sizes = [1, 16, 40], strides = [1, 1, 1]} : vector<5x16x40xf32> to vector<1x16x40xf32>
    %72 = vector.shape_cast %71 : vector<1x16x40xf32> to vector<16x40xf32>
    %73 = vector.extract_strided_slice %65 {offsets = [0, 0], sizes = [40, 13], strides = [1, 1]} : vector<40x15xf32> to vector<40x13xf32>
    %cst_31 = arith.constant dense<0.000000e+00> : vector<16x13xf32>
    %74 = tpu.matmul %72, %73, %cst_31 {dimension_numbers = #tpu.dot_dimension_numbers<[1], [0], [0], [1], [0, 0, 1, 1], [], []>} : vector<16x40xf32>, vector<40x13xf32>, vector<16x13xf32> -> vector<16x13xf32>
    %75 = arith.addf %69, %74 : vector<16x13xf32>
    %76 = vector.extract_strided_slice %68 {offsets = [0, 0], sizes = [40, 13], strides = [1, 1]} : vector<40x15xf32> to vector<40x13xf32>
    %cst_32 = arith.constant dense<0.000000e+00> : vector<16x13xf32>
    %77 = tpu.matmul %72, %76, %cst_32 {dimension_numbers = #tpu.dot_dimension_numbers<[1], [0], [0], [1], [0, 0, 1, 1], [], []>} : vector<16x40xf32>, vector<40x13xf32>, vector<16x13xf32> -> vector<16x13xf32>
    %78 = arith.addf %70, %77 : vector<16x13xf32>
    %79 = vector.extract_strided_slice %0 {offsets = [1, 0, 0], sizes = [1, 16, 40], strides = [1, 1, 1]} : vector<5x16x40xf32> to vector<1x16x40xf32>
    %80 = vector.shape_cast %79 : vector<1x16x40xf32> to vector<16x40xf32>
    %81 = vector.extract_strided_slice %68 {offsets = [0, 0], sizes = [40, 13], strides = [1, 1]} : vector<40x15xf32> to vector<40x13xf32>
    %cst_33 = arith.constant dense<0.000000e+00> : vector<16x13xf32>
    %82 = tpu.matmul %80, %81, %cst_33 {dimension_numbers = #tpu.dot_dimension_numbers<[1], [0], [0], [1], [0, 0, 1, 1], [], []>} : vector<16x40xf32>, vector<40x13xf32>, vector<16x13xf32> -> vector<16x13xf32>
    %83 = arith.addf %75, %82 : vector<16x13xf32>
    %84 = vector.extract_strided_slice %65 {offsets = [0, 1], sizes = [40, 13], strides = [1, 1]} : vector<40x15xf32> to vector<40x13xf32>
    %cst_34 = arith.constant dense<0.000000e+00> : vector<16x13xf32>
    %85 = tpu.matmul %80, %84, %cst_34 {dimension_numbers = #tpu.dot_dimension_numbers<[1], [0], [0], [1], [0, 0, 1, 1], [], []>} : vector<16x40xf32>, vector<40x13xf32>, vector<16x13xf32> -> vector<16x13xf32>
    %86 = arith.addf %78, %85 : vector<16x13xf32>
    %87 = vector.extract_strided_slice %0 {offsets = [2, 0, 0], sizes = [1, 16, 40], strides = [1, 1, 1]} : vector<5x16x40xf32> to vector<1x16x40xf32>
    %88 = vector.shape_cast %87 : vector<1x16x40xf32> to vector<16x40xf32>
    %89 = vector.extract_strided_slice %65 {offsets = [0, 1], sizes = [40, 13], strides = [1, 1]} : vector<40x15xf32> to vector<40x13xf32>
    %cst_35 = arith.constant dense<0.000000e+00> : vector<16x13xf32>
    %90 = tpu.matmul %88, %89, %cst_35 {dimension_numbers = #tpu.dot_dimension_numbers<[1], [0], [0], [1], [0, 0, 1, 1], [], []>} : vector<16x40xf32>, vector<40x13xf32>, vector<16x13xf32> -> vector<16x13xf32>
    %91 = arith.addf %83, %90 : vector<16x13xf32>
    %92 = vector.extract_strided_slice %68 {offsets = [0, 1], sizes = [40, 13], strides = [1, 1]} : vector<40x15xf32> to vector<40x13xf32>
    %cst_36 = arith.constant dense<0.000000e+00> : vector<16x13xf32>
    %93 = tpu.matmul %88, %92, %cst_36 {dimension_numbers = #tpu.dot_dimension_numbers<[1], [0], [0], [1], [0, 0, 1, 1], [], []>} : vector<16x40xf32>, vector<40x13xf32>, vector<16x13xf32> -> vector<16x13xf32>
    %94 = arith.addf %86, %93 : vector<16x13xf32>
    %95 = vector.extract_strided_slice %0 {offsets = [3, 0, 0], sizes = [1, 16, 40], strides = [1, 1, 1]} : vector<5x16x40xf32> to vector<1x16x40xf32>
    %96 = vector.shape_cast %95 : vector<1x16x40xf32> to vector<16x40xf32>
    %97 = vector.extract_strided_slice %68 {offsets = [0, 1], sizes = [40, 13], strides = [1, 1]} : vector<40x15xf32> to vector<40x13xf32>
    %cst_37 = arith.constant dense<0.000000e+00> : vector<16x13xf32>
    %98 = tpu.matmul %96, %97, %cst_37 {dimension_numbers = #tpu.dot_dimension_numbers<[1], [0], [0], [1], [0, 0, 1, 1], [], []>} : vector<16x40xf32>, vector<40x13xf32>, vector<16x13xf32> -> vector<16x13xf32>
    %99 = arith.addf %91, %98 : vector<16x13xf32>
    %100 = vector.extract_strided_slice %65 {offsets = [0, 2], sizes = [40, 13], strides = [1, 1]} : vector<40x15xf32> to vector<40x13xf32>
    %cst_38 = arith.constant dense<0.000000e+00> : vector<16x13xf32>
    %101 = tpu.matmul %96, %100, %cst_38 {dimension_numbers = #tpu.dot_dimension_numbers<[1], [0], [0], [1], [0, 0, 1, 1], [], []>} : vector<16x40xf32>, vector<40x13xf32>, vector<16x13xf32> -> vector<16x13xf32>
    %102 = arith.addf %94, %101 : vector<16x13xf32>
    %103 = vector.extract_strided_slice %0 {offsets = [4, 0, 0], sizes = [1, 16, 40], strides = [1, 1, 1]} : vector<5x16x40xf32> to vector<1x16x40xf32>
    %104 = vector.shape_cast %103 : vector<1x16x40xf32> to vector<16x40xf32>
    %105 = vector.extract_strided_slice %65 {offsets = [0, 2], sizes = [40, 13], strides = [1, 1]} : vector<40x15xf32> to vector<40x13xf32>
    %cst_39 = arith.constant dense<0.000000e+00> : vector<16x13xf32>
    %106 = tpu.matmul %104, %105, %cst_39 {dimension_numbers = #tpu.dot_dimension_numbers<[1], [0], [0], [1], [0, 0, 1, 1], [], []>} : vector<16x40xf32>, vector<40x13xf32>, vector<16x13xf32> -> vector<16x13xf32>
    %107 = arith.addf %99, %106 : vector<16x13xf32>
    %108 = vector.extract_strided_slice %68 {offsets = [0, 2], sizes = [40, 13], strides = [1, 1]} : vector<40x15xf32> to vector<40x13xf32>
    %cst_40 = arith.constant dense<0.000000e+00> : vector<16x13xf32>
    %109 = tpu.matmul %104, %108, %cst_40 {dimension_numbers = #tpu.dot_dimension_numbers<[1], [0], [0], [1], [0, 0, 1, 1], [], []>} : vector<16x40xf32>, vector<40x13xf32>, vector<16x13xf32> -> vector<16x13xf32>
    %110 = arith.addf %102, %109 : vector<16x13xf32>
    %111 = arith.maximumf %107, %110 : vector<16x13xf32>
    %112 = arith.maximumf %58, %111 : vector<16x13xf32>
    %113 = vector.broadcast %1 : vector<16x1xf32> to vector<16x13xf32>
    %114 = arith.addf %112, %113 : vector<16x13xf32>
    %cst_41 = arith.constant 0.000000e+00 : f32
    %115 = vector.broadcast %cst_41 : f32 to vector<16x13xf32>
    %116 = arith.maximumf %114, %115 : vector<16x13xf32>
    %c16_i32 = arith.constant 16 : i32
    %117 = arith.muli %3, %c16_i32 : i32
    %118 = tpu.assume_multiple %117, 8 : i32
    %c0_42 = arith.constant 0 : index
    %119 = arith.index_cast %118 : i32 to index
    %c0_43 = arith.constant 0 : index
    %120 = vector.load %arg6[%c0_42, %119, %c0_43] : memref<1x16x13xf32, #tpu.memory_space<vmem>>, vector<1x16x13xf32>
    %121 = vector.shape_cast %120 : vector<1x16x13xf32> to vector<16x13xf32>
    %122 = vector.shape_cast %116 : vector<16x13xf32> to vector<1x16x13xf32>
    tpu.vector_store %arg6[%c0_42, %119, %c0_43], %122 {strides = array<i32>} : memref<1x16x13xf32, #tpu.memory_space<vmem>>, vector<1x16x13xf32>,
    %c1_i32_44 = arith.constant 1 : i32
    return
  }
  func.func @transform_0(%arg0: i32, %arg1: i32) -> (i32, i32, i32) {
    %c0_i32 = arith.constant 0 : i32
    %c0_i32_0 = arith.constant 0 : i32
    %c0_i32_1 = arith.constant 0 : i32
    return %arg0, %c0_i32, %c0_i32_0 : i32, i32, i32
  }
  func.func @transform_1(%arg0: i32, %arg1: i32) -> (i32, i32, i32) {
    %c0_i32 = arith.constant 0 : i32
    %c0_i32_0 = arith.constant 0 : i32
    %c0_i32_1 = arith.constant 0 : i32
    return %arg0, %c0_i32, %c0_i32_0 : i32, i32, i32
  }
  func.func @transform_2(%arg0: i32, %arg1: i32) -> (i32, i32, i32) {
    %c0_i32 = arith.constant 0 : i32
    %c0_i32_0 = arith.constant 0 : i32
    %c0_i32_1 = arith.constant 0 : i32
    %c0_i32_2 = arith.constant 0 : i32
    return %c0_i32, %c0_i32_0, %c0_i32_1 : i32, i32, i32
  }
  func.func @transform_3(%arg0: i32, %arg1: i32) -> (i32, i32) {
    %c0_i32 = arith.constant 0 : i32
    %c0_i32_0 = arith.constant 0 : i32
    %c0_i32_1 = arith.constant 0 : i32
    return %c0_i32, %c0_i32_0 : i32, i32
  }
  func.func @transform_4(%arg0: i32, %arg1: i32) -> (i32, i32, i32) {
    %c0_i32 = arith.constant 0 : i32
    %c0_i32_0 = arith.constant 0 : i32
    return %arg0, %arg1, %c0_i32 : i32, i32, i32
  }
}

module attributes {stable_mosaic.version = 11 : i64} {
  func.func @_fc1_partial_kernel(%arg0: i32, %arg1: i32, %arg2: memref<2x3456xbf16, #tpu.memory_space<vmem>>, %arg3: memref<3456x128xbf16, #tpu.memory_space<vmem>>, %arg4: memref<1x2x128xf32, #tpu.memory_space<vmem>>) attributes {dimension_semantics = [#tpu.dimension_semantics<parallel>, #tpu.dimension_semantics<arbitrary>], iteration_bounds = array<i64: 2, 2>, scalar_prefetch = 0 : i64, scratch_operands = 0 : i64, tpu.core_type = #tpu.core_type<tc>, window_params = [{transform_indices = @transform_0, window_bounds = array<i64: 2, 3456>}, {transform_indices = @transform_1, window_bounds = array<i64: 3456, 128>}, {transform_indices = @transform_2, window_bounds = array<i64: 1, 2, 128>}]} {
    %c0_i32 = arith.constant 0 : i32
    %0 = arith.cmpi eq, %arg1, %c0_i32 : i32
    %1 = arith.extui %0 : i1 to i32
    %c0_i32_0 = arith.constant 0 : i32
    %2 = arith.cmpi ne, %1, %c0_i32_0 : i32
    scf.if %2 {
      %cst = arith.constant 0.000000e+00 : f32
      %8 = vector.broadcast %cst : f32 to vector<2x128xf32>
      %c0 = arith.constant 0 : index
      %c0_2 = arith.constant 0 : index
      %c0_3 = arith.constant 0 : index
      %9 = vector.load %arg4[%c0, %c0_2, %c0_3] : memref<1x2x128xf32, #tpu.memory_space<vmem>>, vector<1x2x128xf32>
      %10 = vector.shape_cast %9 : vector<1x2x128xf32> to vector<2x128xf32>
      %11 = vector.shape_cast %8 : vector<2x128xf32> to vector<1x2x128xf32>
      tpu.vector_store %arg4[%c0, %c0_2, %c0_3], %11 {strides = array<i32>} : memref<1x2x128xf32, #tpu.memory_space<vmem>>, vector<1x2x128xf32>,
    } else {
    }
    %c2_i32 = arith.constant 2 : i32
    %3 = arith.muli %arg0, %c2_i32 : i32
    %4 = arith.addi %3, %arg1 : i32
    %c3_i32 = arith.constant 3 : i32
    %5 = arith.cmpi slt, %4, %c3_i32 : i32
    %6 = arith.extui %5 : i1 to i32
    %c0_i32_1 = arith.constant 0 : i32
    %7 = arith.cmpi ne, %6, %c0_i32_1 : i32
    scf.if %7 {
      %c0 = arith.constant 0 : index
      %c0_2 = arith.constant 0 : index
      %c0_3 = arith.constant 0 : index
      %8 = vector.load %arg4[%c0, %c0_2, %c0_3] : memref<1x2x128xf32, #tpu.memory_space<vmem>>, vector<1x2x128xf32>
      %9 = vector.shape_cast %8 : vector<1x2x128xf32> to vector<2x128xf32>
      %c0_4 = arith.constant 0 : index
      %c0_5 = arith.constant 0 : index
      %10 = vector.load %arg2[%c0_4, %c0_5] : memref<2x3456xbf16, #tpu.memory_space<vmem>>, vector<2x3456xbf16>
      %c0_6 = arith.constant 0 : index
      %c0_7 = arith.constant 0 : index
      %11 = vector.load %arg3[%c0_6, %c0_7] : memref<3456x128xbf16, #tpu.memory_space<vmem>>, vector<3456x128xbf16>
      %cst = arith.constant dense<0.000000e+00> : vector<2x128xf32>
      %12 = tpu.matmul %10, %11, %cst {dimension_numbers = #tpu.dot_dimension_numbers<[1], [0], [0], [1], [0, 0, 1, 1], [], []>} : vector<2x3456xbf16>, vector<3456x128xbf16>, vector<2x128xf32> -> vector<2x128xf32>
      %13 = arith.addf %9, %12 : vector<2x128xf32>
      %c0_8 = arith.constant 0 : index
      %c0_9 = arith.constant 0 : index
      %c0_10 = arith.constant 0 : index
      %14 = vector.load %arg4[%c0_8, %c0_9, %c0_10] : memref<1x2x128xf32, #tpu.memory_space<vmem>>, vector<1x2x128xf32>
      %15 = vector.shape_cast %14 : vector<1x2x128xf32> to vector<2x128xf32>
      %16 = vector.shape_cast %13 : vector<2x128xf32> to vector<1x2x128xf32>
      tpu.vector_store %arg4[%c0_8, %c0_9, %c0_10], %16 {strides = array<i32>} : memref<1x2x128xf32, #tpu.memory_space<vmem>>, vector<1x2x128xf32>,
    } else {
    }
    return
  }
  func.func @transform_0(%arg0: i32, %arg1: i32) -> (i32, i32) {
    %c2_i32 = arith.constant 2 : i32
    %0 = arith.muli %arg0, %c2_i32 : i32
    %1 = arith.addi %0, %arg1 : i32
    %c2_i32_0 = arith.constant 2 : i32
    %2 = arith.minsi %1, %c2_i32_0 : i32
    %c0_i32 = arith.constant 0 : i32
    %c0_i32_1 = arith.constant 0 : i32
    return %c0_i32, %2 : i32, i32
  }
  func.func @transform_1(%arg0: i32, %arg1: i32) -> (i32, i32) {
    %c2_i32 = arith.constant 2 : i32
    %0 = arith.muli %arg0, %c2_i32 : i32
    %1 = arith.addi %0, %arg1 : i32
    %c2_i32_0 = arith.constant 2 : i32
    %2 = arith.minsi %1, %c2_i32_0 : i32
    %c0_i32 = arith.constant 0 : i32
    %c0_i32_1 = arith.constant 0 : i32
    return %2, %c0_i32 : i32, i32
  }
  func.func @transform_2(%arg0: i32, %arg1: i32) -> (i32, i32, i32) {
    %c0_i32 = arith.constant 0 : i32
    %c0_i32_0 = arith.constant 0 : i32
    %c0_i32_1 = arith.constant 0 : i32
    return %arg0, %c0_i32, %c0_i32_0 : i32, i32, i32
  }
}

module attributes {stable_mosaic.version = 11 : i64} {
  func.func @_fc_head_kernel(%arg0: i32, %arg1: memref<2x2x128xf32, #tpu.memory_space<vmem>>, %arg2: memref<1x128xf32, #tpu.memory_space<vmem>>, %arg3: memref<128x2xf32, #tpu.memory_space<vmem>>, %arg4: memref<1x2xf32, #tpu.memory_space<vmem>>, %arg5: memref<2x2xf32, #tpu.memory_space<vmem>>) attributes {dimension_semantics = [#tpu.dimension_semantics<arbitrary>], iteration_bounds = array<i64: 1>, scalar_prefetch = 0 : i64, scratch_operands = 0 : i64, tpu.core_type = #tpu.core_type<tc>, window_params = [{pipeline_mode = #tpu.pipeline_mode<synchronous>, transform_indices = @transform_0, window_bounds = array<i64: 2, 2, 128>}, {pipeline_mode = #tpu.pipeline_mode<synchronous>, transform_indices = @transform_1, window_bounds = array<i64: 1, 128>}, {pipeline_mode = #tpu.pipeline_mode<synchronous>, transform_indices = @transform_2, window_bounds = array<i64: 128, 2>}, {pipeline_mode = #tpu.pipeline_mode<synchronous>, transform_indices = @transform_3, window_bounds = array<i64: 1, 2>}, {pipeline_mode = #tpu.pipeline_mode<synchronous>, transform_indices = @transform_4, window_bounds = array<i64: 2, 2>}]} {
    %c0 = arith.constant 0 : index
    %c0_0 = arith.constant 0 : index
    %c0_1 = arith.constant 0 : index
    %0 = vector.load %arg1[%c0, %c0_0, %c0_1] : memref<2x2x128xf32, #tpu.memory_space<vmem>>, vector<1x2x128xf32>
    %1 = vector.shape_cast %0 : vector<1x2x128xf32> to vector<2x128xf32>
    %c1 = arith.constant 1 : index
    %c0_2 = arith.constant 0 : index
    %c0_3 = arith.constant 0 : index
    %2 = vector.load %arg1[%c1, %c0_2, %c0_3] : memref<2x2x128xf32, #tpu.memory_space<vmem>>, vector<1x2x128xf32>
    %3 = vector.shape_cast %2 : vector<1x2x128xf32> to vector<2x128xf32>
    %4 = arith.addf %1, %3 : vector<2x128xf32>
    %c0_4 = arith.constant 0 : index
    %c0_5 = arith.constant 0 : index
    %5 = vector.load %arg2[%c0_4, %c0_5] : memref<1x128xf32, #tpu.memory_space<vmem>>, vector<1x128xf32>
    %6 = vector.broadcast %5 : vector<1x128xf32> to vector<2x128xf32>
    %7 = arith.addf %4, %6 : vector<2x128xf32>
    %cst = arith.constant 0.000000e+00 : f32
    %8 = vector.broadcast %cst : f32 to vector<2x128xf32>
    %9 = arith.maximumf %7, %8 : vector<2x128xf32>
    %c0_6 = arith.constant 0 : index
    %c0_7 = arith.constant 0 : index
    %10 = vector.load %arg3[%c0_6, %c0_7] : memref<128x2xf32, #tpu.memory_space<vmem>>, vector<128x2xf32>
    %cst_8 = arith.constant dense<0.000000e+00> : vector<2x2xf32>
    %11 = tpu.matmul %9, %10, %cst_8 {dimension_numbers = #tpu.dot_dimension_numbers<[1], [0], [0], [1], [0, 0, 1, 1], [], []>} : vector<2x128xf32>, vector<128x2xf32>, vector<2x2xf32> -> vector<2x2xf32>
    %c0_9 = arith.constant 0 : index
    %c0_10 = arith.constant 0 : index
    %12 = vector.load %arg4[%c0_9, %c0_10] : memref<1x2xf32, #tpu.memory_space<vmem>>, vector<1x2xf32>
    %13 = vector.broadcast %12 : vector<1x2xf32> to vector<2x2xf32>
    %14 = arith.addf %11, %13 : vector<2x2xf32>
    %c0_11 = arith.constant 0 : index
    %c0_12 = arith.constant 0 : index
    %15 = vector.load %arg5[%c0_11, %c0_12] : memref<2x2xf32, #tpu.memory_space<vmem>>, vector<2x2xf32>
    tpu.vector_store %arg5[%c0_11, %c0_12], %14 {strides = array<i32>} : memref<2x2xf32, #tpu.memory_space<vmem>>, vector<2x2xf32>,
    return
  }
  func.func @transform_0(%arg0: i32) -> (i32, i32, i32) {
    %c0_i32 = arith.constant 0 : i32
    %c0_i32_0 = arith.constant 0 : i32
    %c0_i32_1 = arith.constant 0 : i32
    %c0_i32_2 = arith.constant 0 : i32
    return %c0_i32, %c0_i32_0, %c0_i32_1 : i32, i32, i32
  }
  func.func @transform_1(%arg0: i32) -> (i32, i32) {
    %c0_i32 = arith.constant 0 : i32
    %c0_i32_0 = arith.constant 0 : i32
    %c0_i32_1 = arith.constant 0 : i32
    return %c0_i32, %c0_i32_0 : i32, i32
  }
  func.func @transform_2(%arg0: i32) -> (i32, i32) {
    %c0_i32 = arith.constant 0 : i32
    %c0_i32_0 = arith.constant 0 : i32
    %c0_i32_1 = arith.constant 0 : i32
    return %c0_i32, %c0_i32_0 : i32, i32
  }
  func.func @transform_3(%arg0: i32) -> (i32, i32) {
    %c0_i32 = arith.constant 0 : i32
    %c0_i32_0 = arith.constant 0 : i32
    %c0_i32_1 = arith.constant 0 : i32
    return %c0_i32, %c0_i32_0 : i32, i32
  }
  func.func @transform_4(%arg0: i32) -> (i32, i32) {
    %c0_i32 = arith.constant 0 : i32
    %c0_i32_0 = arith.constant 0 : i32
    %c0_i32_1 = arith.constant 0 : i32
    return %c0_i32, %c0_i32_0 : i32, i32
  }
}

</mosaic_0001>

<bundles_post_ra>
// kernel: lenet_forward.5
= control target key start
LH: loop header
LB: loop body
LE: loop exit
PB: predicated region body
PF: predicated region fallthrough
CT: control target
= control target key end

     0   :  { %9 = vsyncpa [#allocation3], 0  ;;  %s1144_s15 = smov 0   ;;  %s1146_s16 = smov 0   ;;  %s1327_s0 = inlined_call_operand.vmem [shape: f32[2,64,32], index: 0, kind: input, shape index: {}]   ;;  %s1328_s1 = inlined_call_operand.vmem [shape: f32[2,64,32], index: 1, kind: input, shape index: {}]   ;;  %s1329_s2 = inlined_call_operand.hbm [shape: f32[5,8,5], index: 2, kind: input, shape index: {}]   ;;  %s1330_s3 = inlined_call_operand.vmem [shape: f32[8,1], index: 3, kind: input, shape index: {}]   ;;  %s1331_s4 = inlined_call_operand.vmem [shape: f32[2,240,30], index: 4, kind: output, shape index: {}]  }
   0x1   :  { %s1148_s17 = smov 0   ;;  %s1150_s18 = smov 0  }
   0x2   :  { %s1152_s19 = smov 0  }
   0x3 LB: > { %s902_s20 = sadd.s32 4294967295, %s1107_s19   ;;  %s24_s21 = sadd.s32 1, %s1099_s17  ;;  %s1107_s19 = sphi %s1152_s19, %s15_s19   ;;  %s1103_s18 = sphi %s1150_s18, %s1337_s18   ;;  %s1099_s17 = sphi %s1148_s17, %s1336_s17   ;;  %s1095_s16 = sphi %s1146_s16, %s1335_s16   ;;  %s1091_s15 = sphi %s1144_s15, %s1334_s15  }
   0x4   : > { %p25_p0 = scmp.ge.s32.totalorder %s24_s21, 5  ;;  %s27_s22 = sadd.s32 1, %s1103_s18 }
   0x5   : > { %p904_p1 = scmp.ge.s32.totalorder %s1107_s19, 1  ;;  %p154_p2 = scmp.lt.s32.totalorder %s1107_s19, 11 }
   0x6   : > { %s1339_s21 = smov (%p25_p0, %s24_s21), 0  ;;  %s1341_s22 = smov (!%p25_p0, %s27_s22), %s1103_s18 }
   0x7   : > { %p1177_p3 = pnand %p904_p1, %p154_p2  ;;  %p29_p4 = scmp.ge.s32.totalorder %s1341_s22, 2 }
   0x8   : > { %p1181_p5 = scmp.eq.s32.totalorder %s902_s20, 0  ;;  %s165_s27 = sshll.u32 %s1329_s2, 4  ;;  %s166_s27 = int_to_ptr.hbm [resolvable:$true] %s165_s27 }
   0x9   : > { %p969_p6 = pneg %p1177_p3  ;;  %s1343_s22 = smov (%p29_p4, %s1341_s22), 0 }
   0xa   : > { %s1113_s28 = smov [#allocation2]   ;;  %s1114_s30 = smov 128  }
   0xb   : > { %s167_s29 = sshll.u32 %s1113_s28, 4  ;;  %p970_p7 = pnand %p1181_p5, %p969_p6  ;;  %s168_s29 = int_to_ptr.vmem [resolvable:$true] %s167_s29 }
   0xc   : > { %s1115_s5 = smov 8   ;;  %202 = sbr.rel (%p1177_p3) target bundleno = 323 (0x143), region = 36 }
   0xd   : > { %972 = dma.hbm_to_vmem [thread:$0]  (!%p970_p7), %s166_s27, 640, %s168_s29, [#allocation3], %s1114_s30, %s1114_s30, %s1115_s5  }
  0x11   : > { %1086 = dma.done.wait (%p1181_p5), [#allocation3], 640  }
  0x12   : > { %1088 = vsyncadd (%p1181_p5), [#allocation3], 4294966656  ;;  %p238_p8 = scmp.lt.s32.totalorder %s1095_s16, 1  ;;  %s1202_s6 = smul.u32 6, %s1091_s15  ;;  %v1217_v0 = vld [vmem:[#allocation2] sm:$0xff]  ;;  %v1219_v1 = vld [vmem:[#allocation2 + $0x8] sm:$0xff] }
  0x13   : > { %v1221_v2 = vld [vmem:[#allocation2 + $0x10] sm:$0xff]  ;;  %v1223_v3 = vld [vmem:[#allocation2 + $0x18] sm:$0xff]  ;;  %v1225_v4 = vld [vmem:[#allocation2 + $0x20] sm:$0xff]  ;;  %s1237_s28 = smov 0  }
  0x14   : > { %s1345_s16 = smov (!%p238_p8, %s1095_s16), 1  ;;  %p251_p9 = scmp.lt.s32.totalorder %s1202_s6, 29  ;;  %v1230_v5 = vld [vmem:[%s1330_s3] sm:$0xff] }
  0x15   : > { %s962_s7 = sshll.u32 %s1345_s16, 6  ;;  %s964_s8 = smul.u32 30, %s1345_s16 }
  0x16   : > { %s1209_s11 = scalar_lea.vmem %s1327_s0, %s962_s7  ;;  %s1214_s14 = scalar_lea.vmem %s1328_s1, %s962_s7 }
  0x17   : > { %s252_s20 = scalar_select %p251_p9, %s1202_s6, 29 }
  0x19   : > { %s254_s23 = sadd.s32 %s964_s8, %s252_s20 }
  0x1a   : > { %s913_s24 = sshll.u32 %s254_s23, 3 }
  0x1b   : > { %s1235_s27 = scalar_lea.vmem %s1331_s4, %s913_s24 }
  0x1c LB: >> { %s271_s29 = sadd.s32 %s1111_s28, %s1202_s6  ;;  %vm281_vm0 = vcmask 1044480   ;;  %s1116_s8 = smov 127   ;;  %vm277_vm1 = vcmask 39936   ;;  %v1118_v14 = vmov 0   ;;  %vm767_vm2 = vcmask 244736   ;;  %s1111_s28 = sphi %s1237_s28, %s269_s28  }
  0x1d   : >> { %s914_s30 = sshll.u32 %s271_s29, 1  ;;  %s1117_s9 = smov 126   ;;  %1029 = vset.pattern.permute.xlu2 %v1118_v14  ;;  %1030 = vset.pattern.permute.xlu0 %v1118_v14 }
  0x1e   : >> { %s273_s5 = scalar_lea.vmem %s1209_s11, %s914_s30  ;;  %s275_s7 = scalar_lea.vmem %s1214_s14, %s914_s30 }
  0x1f   : >> { %v274_v6 = vld [vmem:[%s273_s5] sm:$0x1f]  ;;  %s959_s10 = sshll.u32 %s1111_s28, 3  ;;  %s269_s28 = sadd.s32 1, %s1111_s28  }
  0x20   : >> { %331 = vrot.lane.b32.xlu0 %v274_v6, %s1116_s8  ;;  %448 = vrot.lane.b32.xlu1 %v274_v6, %s1117_s9  ;;  %v276_v7 = vld [vmem:[%s275_s7] sm:$0x1f]  ;;  %s766_s12 = scalar_lea.vmem %s1235_s27, %s959_s10  ;;  %p266_p10 = scmp.ge.s32.totalorder %s269_s28, 6  }
  0x21   : >> { %v936_v8 = vld [vmem:[%s273_s5 + $0x1] sm:$0x1f]  ;;  %915 = vmatpush.msk.msra.mxu0 %vm281_vm0, %v276_v7  ;;  %921 = vmatpush.msk.msra.mxu3 %vm281_vm0, %v276_v7 }
  0x22   : >> { %574 = vrot.lane.b32.xlu2 %v936_v8, %s1116_s8  ;;  %917 = vmatpush.msk.msra.mxu1 %vm281_vm0, %v274_v6  ;;  %v938_v9 = vld [vmem:[%s275_s7 + $0x1] sm:$0x1f] }
  0x23   : >> { %922 = vmatmul.msk.f32.vlgmr.msra.gmra.mxu3 %vm277_vm1, %v1217_v0  ;;  %916 = vmatmul.msk.f32.vlgmr.msra.gmra.mxu0 %vm277_vm1, %v1219_v1 }
  0x24   : >> { %918 = vmatmul.msk.f32.vlgmr.msra.gmra.mxu1 %vm277_vm1, %v1217_v0 }
  0x28   : >> { %399 = vrot.lane.b32.xlu0 %v276_v7, %s1116_s8  ;;  %497 = vrot.lane.b32.xlu1 %v276_v7, %s1117_s9 }
  0x2a   : >> { %639 = vrot.lane.b32.xlu2 %v938_v9, %s1116_s8 }
  0x30   : >> { %731 = vrot.lane.b32.xlu1 %v938_v9, %s1117_s9  ;;  %685 = vrot.lane.b32.xlu0 %v936_v8, %s1117_s9 }
  0x32   : >> { %760 = vperm.xlu2 %1029, %v1230_v5  }
  0x7c   : >> { %v575_v10 = vpop.permute.xlu2 %574 }
  0x84   : >> { %v640_v13 = vpop.permute.xlu2 %639 }
  0x8c   : >> { %v761_v57 = vpop.permute.xlu2 %760 }
  0x92   : >> { %v332_v11 = vpop.permute.xlu0 %331  ;;  %v449_v12 = vpop.permute.xlu1 %448 }
  0x93   : >> { %919 = vmatpush.msk.msra.mxu2 %vm281_vm0, %v332_v11  ;;  %923 = vmatpush.msk.msrb.mxu0 %vm281_vm0, %v332_v11 }
  0x94   : >> { %920 = vmatmul.msk.f32.vlgmr.msra.gmra.mxu2 %vm277_vm1, %v1219_v1  ;;  %929 = vmatpush.msk.msrb.mxu3 %vm281_vm0, %v449_v12 }
  0x95   : >> { %931 = vmatpush.msk.msra.mxu0 %vm281_vm0, %v449_v12  ;;  %930 = vmatmul.msk.f32.vlgmr.msrb.gmra.mxu3 %vm277_vm1, %v1223_v3 }
  0x96   : >> { %924 = vmatmul.msk.f32.vlgmr.msrb.gmra.mxu0 %vm277_vm1, %v1221_v2  ;;  %941 = vmatpush.msk.msra.mxu3 %vm281_vm0, %v936_v8 }
  0x97   : >> { %943 = vmatpush.msk.msrb.mxu0 %vm281_vm0, %v575_v10 }
  0x98   : >> { %949 = vmatpush.msk.msrb.mxu3 %vm281_vm0, %v640_v13 }
  0x9a   : >> { %v400_v15 = vpop.permute.xlu0 %399  ;;  %v498_v16 = vpop.permute.xlu1 %497 }
  0x9b   : >> { %925 = vmatpush.msk.msrb.mxu1 %vm281_vm0, %v400_v15  ;;  %927 = vmatpush.msk.msrb.mxu2 %vm281_vm0, %v400_v15 }
  0x9c   : >> { %928 = vmatmul.msk.f32.vlgmr.msrb.gmra.mxu2 %vm277_vm1, %v1223_v3  ;;  %926 = vmatmul.msk.f32.vlgmr.msrb.gmra.mxu1 %vm277_vm1, %v1221_v2 }
  0x9d   : >> { %939 = vmatpush.msk.msra.mxu2 %vm281_vm0, %v938_v9  ;;  %933 = vmatpush.msk.msra.mxu1 %vm281_vm0, %v498_v16 }
  0x9e   : >> { %942 = vmatmul.msk.f32.vlgmr.msra.gmra.mxu3 %vm277_vm1, %v1217_v0  ;;  %932 = vmatmul.msk.f32.vlgmr.msra.gmra.mxu0 %vm277_vm1, %v1225_v4 }
  0x9f   : >> { %947 = vmatpush.msk.msrb.mxu2 %vm281_vm0, %v575_v10  ;;  %945 = vmatpush.msk.msrb.mxu1 %vm281_vm0, %v938_v9 }
  0xa0   : >> { %951 = vmatpush.msk.msra.mxu0 %vm281_vm0, %v640_v13  ;;  %v302_v19 = vpop.f32.mrf.mxu0 }
  0xa1   : >> { %v328_v21 = vpop.f32.mrf.mxu1 }
  0xa2   : >> { %v732_v17 = vpop.permute.xlu1 %731  ;;  %v686_v18 = vpop.permute.xlu0 %685  ;;  %v329_v34 = vadd.f32 %v328_v21, %v302_v19 }
  0xa3   : >> { %957 = vmatpush.msk.msra.mxu3 %vm281_vm0, %v732_v17 }
  0xa4   : >> { %940 = vmatmul.msk.f32.vlgmr.msra.gmra.mxu2 %vm277_vm1, %v1219_v1  ;;  %934 = vmatmul.msk.f32.vlgmr.msra.gmra.mxu1 %vm277_vm1, %v1225_v4 }
  0xa5   : >> { %953 = vmatpush.msk.msra.mxu1 %vm281_vm0, %v686_v18  ;;  %955 = vmatpush.msk.msra.mxu2 %vm281_vm0, %v686_v18 }
  0xa6   : >> { %950 = vmatmul.msk.f32.vlgmr.msrb.gmra.mxu3 %vm277_vm1, %v1221_v2  ;;  %944 = vmatmul.msk.f32.vlgmr.msrb.gmra.mxu0 %vm277_vm1, %v1219_v1  ;;  %v372_v20 = vpop.f32.mrf.mxu3 }
  0xac   : >> { %948 = vmatmul.msk.f32.vlgmr.msrb.gmra.mxu2 %vm277_vm1, %v1221_v2  ;;  %946 = vmatmul.msk.f32.vlgmr.msrb.gmra.mxu1 %vm277_vm1, %v1217_v0 }
  0xae   : >> { %958 = vmatmul.msk.f32.vlgmr.msra.gmra.mxu3 %vm277_vm1, %v1225_v4  ;;  %952 = vmatmul.msk.f32.vlgmr.msra.gmra.mxu0 %vm277_vm1, %v1223_v3 }
  0xb4   : >> { %956 = vmatmul.msk.f32.vlgmr.msra.gmra.mxu2 %vm277_vm1, %v1225_v4  ;;  %954 = vmatmul.msk.f32.vlgmr.msra.gmra.mxu1 %vm277_vm1, %v1223_v3 }
 0x113   : >> { %v395_v23 = vpop.f32.mrf.mxu0 }
 0x114   : >> { %v398_v38 = vadd.f32 %v395_v23, %v329_v34 }
 0x117   : >> { %v352_v22 = vpop.f32.mrf.mxu2 }
 0x118   : >> { %v469_v24 = vpop.f32.mrf.mxu3  ;;  %v373_v35 = vadd.f32 %v372_v20, %v352_v22 }
 0x119   : >> { %v420_v25 = vpop.f32.mrf.mxu1 }
 0x11a   : >> { %v423_v39 = vadd.f32 %v420_v25, %v373_v35 }
 0x11b   : >> { %v493_v27 = vpop.f32.mrf.mxu0 }
 0x11c   : >> { %v472_v46 = vadd.f32 %v469_v24, %v423_v39 }
 0x11f   : >> { %v444_v26 = vpop.f32.mrf.mxu2 }
 0x120   : >> { %v447_v43 = vadd.f32 %v444_v26, %v398_v38 }
 0x121   : >> { %v518_v28 = vpop.f32.mrf.mxu1  ;;  %v571_v29 = vpop.f32.mrf.mxu3 }
 0x122   : >> { %v496_v49 = vadd.f32 %v493_v27, %v447_v43  ;;  %v521_v50 = vadd.f32 %v518_v28, %v472_v46 }
 0x123   : >> { %v595_v31 = vpop.f32.mrf.mxu0 }
 0x124   : >> { %v522_v55 = vmax.f32 %v496_v49, %v521_v50 }
 0x127   : >> { %v548_v30 = vpop.f32.mrf.mxu2 }
 0x128   : >> { %v572_v40 = vadd.f32 %v571_v29, %v548_v30 }
 0x129   : >> { %v615_v32 = vpop.f32.mrf.mxu1  ;;  %v660_v33 = vpop.f32.mrf.mxu3 }
 0x12a   : >> { %v616_v36 = vadd.f32 %v615_v32, %v595_v31 }
 0x12b   : >> { %v681_v45 = vpop.f32.mrf.mxu0 }
 0x12c   : >> { %v663_v41 = vadd.f32 %v660_v33, %v616_v36 }
 0x12f   : >> { %v635_v37 = vpop.f32.mrf.mxu2 }
 0x130   : >> { %v638_v44 = vadd.f32 %v635_v37, %v572_v40 }
 0x131   : >> { %v706_v42 = vpop.f32.mrf.mxu1  ;;  %v752_v48 = vpop.f32.mrf.mxu3 }
 0x132   : >> { %v709_v47 = vadd.f32 %v706_v42, %v663_v41  ;;  %v684_v51 = vadd.f32 %v681_v45, %v638_v44 }
 0x134   : >> { %v755_v54 = vadd.f32 %v752_v48, %v709_v47 }
 0x137   : >> { %v727_v52 = vpop.f32.mrf.mxu2 }
 0x138   : >> { %v730_v53 = vadd.f32 %v727_v52, %v684_v51 }
 0x13a   : >> { %v756_v56 = vmax.f32 %v730_v53, %v755_v54 }
 0x13c   : >> { %v757_v58 = vmax.f32 %v522_v55, %v756_v56 }
 0x13e   : >> { %v763_v59 = vadd.f32 %v761_v57, %v757_v58  ;;  %268 = sbr.rel (!%p266_p10) target bundleno = 28 (0x1c), region = 86 }
 0x140   : >> { %v764_v60 = vmax.f32 %v763_v59, 0.0 }
 0x142   : >> { %768 = vst.msk [vmem:[%s766_s12] sm:$0xff] %vm767_vm2, %v764_v60 }
 0x143 PF: > { %s15_s19 = sadd.s32 1, %s1107_s19   ;;  %s1334_s15 = smov %s1099_s17 }
 0x144   : > { %p12_p11 = scmp.ge.s32.totalorder %s15_s19, 12   ;;  %s1335_s16 = smov %s1103_s18 }
 0x145   : > { %s1336_s17 = smov %s1339_s21  ;;  %s1337_s18 = smov %s1343_s22 }
 0x146   :  { %14 = sbr.rel (!%p12_p11) target bundleno = 3 (0x3), region = 97 }
 0x14b   :  { %799 = vsyncpa [#allocation3], 1 }
 0x14c   :  { %801 = vsyncpa [#allocation3 + $0x1], 1 }

// kernel: lenet_forward.7
= control target key start
LH: loop header
LB: loop body
LE: loop exit
PB: predicated region body
PF: predicated region fallthrough
CT: control target
= control target key end

     0   :  { %s1652_s12 = smov 0   ;;  %s1654_s13 = smov 0   ;;  %s2497_s0 = inlined_call_operand.vmem [shape: f32[2,208,13], index: 0, kind: input, shape index: {}]   ;;  %s2498_s1 = inlined_call_operand.vmem [shape: f32[5,128,80], index: 1, kind: input, shape index: {}]   ;;  %s2499_s2 = inlined_call_operand.vmem [shape: f32[128,1], index: 2, kind: input, shape index: {}]   ;;  %s2500_s3 = inlined_call_operand.vmem [shape: bf16[2,1152,9], index: 3, kind: output, shape index: {}]  }
   0x1   :  { %s1656_s14 = smov 0   ;;  %s1658_s15 = smov 0  }
   0x2   :  { %s1660_s16 = smov 0  }
   0x3 LB: > { %s22_s17 = sadd.s32 1, %s1613_s14  ;;  %s25_s18 = sadd.s32 1, %s1617_s15  ;;  %s1621_s16 = sphi %s1660_s16, %s13_s16   ;;  %s1617_s15 = sphi %s1658_s15, %s2638_s15   ;;  %s1613_s14 = sphi %s1656_s14, %s2637_s14   ;;  %s1609_s13 = sphi %s1654_s13, %s2636_s13   ;;  %s1605_s12 = sphi %s1652_s12, %s2635_s12  }
   0x4   : > { %p23_p0 = scmp.ge.s32.totalorder %s22_s17, 3  ;;  %p1303_p1 = scmp.ge.s32.totalorder %s1621_s16, 1 }
   0x5   : > { %p151_p2 = scmp.lt.s32.totalorder %s1621_s16, 7 }
   0x6   : > { %s2640_s17 = smov (%p23_p0, %s22_s17), 0  ;;  %s2642_s18 = smov (!%p23_p0, %s25_s18), %s1617_s15 }
   0x7   : > { %p152_p3 = pnand %p1303_p1, %p151_p2  ;;  %p27_p4 = scmp.ge.s32.totalorder %s2642_s18, 2 }
   0x8   : > { %p179_p5 = scmp.lt.s32.totalorder (!%p152_p3), %s1609_s13, 1  ;;  %s184_s19 = smul.u32 (!%p152_p3), 48, %s1605_s12 }
   0x9   : > { %s2644_s18 = smov (%p27_p4, %s2642_s18), 0  ;;  %155 = sbr.rel (%p152_p3) target bundleno = 528 (0x210), region = 32 }
   0xa   : > { %p187_p6 = scmp.lt.s32.totalorder (!%p152_p3), %s184_s19, 143  ;;  %s2175_s4 = smov (!%p152_p3), 0  }
   0xe   : > { %v1688_v0 = vld [vmem:[%s2498_s1] sm:$0xff]  ;;  %v1693_v1 = vld [vmem:[%s2498_s1 + $0x8] sm:$0xff]  ;;  %v1698_v2 = vld [vmem:[%s2498_s1 + $0x10] sm:$0xff]  ;;  %s2646_s13 = smov (!%p179_p5, %s1609_s13), 1  ;;  %s2648_s19 = smov (!%p187_p6, %s184_s19), 143 }
   0xf   : > { %2501 = vst [vmem:[#allocation2_spill] sm:$0xff] %v1688_v0  ;;  %v1703_v3 = vld [vmem:[%s2498_s1 + $0x18] sm:$0xff]  ;;  %v1708_v4 = vld [vmem:[%s2498_s1 + $0x20] sm:$0xff]  ;;  %v1713_v5 = vld [vmem:[%s2498_s1 + $0x28] sm:$0xff]  ;;  %s1421_s25 = smul.u32 208, %s2646_s13 }
  0x10   : > { %2502 = vst [vmem:[#allocation3_spill] sm:$0xff] %v1693_v1  ;;  %v1718_v6 = vld [vmem:[%s2498_s1 + $0x30] sm:$0xff]  ;;  %v1723_v7 = vld [vmem:[%s2498_s1 + $0x38] sm:$0xff]  ;;  %v1728_v8 = vld [vmem:[%s2498_s1 + $0x40] sm:$0xff]  ;;  %s1422_s22 = smul.u32 144, %s2646_s13 }
  0x11   : > { %2503 = vst [vmem:[#allocation4_spill] sm:$0xff] %v1698_v2  ;;  %v1733_v9 = vld [vmem:[%s2498_s1 + $0x48] sm:$0xff]  ;;  %v1738_v10 = vld [vmem:[%s2498_s1 + $0x50] sm:$0xff]  ;;  %v1743_v11 = vld [vmem:[%s2498_s1 + $0x58] sm:$0xff]  ;;  %s1778_s21 = scalar_lea.vmem %s2497_s0, %s1421_s25 }
  0x12   : > { %2504 = vst [vmem:[#allocation5_spill] sm:$0xff] %v1703_v3  ;;  %v1748_v12 = vld [vmem:[%s2498_s1 + $0x60] sm:$0xff]  ;;  %v1753_v13 = vld [vmem:[%s2498_s1 + $0x68] sm:$0xff]  ;;  %v1758_v14 = vld [vmem:[%s2498_s1 + $0x70] sm:$0xff]  ;;  %s190_s7 = sadd.s32 %s1422_s22, %s2648_s19 }
  0x13   : > { %2505 = vst [vmem:[#allocation6_spill] sm:$0xff] %v1708_v4  ;;  %v1763_v15 = vld [vmem:[%s2498_s1 + $0x78] sm:$0xff]  ;;  %v1768_v16 = vld [vmem:[%s2498_s1 + $0x80] sm:$0xff]  ;;  %v1773_v17 = vld [vmem:[%s2498_s1 + $0x88] sm:$0xff]  ;;  %s1305_s24 = sshll.u32 %s190_s7, 2 }
  0x14   : > { %2506 = vst [vmem:[#allocation7_spill] sm:$0xff] %v1713_v5  ;;  %v1783_v18 = vld [vmem:[%s2498_s1 + $0x90] sm:$0xff]  ;;  %v1788_v19 = vld [vmem:[%s2498_s1 + $0x98] sm:$0xff]  ;;  %v1793_v20 = vld [vmem:[%s2498_s1 + $0xa0] sm:$0xff]  ;;  %s1843_s13 = scalar_lea.vmem %s2500_s3, %s1305_s24 }
  0x15   : > { %2507 = vst [vmem:[#allocation8_spill] sm:$0xff] %v1718_v6  ;;  %v1798_v21 = vld [vmem:[%s2498_s1 + $0xa8] sm:$0xff]  ;;  %v1803_v22 = vld [vmem:[%s2498_s1 + $0xb0] sm:$0xff]  ;;  %v1808_v23 = vld [vmem:[%s2498_s1 + $0xb8] sm:$0xff] }
  0x16   : > { %2508 = vst [vmem:[#allocation9_spill] sm:$0xff] %v1723_v7  ;;  %v1813_v24 = vld [vmem:[%s2498_s1 + $0xc0] sm:$0xff]  ;;  %v1818_v25 = vld [vmem:[%s2498_s1 + $0xc8] sm:$0xff]  ;;  %v1823_v26 = vld [vmem:[%s2498_s1 + $0xd0] sm:$0xff] }
  0x17   : > { %2509 = vst [vmem:[#allocation10_spill] sm:$0xff] %v1728_v8  ;;  %v1828_v27 = vld [vmem:[%s2498_s1 + $0xd8] sm:$0xff]  ;;  %v1833_v28 = vld [vmem:[%s2498_s1 + $0xe0] sm:$0xff]  ;;  %v1838_v29 = vld [vmem:[%s2498_s1 + $0xe8] sm:$0xff] }
  0x18   : > { %2510 = vst [vmem:[#allocation11_spill] sm:$0xff] %v1733_v9  ;;  %v1848_v30 = vld [vmem:[%s2498_s1 + $0xf0] sm:$0xff]  ;;  %v1853_v31 = vld [vmem:[%s2498_s1 + $0xf8] sm:$0xff]  ;;  %v1858_v32 = vld [vmem:[%s2498_s1 + $0x100] sm:$0xff] }
  0x19   : > { %2511 = vst [vmem:[#allocation12_spill] sm:$0xff] %v1738_v10  ;;  %v1863_v33 = vld [vmem:[%s2498_s1 + $0x108] sm:$0xff]  ;;  %v1868_v34 = vld [vmem:[%s2498_s1 + $0x110] sm:$0xff]  ;;  %v1873_v35 = vld [vmem:[%s2498_s1 + $0x118] sm:$0xff] }
  0x1a   : > { %2512 = vst [vmem:[#allocation13_spill] sm:$0xff] %v1743_v11  ;;  %v1878_v36 = vld [vmem:[%s2498_s1 + $0x120] sm:$0xff]  ;;  %v1883_v37 = vld [vmem:[%s2498_s1 + $0x128] sm:$0xff]  ;;  %v1888_v38 = vld [vmem:[%s2498_s1 + $0x130] sm:$0xff] }
  0x1b   : > { %2513 = vst [vmem:[#allocation14_spill] sm:$0xff] %v1748_v12  ;;  %v1893_v39 = vld [vmem:[%s2498_s1 + $0x138] sm:$0xff]  ;;  %v1898_v40 = vld [vmem:[%s2498_s1 + $0x140] sm:$0xff]  ;;  %v1903_v41 = vld [vmem:[%s2498_s1 + $0x148] sm:$0xff] }
  0x1c   : > { %2514 = vst [vmem:[#allocation15_spill] sm:$0xff] %v1753_v13  ;;  %v1908_v42 = vld [vmem:[%s2498_s1 + $0x150] sm:$0xff]  ;;  %v1913_v43 = vld [vmem:[%s2498_s1 + $0x158] sm:$0xff]  ;;  %v1918_v44 = vld [vmem:[%s2498_s1 + $0x160] sm:$0xff] }
  0x1d   : > { %2515 = vst [vmem:[#allocation16_spill] sm:$0xff] %v1758_v14  ;;  %v1923_v45 = vld [vmem:[%s2498_s1 + $0x168] sm:$0xff]  ;;  %v1928_v46 = vld [vmem:[%s2498_s1 + $0x170] sm:$0xff]  ;;  %v1933_v47 = vld [vmem:[%s2498_s1 + $0x178] sm:$0xff] }
  0x1e   : > { %2516 = vst [vmem:[#allocation17_spill] sm:$0xff] %v1763_v15  ;;  %v1938_v48 = vld [vmem:[%s2498_s1 + $0x180] sm:$0xff]  ;;  %v1943_v49 = vld [vmem:[%s2498_s1 + $0x188] sm:$0xff]  ;;  %v1948_v50 = vld [vmem:[%s2498_s1 + $0x190] sm:$0xff] }
  0x1f   : > { %2517 = vst [vmem:[#allocation18_spill] sm:$0xff] %v1793_v20  ;;  %v1953_v51 = vld [vmem:[%s2498_s1 + $0x198] sm:$0xff]  ;;  %v1958_v52 = vld [vmem:[%s2498_s1 + $0x1a0] sm:$0xff]  ;;  %v1963_v53 = vld [vmem:[%s2498_s1 + $0x1a8] sm:$0xff] }
  0x20   : > { %2518 = vst [vmem:[#allocation19_spill] sm:$0xff] %v1813_v24  ;;  %v1968_v54 = vld [vmem:[%s2498_s1 + $0x1b0] sm:$0xff]  ;;  %v1973_v55 = vld [vmem:[%s2498_s1 + $0x1b8] sm:$0xff]  ;;  %v1978_v56 = vld [vmem:[%s2498_s1 + $0x1c0] sm:$0xff] }
  0x21   : > { %2519 = vst [vmem:[#allocation20_spill] sm:$0xff] %v1873_v35  ;;  %v1983_v57 = vld [vmem:[%s2498_s1 + $0x1c8] sm:$0xff]  ;;  %v1988_v58 = vld [vmem:[%s2498_s1 + $0x1d0] sm:$0xff]  ;;  %v1993_v59 = vld [vmem:[%s2498_s1 + $0x1d8] sm:$0xff] }
  0x22   : > { %2520 = vst [vmem:[#allocation21_spill] sm:$0xff] %v1878_v36  ;;  %v1998_v60 = vld [vmem:[%s2498_s1 + $0x1e0] sm:$0xff]  ;;  %v2003_v61 = vld [vmem:[%s2498_s1 + $0x1e8] sm:$0xff]  ;;  %v2008_v62 = vld [vmem:[%s2498_s1 + $0x1f0] sm:$0xff] }
  0x23   : > { %2521 = vst [vmem:[#allocation22_spill] sm:$0xff] %v1883_v37  ;;  %v2013_v63 = vld [vmem:[%s2498_s1 + $0x1f8] sm:$0xff]  ;;  %v2023_v15 = vld [vmem:[%s2498_s1 + $0x208] sm:$0xff]  ;;  %v2058_v13 = vld [vmem:[%s2498_s1 + $0x240] sm:$0xff] }
  0x24   : > { %2522 = vst [vmem:[#allocation23_spill] sm:$0xff] %v1888_v38  ;;  %v2043_v14 = vld [vmem:[%s2498_s1 + $0x228] sm:$0xff]  ;;  %v2073_v12 = vld [vmem:[%s2498_s1 + $0x258] sm:$0xff]  ;;  %v2088_v11 = vld [vmem:[%s2498_s1 + $0x270] sm:$0xff] }
  0x25   : > { %2523 = vst [vmem:[#allocation24_spill] sm:$0xff] %v1893_v39  ;;  %v2138_v10 = vld [vmem:[%s2499_s2 + $0x40] sm:$0xff] }
  0x26   : > { %2524 = vst [vmem:[#allocation25_spill] sm:$0xff] %v1898_v40  ;;  %v2158_v9 = vld [vmem:[%s2499_s2 + $0x60] sm:$0xff]  ;;  %v2173_v40 = vld [vmem:[%s2499_s2 + $0x78] sm:$0xff] }
  0x27   : > { %2525 = vst [vmem:[#allocation26_spill] sm:$0xff] %v1903_v41  ;;  %v2153_v41 = vld [vmem:[%s2499_s2 + $0x58] sm:$0xff] }
  0x28   : > { %2526 = vst [vmem:[#allocation27_spill] sm:$0xff] %v1908_v42  ;;  %v2133_v42 = vld [vmem:[%s2499_s2 + $0x38] sm:$0xff] }
  0x29   : > { %2527 = vst [vmem:[#allocation28_spill] sm:$0xff] %v1913_v43  ;;  %v2083_v43 = vld [vmem:[%s2498_s1 + $0x268] sm:$0xff] }
  0x2a   : > { %2528 = vst [vmem:[#allocation29_spill] sm:$0xff] %v1918_v44  ;;  %v2068_v44 = vld [vmem:[%s2498_s1 + $0x250] sm:$0xff] }
  0x2b   : > { %2529 = vst [vmem:[#allocation30_spill] sm:$0xff] %v1923_v45  ;;  %v2053_v45 = vld [vmem:[%s2498_s1 + $0x238] sm:$0xff] }
  0x2c   : > { %2530 = vst [vmem:[#allocation31_spill] sm:$0xff] %v1928_v46  ;;  %v2028_v46 = vld [vmem:[%s2498_s1 + $0x210] sm:$0xff] }
  0x2d   : > { %2531 = vst [vmem:[#allocation32_spill] sm:$0xff] %v1933_v47  ;;  %v2018_v47 = vld [vmem:[%s2498_s1 + $0x200] sm:$0xff] }
  0x2e   : > { %2532 = vst [vmem:[#allocation33_spill] sm:$0xff] %v1953_v51 }
  0x2f   : > { %2533 = vst [vmem:[#allocation34_spill] sm:$0xff] %v1958_v52 }
  0x30   : > { %2534 = vst [vmem:[#allocation35_spill] sm:$0xff] %v1963_v53 }
  0x31   : > { %2535 = vst [vmem:[#allocation36_spill] sm:$0xff] %v1968_v54 }
  0x32   : > { %2536 = vst [vmem:[#allocation37_spill] sm:$0xff] %v1973_v55 }
  0x33   : > { %2537 = vst [vmem:[#allocation38_spill] sm:$0xff] %v1978_v56  ;;  %v2163_v56 = vld [vmem:[%s2499_s2 + $0x68] sm:$0xff] }
  0x34   : > { %2538 = vst [vmem:[#allocation39_spill] sm:$0xff] %v1983_v57  ;;  %v2143_v57 = vld [vmem:[%s2499_s2 + $0x48] sm:$0xff] }
  0x35   : > { %2539 = vst [vmem:[#allocation40_spill] sm:$0xff] %v1988_v58  ;;  %v2123_v58 = vld [vmem:[%s2499_s2 + $0x28] sm:$0xff] }
  0x36   : > { %2540 = vst [vmem:[#allocation41_spill] sm:$0xff] %v1993_v59  ;;  %v2078_v59 = vld [vmem:[%s2498_s1 + $0x260] sm:$0xff] }
  0x37   : > { %2541 = vst [vmem:[#allocation42_spill] sm:$0xff] %v1998_v60  ;;  %v2063_v60 = vld [vmem:[%s2498_s1 + $0x248] sm:$0xff] }
  0x38   : > { %2542 = vst [vmem:[#allocation43_spill] sm:$0xff] %v2003_v61  ;;  %v2048_v61 = vld [vmem:[%s2498_s1 + $0x230] sm:$0xff] }
  0x39   : > { %2543 = vst [vmem:[#allocation44_spill] sm:$0xff] %v2008_v62  ;;  %v2033_v62 = vld [vmem:[%s2498_s1 + $0x218] sm:$0xff] }
  0x3a   : > { %2544 = vst [vmem:[#allocation45_spill] sm:$0xff] %v2013_v63  ;;  %v2038_v63 = vld [vmem:[%s2498_s1 + $0x220] sm:$0xff] }
  0x3b   : > { %2545 = vst [vmem:[#allocation46_spill] sm:$0xff] %v2028_v46 }
  0x3c   : > { %2546 = vst [vmem:[#allocation47_spill] sm:$0xff] %v2033_v62 }
  0x3d   : > { %2547 = vst [vmem:[#allocation48_spill] sm:$0xff] %v2038_v63 }
  0x3e   : > { %2548 = vst [vmem:[#allocation49_spill] sm:$0xff] %v2043_v14 }
  0x3f   : > { %2549 = vst [vmem:[#allocation50_spill] sm:$0xff] %v2048_v61 }
  0x40   : > { %2550 = vst [vmem:[#allocation51_spill] sm:$0xff] %v2053_v45  ;;  %v2168_v45 = vld [vmem:[%s2499_s2 + $0x70] sm:$0xff] }
  0x41   : > { %2551 = vst [vmem:[#allocation52_spill] sm:$0xff] %v2058_v13  ;;  %v2148_v13 = vld [vmem:[%s2499_s2 + $0x50] sm:$0xff] }
  0x42   : > { %2552 = vst [vmem:[#allocation53_spill] sm:$0xff] %v2063_v60  ;;  %v2128_v60 = vld [vmem:[%s2499_s2 + $0x30] sm:$0xff] }
  0x43   : > { %2553 = vst [vmem:[#allocation54_spill] sm:$0xff] %v2068_v44  ;;  %v2093_v44 = vld [vmem:[%s2498_s1 + $0x278] sm:$0xff] }
  0x44   : > { %2554 = vst [vmem:[#allocation55_spill] sm:$0xff] %v2073_v12  ;;  %v2098_v12 = vld [vmem:[%s2499_s2] sm:$0xff] }
  0x45   : > { %2555 = vst [vmem:[#allocation56_spill] sm:$0xff] %v2078_v59  ;;  %v2103_v59 = vld [vmem:[%s2499_s2 + $0x8] sm:$0xff] }
  0x46   : > { %2556 = vst [vmem:[#allocation57_spill] sm:$0xff] %v2083_v43  ;;  %v2108_v43 = vld [vmem:[%s2499_s2 + $0x10] sm:$0xff] }
  0x47   : > { %2557 = vst [vmem:[#allocation58_spill] sm:$0xff] %v2088_v11  ;;  %v2113_v11 = vld [vmem:[%s2499_s2 + $0x18] sm:$0xff] }
  0x48   : > { %2558 = vst [vmem:[#allocation59_spill] sm:$0xff] %v2093_v44  ;;  %v2118_v44 = vld [vmem:[%s2499_s2 + $0x20] sm:$0xff] }
  0x49   : > { %2559 = vst [vmem:[#allocation60_spill] sm:$0xff] %v2098_v12 }
  0x4a   : > { %2560 = vst [vmem:[#allocation61_spill] sm:$0xff] %v2113_v11 }
  0x4b   : > { %2561 = vst [vmem:[#allocation62_spill] sm:$0xff] %v2138_v10 }
  0x4c   : > { %2562 = vst [vmem:[#allocation63_spill] sm:$0xff] %v2148_v13 }
  0x4d   : > { %2563 = vst [vmem:[#allocation64_spill] sm:$0xff] %v2153_v41 }
  0x4e   : > { %2564 = vst [vmem:[#allocation65_spill] sm:$0xff] %v2158_v9 }
  0x4f   : > { %2565 = vst [vmem:[#allocation66_spill] sm:$0xff] %v2163_v56 }
  0x50   : > { %2566 = vst [vmem:[#allocation67_spill] sm:$0xff] %v2168_v45 }
  0x51   : > { %2567 = vst [vmem:[#allocation68_spill] sm:$0xff] %v2173_v40 }
  0x52 LB: >> { %s296_s25 = smul.u32 3, %s1605_s12  ;;  %s1627_s8 = smov 127   ;;  %vm350_vm0 = vcmask 654336   ;;  %v2568_v20 = vld [vmem:[#allocation18_spill] sm:$0xff]  ;;  %v2569_v24 = vld [vmem:[#allocation19_spill] sm:$0xff]  ;;  %v2570_v12 = vld [vmem:[#allocation60_spill] sm:$0xff]  ;;  %s1625_s4 = sphi %s2175_s4, %s295_s4  }
  0x53   : >> { %s1628_s9 = smov 126   ;;  %s1629_s10 = smov 125   ;;  %v2571_v0 = vld [vmem:[#allocation2_spill] sm:$0xff]  ;;  %v2572_v11 = vld [vmem:[#allocation61_spill] sm:$0xff]  ;;  %v2573_v1 = vld [vmem:[#allocation3_spill] sm:$0xff]  ;;  %vm1187_vm1 = vcmask 68608  }
  0x54   : >> { %s297_s5 = sadd.s32 %s1625_s4, %s296_s25  ;;  %s1630_s11 = smov 124   ;;  %v2574_v2 = vld [vmem:[#allocation4_spill] sm:$0xff]  ;;  %v2576_v13 = vld [vmem:[#allocation63_spill] sm:$0xff] }
  0x55   : >> { %s1306_s6 = sshll.u32 %s297_s5, 4  ;;  %v2575_v9 = vld [vmem:[#allocation65_spill] sm:$0xff]  ;;  %s1387_s20 = sshll.u32 %s1625_s4, 7 }
  0x56   : >> { %s299_s7 = scalar_lea.vmem %s1778_s21, %s1306_s6  ;;  %s1183_s23 = sshra.s32 %s1387_s20, 3 }
  0x57   : >> { %v2183_v8 = vld [vmem:[%s299_s7 + $0x40] sm:$0xff]  ;;  %v2185_v55 = vld [vmem:[%s299_s7 + $0x48] sm:$0xff]  ;;  %v2199_v6 = vld [vmem:[%s299_s7 + $0x30] sm:$0xff]  ;;  %s1388_s24 = sshll.u32 %s1183_s23, 2  ;;  %s295_s4 = sadd.s32 1, %s1625_s4  }
  0x58   : >> { %v1476_v61 = vpack.i.bf16 %v2183_v8, %v2185_v55  ;;  %v2189_v39 = vld [vmem:[%s299_s7 + $0x20] sm:$0xff]  ;;  %v2191_v7 = vld [vmem:[%s299_s7 + $0x28] sm:$0xff]  ;;  %v2201_v53 = vld [vmem:[%s299_s7 + $0x38] sm:$0xff]  ;;  %s2433_s26 = scalar_lea.vmem %s1843_s13, %s1388_s24  ;;  %p292_p7 = scmp.ge.s32.totalorder %s295_s4, 3  }
  0x59   : >> { %v1486_v54 = vpack.i.bf16 %v2189_v39, %v2191_v7  ;;  %v2195_v14 = vld [vmem:[%s299_s7] sm:$0xff]  ;;  %v2197_v38 = vld [vmem:[%s299_s7 + $0x8] sm:$0xff]  ;;  %v2205_v37 = vld [vmem:[%s299_s7 + $0x10] sm:$0xff]  ;;  %v1481_v45 = vpack.i.bf16 %v2199_v6, %v2201_v53 }
  0x5a   : >> { %1477 = vrot.lane.b32.xlu0 %v1476_v61, %s1627_s8  ;;  %v1496_v63 = vpack.i.bf16 %v2195_v14, %v2197_v38  ;;  %v2207_v5 = vld [vmem:[%s299_s7 + $0x18] sm:$0xff] }
  0x5b   : >> { %1487 = vrot.lane.b32.xlu1 %v1486_v54, %s1627_s8  ;;  %v1491_v52 = vpack.i.bf16 %v2205_v37, %v2207_v5 }
  0x5c   : >> { %1497 = vrot.lane.b32.xlu2 %v1496_v63, %s1627_s8 }
  0x62   : >> { %1482 = vrot.lane.b32.xlu0 %v1481_v45, %s1627_s8 }
  0x63   : >> { %1492 = vrot.lane.b32.xlu1 %v1491_v52, %s1627_s8 }
  0x64   : >> { %1502 = vrot.lane.b32.xlu2 %v1476_v61, %s1628_s9 }
  0x6a   : >> { %1507 = vrot.lane.b32.xlu0 %v1476_v61, %s1629_s10 }
  0x6b   : >> { %1512 = vrot.lane.b32.xlu1 %v1481_v45, %s1628_s9 }
  0x6c   : >> { %1517 = vrot.lane.b32.xlu2 %v1481_v45, %s1629_s10 }
  0x72   : >> { %1522 = vrot.lane.b32.xlu0 %v1486_v54, %s1628_s9 }
  0x73   : >> { %1527 = vrot.lane.b32.xlu1 %v1486_v54, %s1629_s10 }
  0x74   : >> { %1532 = vrot.lane.b32.xlu2 %v1476_v61, %s1630_s11 }
  0x7a   : >> { %1537 = vrot.lane.b32.xlu0 %v1491_v52, %s1628_s9 }
  0x7b   : >> { %1542 = vrot.lane.b32.xlu1 %v1491_v52, %s1629_s10 }
  0x7c   : >> { %1547 = vrot.lane.b32.xlu2 %v1481_v45, %s1630_s11 }
  0x82   : >> { %1552 = vrot.lane.b32.xlu0 %v1496_v63, %s1628_s9 }
  0x83   : >> { %1557 = vrot.lane.b32.xlu1 %v1496_v63, %s1629_s10 }
  0x84   : >> { %1562 = vrot.lane.b32.xlu2 %v1486_v54, %s1630_s11 }
  0x8a   : >> { %1567 = vrot.lane.b32.xlu0 %v1491_v52, %s1630_s11 }
  0x8b   : >> { %1572 = vrot.lane.b32.xlu1 %v1496_v63, %s1630_s11 }
  0xb6   : >> { %v1498_v62 = vpop.permute.xlu2 %1497 }
  0xbe   : >> { %v2213_v36 = vpop.permute.xlu2 %1502 }
  0xc6   : >> { %v2215_v61 = vpop.permute.xlu2 %1517 }
  0xc7   : >> { %v1519_v10 = vunpack.i.l.bf16 %v2215_v61 }
  0xcc   : >> { %v1478_v4 = vpop.permute.xlu0 %1477 }
  0xcd   : >> { %v1479_v41 = vunpack.i.l.bf16 %v1478_v4  ;;  %v1488_v56 = vpop.permute.xlu1 %1487  ;;  %v1480_v40 = vunpack.i.h.bf16 %v1478_v4 }
  0xce   : >> { %v1489_v51 = vunpack.i.l.bf16 %v1488_v56  ;;  %v1533_v4 = vpop.permute.xlu2 %1532 }
  0xcf   : >> { %405 = vmatpush.msra.mxu0 %v1479_v41  ;;  %1391 = vmatpush.msra.mxu1 %v1479_v41 }
  0xd0   : >> { %1392 = vmatpush.msra.mxu2 %v1479_v41  ;;  %1393 = vmatpush.msra.mxu3 %v1479_v41  ;;  %v1490_v41 = vunpack.i.h.bf16 %v1488_v56  ;;  %v1500_v56 = vunpack.i.h.bf16 %v1498_v62 }
  0xd1   : >> { %406 = vmatpush.msra.mxu0 %v1480_v40  ;;  %1394 = vmatpush.msra.mxu1 %v1480_v40 }
  0xd2   : >> { %1395 = vmatpush.msra.mxu2 %v1480_v40  ;;  %1396 = vmatpush.msra.mxu3 %v1480_v40 }
  0xd4   : >> { %v1483_v45 = vpop.permute.xlu0 %1482 }
  0xd5   : >> { %v1484_v52 = vunpack.i.l.bf16 %v1483_v45  ;;  %v1493_v54 = vpop.permute.xlu1 %1492  ;;  %v1485_v63 = vunpack.i.h.bf16 %v1483_v45 }
  0xd6   : >> { %v1494_v46 = vunpack.i.l.bf16 %v1493_v54  ;;  %v1495_v35 = vunpack.i.h.bf16 %v1493_v54  ;;  %v1548_v54 = vpop.permute.xlu2 %1547 }
  0xd7   : >> { %407 = vmatpush.msra.mxu0 %v1484_v52  ;;  %1397 = vmatpush.msra.mxu1 %v1484_v52 }
  0xd8   : >> { %1398 = vmatpush.msra.mxu2 %v1484_v52  ;;  %1399 = vmatpush.msra.mxu3 %v1484_v52  ;;  %v1499_v52 = vunpack.i.l.bf16 %v1498_v62  ;;  %v1505_v62 = vunpack.i.h.bf16 %v2213_v36 }
  0xd9   : >> { %408 = vmatpush.msra.mxu0 %v1485_v63  ;;  %1400 = vmatpush.msra.mxu1 %v1485_v63 }
  0xda   : >> { %1401 = vmatpush.msra.mxu2 %v1485_v63  ;;  %1402 = vmatpush.msra.mxu3 %v1485_v63 }
  0xdb   : >> { %409 = vmatpush.msra.mxu0 %v1489_v51  ;;  %1403 = vmatpush.msra.mxu1 %v1489_v51 }
  0xdc   : >> { %1404 = vmatpush.msra.mxu2 %v1489_v51  ;;  %1405 = vmatpush.msra.mxu3 %v1489_v51  ;;  %v1508_v40 = vpop.permute.xlu0 %1507  ;;  %v1504_v51 = vunpack.i.l.bf16 %v2213_v36 }
  0xdd   : >> { %410 = vmatpush.msra.mxu0 %v1490_v41  ;;  %1406 = vmatpush.msra.mxu1 %v1490_v41  ;;  %v1513_v45 = vpop.permute.xlu1 %1512  ;;  %v1509_v63 = vunpack.i.l.bf16 %v1508_v40 }
  0xde   : >> { %1407 = vmatpush.msra.mxu2 %v1490_v41  ;;  %1408 = vmatpush.msra.mxu3 %v1490_v41 }
  0xdf   : >> { %411 = vmatpush.msra.mxu0 %v1494_v46  ;;  %1409 = vmatpush.msra.mxu1 %v1494_v46 }
  0xe0   : >> { %1410 = vmatpush.msra.mxu2 %v1494_v46  ;;  %1411 = vmatpush.msra.mxu3 %v1494_v46  ;;  %v1510_v46 = vunpack.i.h.bf16 %v1508_v40  ;;  %v1535_v40 = vunpack.i.h.bf16 %v1533_v4 }
  0xe1   : >> { %412 = vmatpush.msra.mxu0 %v1495_v35  ;;  %1412 = vmatpush.msra.mxu1 %v1495_v35 }
  0xe2   : >> { %1413 = vmatpush.msra.mxu2 %v1495_v35  ;;  %1414 = vmatpush.msra.mxu3 %v1495_v35  ;;  %v1534_v35 = vunpack.i.l.bf16 %v1533_v4 }
  0xe3   : >> { %413 = vmatpush.msra.mxu0 %v1499_v52  ;;  %1415 = vmatpush.msra.mxu1 %v1499_v52 }
  0xe4   : >> { %1416 = vmatpush.msra.mxu2 %v1499_v52  ;;  %1417 = vmatpush.msra.mxu3 %v1499_v52  ;;  %v1523_v41 = vpop.permute.xlu0 %1522  ;;  %v1514_v52 = vunpack.i.l.bf16 %v1513_v45 }
  0xe5   : >> { %414 = vmatpush.msra.mxu0 %v1500_v56  ;;  %1418 = vmatpush.msra.mxu1 %v1500_v56  ;;  %v1528_v3 = vpop.permute.xlu1 %1527  ;;  %v1524_v36 = vunpack.i.l.bf16 %v1523_v41 }
  0xe6   : >> { %1419 = vmatpush.msra.mxu2 %v1500_v56  ;;  %1420 = vmatpush.msra.mxu3 %v1500_v56  ;;  %v1515_v56 = vunpack.i.h.bf16 %v1513_v45  ;;  %v1529_v4 = vunpack.i.l.bf16 %v1528_v3 }
  0xe7   : >> { %1311 = vmatmul.msk.f32.vlgmr.msra.gmra.mxu1 %vm350_vm0, %v2568_v20  ;;  %1315 = vmatmul.msk.f32.vlgmr.msra.gmra.mxu2 %vm350_vm0, %v2569_v24  ;;  %v1520_v20 = vunpack.i.h.bf16 %v2215_v61 }
  0xe8   : >> { %661 = vmatpush.msrb.mxu2 %v1504_v51  ;;  %820 = vmatpush.msrb.mxu3 %v1509_v63  ;;  %v1549_v63 = vunpack.i.l.bf16 %v1548_v54 }
  0xe9   : >> { %1319 = vmatmul.msk.f32.vlgmr.msra.gmra.mxu3 %vm350_vm0, %v1833_v28  ;;  %518 = vmatpush.msrb.mxu1 %v2185_v55  ;;  %v1525_v55 = vunpack.i.h.bf16 %v1523_v41 }
  0xea   : >> { %662 = vmatpush.msrb.mxu2 %v1505_v62  ;;  %821 = vmatpush.msrb.mxu3 %v1510_v46  ;;  %v1563_v46 = vpop.permute.xlu2 %1562 }
  0xeb   : >> { %979 = vmatpush.msrb.mxu0 %v1534_v35  ;;  %519 = vmatpush.msrb.mxu1 %v2183_v8  ;;  %v1550_v8 = vunpack.i.h.bf16 %v1548_v54  ;;  %v1565_v62 = vunpack.i.h.bf16 %v1563_v46 }
  0xec   : >> { %663 = vmatpush.msrb.mxu2 %v1514_v52  ;;  %822 = vmatpush.msrb.mxu3 %v1519_v10  ;;  %v1538_v51 = vpop.permute.xlu0 %1537 }
  0xed   : >> { %980 = vmatpush.msrb.mxu0 %v1535_v40  ;;  %520 = vmatpush.msrb.mxu1 %v2201_v53  ;;  %v1543_v24 = vpop.permute.xlu1 %1542  ;;  %v1539_v10 = vunpack.i.l.bf16 %v1538_v51  ;;  %v1530_v53 = vunpack.i.h.bf16 %v1528_v3  ;;  %v1540_v61 = vunpack.i.h.bf16 %v1538_v51  ;;  %v2579_v51 = vld [vmem:[#allocation20_spill] sm:$0xff] }
  0xee   : >> { %664 = vmatpush.msrb.mxu2 %v1515_v56  ;;  %823 = vmatpush.msrb.mxu3 %v1520_v20  ;;  %v1564_v20 = vunpack.i.l.bf16 %v1563_v46  ;;  %v1544_v45 = vunpack.i.l.bf16 %v1543_v24  ;;  %v1545_v35 = vunpack.i.h.bf16 %v1543_v24  ;;  %v2583_v46 = vld [vmem:[#allocation66_spill] sm:$0xff] }
  0xef   : >> { %1312 = vmatmul.msk.f32.gmra.mxu1 %vm350_vm0, %v1798_v21  ;;  %1316 = vmatmul.msk.f32.gmra.mxu2 %vm350_vm0, %v1818_v25 }
  0xf0   : >> { %665 = vmatpush.msrb.mxu2 %v1524_v36  ;;  %1307 = vmatmul.msk.f32.vlgmr.msra.gmra.mxu0 %vm350_vm0, %v1768_v16 }
  0xf1   : >> { %1320 = vmatmul.msk.f32.gmra.mxu3 %vm350_vm0, %v1838_v29  ;;  %981 = vmatpush.msrb.mxu0 %v1549_v63  ;;  %v2580_v63 = vld [vmem:[#allocation46_spill] sm:$0xff] }
  0xf2   : >> { %666 = vmatpush.msrb.mxu2 %v1525_v55  ;;  %824 = vmatpush.msrb.mxu3 %v1529_v4  ;;  %v2581_v55 = vld [vmem:[#allocation33_spill] sm:$0xff]  ;;  %v2582_v4 = vld [vmem:[#allocation68_spill] sm:$0xff] }
  0xf3   : >> { %521 = vmatpush.msrb.mxu1 %v2199_v6  ;;  %982 = vmatpush.msrb.mxu0 %v1550_v8  ;;  %v2584_v8 = vld [vmem:[#allocation64_spill] sm:$0xff] }
  0xf4   : >> { %667 = vmatpush.msrb.mxu2 %v1539_v10  ;;  %825 = vmatpush.msrb.mxu3 %v1530_v53  ;;  %v1553_v41 = vpop.permute.xlu0 %1552  ;;  %v2585_v10 = vld [vmem:[#allocation6_spill] sm:$0xff]  ;;  %v2586_v53 = vld [vmem:[#allocation21_spill] sm:$0xff] }
  0xf5   : >> { %522 = vmatpush.msrb.mxu1 %v2191_v7  ;;  %v1554_v54 = vunpack.i.l.bf16 %v1553_v41  ;;  %983 = vmatpush.msrb.mxu0 %v1564_v20  ;;  %v1558_v3 = vpop.permute.xlu1 %1557  ;;  %v1555_v6 = vunpack.i.h.bf16 %v1553_v41  ;;  %v2587_v20 = vld [vmem:[#allocation47_spill] sm:$0xff] }
  0xf6   : >> { %668 = vmatpush.msrb.mxu2 %v1540_v61  ;;  %826 = vmatpush.msrb.mxu3 %v1544_v45  ;;  %v1559_v7 = vunpack.i.l.bf16 %v1558_v3  ;;  %v1560_v24 = vunpack.i.h.bf16 %v1558_v3  ;;  %v2588_v61 = vld [vmem:[#allocation34_spill] sm:$0xff]  ;;  %v2589_v45 = vld [vmem:[#allocation67_spill] sm:$0xff]  ;;  %v2592_v3 = vld [vmem:[#allocation48_spill] sm:$0xff] }
  0xf7   : >> { %1313 = vmatmul.msk.f32.gmra.mxu1 %vm350_vm0, %v1803_v22  ;;  %1317 = vmatmul.msk.f32.gmra.mxu2 %vm350_vm0, %v1823_v26  ;;  %v2590_v41 = vld [vmem:[#allocation7_spill] sm:$0xff] }
  0xf8   : >> { %1308 = vmatmul.msk.f32.gmra.mxu0 %vm350_vm0, %v1773_v17  ;;  %523 = vmatpush.msrb.mxu1 %v2189_v39 }
  0xf9   : >> { %1321 = vmatmul.msk.f32.gmra.mxu3 %vm350_vm0, %v1848_v30  ;;  %669 = vmatpush.msrb.mxu2 %v1554_v54  ;;  %v2591_v54 = vld [vmem:[#allocation22_spill] sm:$0xff] }
  0xfa   : >> { %827 = vmatpush.msrb.mxu3 %v1545_v35  ;;  %984 = vmatpush.msrb.mxu0 %v1565_v62  ;;  %v2593_v35 = vld [vmem:[#allocation35_spill] sm:$0xff]  ;;  %v2594_v62 = vld [vmem:[#allocation8_spill] sm:$0xff] }
  0xfb   : >> { %670 = vmatpush.msrb.mxu2 %v1555_v6  ;;  %524 = vmatpush.msrb.mxu1 %v2207_v5  ;;  %v2595_v6 = vld [vmem:[#allocation23_spill] sm:$0xff] }
  0xfc   : >> { %v1568_v52 = vpop.permute.xlu0 %1567  ;;  %828 = vmatpush.msrb.mxu3 %v1559_v7  ;;  %v2596_v7 = vld [vmem:[#allocation49_spill] sm:$0xff] }
  0xfd   : >> { %525 = vmatpush.msrb.mxu1 %v2205_v37  ;;  %v1569_v40 = vunpack.i.l.bf16 %v1568_v52  ;;  %v1573_v56 = vpop.permute.xlu1 %1572  ;;  %v1570_v39 = vunpack.i.h.bf16 %v1568_v52  ;;  %v1631_v37 = vmov 0   ;;  %v2598_v52 = vld [vmem:[#allocation9_spill] sm:$0xff] }
  0xfe   : >> { %829 = vmatpush.msrb.mxu3 %v1560_v24  ;;  %v1574_v5 = vunpack.i.l.bf16 %v1573_v56  ;;  %1577 = vset.pattern.permute.xlu0 %v1631_v37  ;;  %v1575_v36 = vunpack.i.h.bf16 %v1573_v56  ;;  %v2597_v24 = vld [vmem:[#allocation36_spill] sm:$0xff]  ;;  %v2600_v56 = vld [vmem:[#allocation50_spill] sm:$0xff] }
  0xff   : >> { %1314 = vmatmul.msk.f32.gmra.mxu1 %vm350_vm0, %v1808_v23  ;;  %1318 = vmatmul.msk.f32.gmra.mxu2 %vm350_vm0, %v1828_v27 }
 0x100   : >> { %1309 = vmatmul.msk.f32.gmra.mxu0 %vm350_vm0, %v1783_v18  ;;  %526 = vmatpush.msrb.mxu1 %v2197_v38  ;;  %v2578_v38 = vld [vmem:[#allocation5_spill] sm:$0xff] }
 0x101   : >> { %1322 = vmatmul.msk.f32.gmra.mxu3 %vm350_vm0, %v1853_v31  ;;  %985 = vmatpush.msrb.mxu0 %v1569_v40  ;;  %v2599_v40 = vld [vmem:[#allocation24_spill] sm:$0xff] }
 0x102   : >> { %527 = vmatpush.msrb.mxu1 %v2195_v14  ;;  %1061 = vperm.xlu0 %1577, %v2103_v59   ;;  %v2577_v14 = vld [vmem:[#allocation62_spill] sm:$0xff] }
 0x103   : >> { %986 = vmatpush.msrb.mxu0 %v1570_v39  ;;  %1578 = vset.pattern.permute.xlu1 %v1631_v37  ;;  %v2601_v39 = vld [vmem:[#allocation37_spill] sm:$0xff] }
 0x104   : >> { %1576 = vset.pattern.permute.xlu2 %v1631_v37  ;;  %1066 = vperm.xlu1 %1578, %v2108_v43   ;;  %v2603_v37 = vld [vmem:[#allocation25_spill] sm:$0xff] }
 0x105   : >> { %987 = vmatpush.msrb.mxu0 %v1574_v5  ;;  %1056 = vperm.xlu2 %1576, %v2570_v12   ;;  %v2602_v5 = vld [vmem:[#allocation10_spill] sm:$0xff] }
 0x107   : >> { %1323 = vmatmul.msk.f32.vlgmr.msrb.gmra.mxu1 %vm350_vm0, %v2571_v0  ;;  %1339 = vmatmul.msk.f32.vlgmr.msrb.gmra.mxu2 %vm350_vm0, %v1858_v32 }
 0x108   : >> { %1310 = vmatmul.msk.f32.gmra.mxu0 %vm350_vm0, %v1788_v19 }
 0x109   : >> { %1355 = vmatmul.msk.f32.vlgmr.msrb.gmra.mxu3 %vm350_vm0, %v1938_v48  ;;  %988 = vmatpush.msrb.mxu0 %v1575_v36  ;;  %v2604_v36 = vld [vmem:[#allocation51_spill] sm:$0xff] }
 0x10a   : >> { %1086 = vperm.xlu0 %1577, %v2128_v60  }
 0x10c   : >> { %1076 = vperm.xlu1 %1578, %v2118_v44  }
 0x10d   : >> { %1071 = vperm.xlu2 %1576, %v2572_v11  }
 0x10f   : >> { %1324 = vmatmul.msk.f32.gmra.mxu1 %vm350_vm0, %v2573_v1  ;;  %1340 = vmatmul.msk.f32.gmra.mxu2 %vm350_vm0, %v1863_v33 }
 0x110   : >> { %1371 = vmatmul.msk.f32.vlgmr.msrb.gmra.mxu0 %vm350_vm0, %v2018_v47 }
 0x111   : >> { %1356 = vmatmul.msk.f32.gmra.mxu3 %vm350_vm0, %v1943_v49 }
 0x112   : >> { %1101 = vperm.xlu0 %1577, %v2143_v57  }
 0x114   : >> { %1091 = vperm.xlu1 %1578, %v2133_v42  }
 0x115   : >> { %1081 = vperm.xlu2 %1576, %v2123_v58  }
 0x117   : >> { %1325 = vmatmul.msk.f32.gmra.mxu1 %vm350_vm0, %v2574_v2  ;;  %1341 = vmatmul.msk.f32.gmra.mxu2 %vm350_vm0, %v1868_v34 }
 0x118   : >> { %1372 = vmatmul.msk.f32.gmra.mxu0 %vm350_vm0, %v2023_v15 }
 0x119   : >> { %1357 = vmatmul.msk.f32.gmra.mxu3 %vm350_vm0, %v1948_v50 }
 0x11a   : >> { %1116 = vperm.xlu0 %1577, %v2575_v9  }
 0x11c   : >> { %1106 = vperm.xlu1 %1578, %v2576_v13  }
 0x11d   : >> { %1096 = vperm.xlu2 %1576, %v2577_v14   ;;  %v2605_v14 = vld [vmem:[#allocation38_spill] sm:$0xff] }
 0x11f   : >> { %1326 = vmatmul.msk.f32.gmra.mxu1 %vm350_vm0, %v2578_v38  ;;  %1342 = vmatmul.msk.f32.gmra.mxu2 %vm350_vm0, %v2579_v51  ;;  %v2606_v38 = vld [vmem:[#allocation11_spill] sm:$0xff]  ;;  %v2607_v51 = vld [vmem:[#allocation26_spill] sm:$0xff] }
 0x120   : >> { %1373 = vmatmul.msk.f32.gmra.mxu0 %vm350_vm0, %v2580_v63  ;;  %v2608_v63 = vld [vmem:[#allocation52_spill] sm:$0xff] }
 0x121   : >> { %1358 = vmatmul.msk.f32.gmra.mxu3 %vm350_vm0, %v2581_v55  ;;  %v2609_v55 = vld [vmem:[#allocation39_spill] sm:$0xff] }
 0x122   : >> { %1131 = vperm.xlu0 %1577, %v2582_v4   ;;  %v2610_v4 = vld [vmem:[#allocation12_spill] sm:$0xff] }
 0x124   : >> { %1121 = vperm.xlu1 %1578, %v2583_v46   ;;  %v2611_v46 = vld [vmem:[#allocation27_spill] sm:$0xff] }
 0x125   : >> { %1111 = vperm.xlu2 %1576, %v2584_v8   ;;  %v2612_v8 = vld [vmem:[#allocation53_spill] sm:$0xff] }
 0x127   : >> { %1327 = vmatmul.msk.f32.gmra.mxu1 %vm350_vm0, %v2585_v10  ;;  %1343 = vmatmul.msk.f32.gmra.mxu2 %vm350_vm0, %v2586_v53  ;;  %v2613_v10 = vld [vmem:[#allocation40_spill] sm:$0xff]  ;;  %v2614_v53 = vld [vmem:[#allocation13_spill] sm:$0xff] }
 0x128   : >> { %1374 = vmatmul.msk.f32.gmra.mxu0 %vm350_vm0, %v2587_v20  ;;  %v2615_v20 = vld [vmem:[#allocation28_spill] sm:$0xff] }
 0x129   : >> { %1359 = vmatmul.msk.f32.gmra.mxu3 %vm350_vm0, %v2588_v61  ;;  %v2616_v61 = vld [vmem:[#allocation54_spill] sm:$0xff] }
 0x12d   : >> { %1126 = vperm.xlu2 %1576, %v2589_v45   ;;  %v2617_v45 = vld [vmem:[#allocation41_spill] sm:$0xff] }
 0x12f   : >> { %1328 = vmatmul.msk.f32.gmra.mxu1 %vm350_vm0, %v2590_v41  ;;  %1344 = vmatmul.msk.f32.gmra.mxu2 %vm350_vm0, %v2591_v54  ;;  %v2618_v54 = vld [vmem:[#allocation14_spill] sm:$0xff] }
 0x130   : >> { %1375 = vmatmul.msk.f32.gmra.mxu0 %vm350_vm0, %v2592_v3  ;;  %v2619_v3 = vld [vmem:[#allocation29_spill] sm:$0xff] }
 0x131   : >> { %1360 = vmatmul.msk.f32.gmra.mxu3 %vm350_vm0, %v2593_v35  ;;  %v2620_v35 = vld [vmem:[#allocation55_spill] sm:$0xff] }
 0x137   : >> { %1329 = vmatmul.msk.f32.gmra.mxu1 %vm350_vm0, %v2594_v62  ;;  %1345 = vmatmul.msk.f32.gmra.mxu2 %vm350_vm0, %v2595_v6  ;;  %v2621_v62 = vld [vmem:[#allocation42_spill] sm:$0xff] }
 0x138   : >> { %1376 = vmatmul.msk.f32.gmra.mxu0 %vm350_vm0, %v2596_v7 }
 0x139   : >> { %1361 = vmatmul.msk.f32.gmra.mxu3 %vm350_vm0, %v2597_v24 }
 0x13f   : >> { %1330 = vmatmul.msk.f32.gmra.mxu1 %vm350_vm0, %v2598_v52  ;;  %1346 = vmatmul.msk.f32.gmra.mxu2 %vm350_vm0, %v2599_v40  ;;  %v2622_v40 = vld [vmem:[#allocation15_spill] sm:$0xff] }
 0x140   : >> { %1377 = vmatmul.msk.f32.gmra.mxu0 %vm350_vm0, %v2600_v56  ;;  %v2623_v56 = vld [vmem:[#allocation30_spill] sm:$0xff] }
 0x141   : >> { %1362 = vmatmul.msk.f32.gmra.mxu3 %vm350_vm0, %v2601_v39  ;;  %v2624_v39 = vld [vmem:[#allocation56_spill] sm:$0xff] }
 0x147   : >> { %1331 = vmatmul.msk.f32.gmra.mxu1 %vm350_vm0, %v2602_v5  ;;  %1347 = vmatmul.msk.f32.gmra.mxu2 %vm350_vm0, %v2603_v37  ;;  %v2625_v5 = vld [vmem:[#allocation43_spill] sm:$0xff] }
 0x148   : >> { %1378 = vmatmul.msk.f32.gmra.mxu0 %vm350_vm0, %v2604_v36 }
 0x149   : >> { %1363 = vmatmul.msk.f32.gmra.mxu3 %vm350_vm0, %v2605_v14 }
 0x14f   : >> { %1332 = vmatmul.msk.f32.gmra.mxu1 %vm350_vm0, %v2606_v38  ;;  %1348 = vmatmul.msk.f32.gmra.mxu2 %vm350_vm0, %v2607_v51  ;;  %v2626_v51 = vld [vmem:[#allocation16_spill] sm:$0xff] }
 0x150   : >> { %1379 = vmatmul.msk.f32.gmra.mxu0 %vm350_vm0, %v2608_v63  ;;  %v2627_v63 = vld [vmem:[#allocation31_spill] sm:$0xff] }
 0x151   : >> { %1364 = vmatmul.msk.f32.gmra.mxu3 %vm350_vm0, %v2609_v55  ;;  %v2628_v55 = vld [vmem:[#allocation57_spill] sm:$0xff] }
 0x157   : >> { %1333 = vmatmul.msk.f32.gmra.mxu1 %vm350_vm0, %v2610_v4  ;;  %1349 = vmatmul.msk.f32.gmra.mxu2 %vm350_vm0, %v2611_v46  ;;  %v2629_v4 = vld [vmem:[#allocation44_spill] sm:$0xff] }
 0x158   : >> { %1380 = vmatmul.msk.f32.gmra.mxu0 %vm350_vm0, %v2612_v8 }
 0x159   : >> { %1365 = vmatmul.msk.f32.gmra.mxu3 %vm350_vm0, %v2613_v10 }
 0x15f   : >> { %1334 = vmatmul.msk.f32.gmra.mxu1 %vm350_vm0, %v2614_v53  ;;  %1350 = vmatmul.msk.f32.gmra.mxu2 %vm350_vm0, %v2615_v20  ;;  %v2630_v20 = vld [vmem:[#allocation17_spill] sm:$0xff] }
 0x160   : >> { %1381 = vmatmul.msk.f32.gmra.mxu0 %vm350_vm0, %v2616_v61  ;;  %v2631_v61 = vld [vmem:[#allocation32_spill] sm:$0xff] }
 0x161   : >> { %1366 = vmatmul.msk.f32.gmra.mxu3 %vm350_vm0, %v2617_v45  ;;  %v2632_v45 = vld [vmem:[#allocation58_spill] sm:$0xff] }
 0x164   : >> { %v2373_v41 = vpop.f32.mrf.mxu1 }
 0x167   : >> { %1335 = vmatmul.msk.f32.gmra.mxu1 %vm350_vm0, %v2618_v54  ;;  %1351 = vmatmul.msk.f32.gmra.mxu2 %vm350_vm0, %v2619_v3  ;;  %v2633_v54 = vld [vmem:[#allocation45_spill] sm:$0xff] }
 0x168   : >> { %1382 = vmatmul.msk.f32.gmra.mxu0 %vm350_vm0, %v2620_v35 }
 0x169   : >> { %1367 = vmatmul.msk.f32.gmra.mxu3 %vm350_vm0, %v2621_v62 }
 0x16a   : >> { %v2383_v6 = vpop.f32.mrf.mxu2 }
 0x16c   : >> { %v2385_v7 = vpop.f32.mrf.mxu1  ;;  %v2387_v24 = vpop.f32.mrf.mxu3 }
 0x16d   : >> { %v416_v52 = vpop.f32.mrf.mxu0 }
 0x16f   : >> { %1336 = vmatmul.msk.f32.gmra.mxu1 %vm350_vm0, %v2622_v40  ;;  %1352 = vmatmul.msk.f32.gmra.mxu2 %vm350_vm0, %v2623_v56  ;;  %v2634_v56 = vld [vmem:[#allocation59_spill] sm:$0xff] }
 0x170   : >> { %1383 = vmatmul.msk.f32.gmra.mxu0 %vm350_vm0, %v2624_v39 }
 0x171   : >> { %1368 = vmatmul.msk.f32.gmra.mxu3 %vm350_vm0, %v2625_v5 }
 0x172   : >> { %v2397_v37 = vpop.f32.mrf.mxu2 }
 0x174   : >> { %v2399_v36 = vpop.f32.mrf.mxu1  ;;  %v2401_v14 = vpop.f32.mrf.mxu3 }
 0x175   : >> { %v419_v38 = vpop.f32.mrf.mxu0 }
 0x176   : >> { %v1067_v12 = vpop.permute.xlu1 %1066 }
 0x177   : >> { %1337 = vmatmul.msk.f32.gmra.mxu1 %vm350_vm0, %v2626_v51  ;;  %1353 = vmatmul.msk.f32.gmra.mxu2 %vm350_vm0, %v2627_v63 }
 0x178   : >> { %1384 = vmatmul.msk.f32.gmra.mxu0 %vm350_vm0, %v2628_v55 }
 0x179   : >> { %1369 = vmatmul.msk.f32.gmra.mxu3 %vm350_vm0, %v2629_v4 }
 0x17a   : >> { %v2411_v46 = vpop.f32.mrf.mxu2 }
 0x17c   : >> { %v2413_v8 = vpop.f32.mrf.mxu1  ;;  %v2415_v10 = vpop.f32.mrf.mxu3 }
 0x17d   : >> { %v422_v53 = vpop.f32.mrf.mxu0 }
 0x17f   : >> { %1338 = vmatmul.msk.f32.gmra.mxu1 %vm350_vm0, %v2630_v20  ;;  %1354 = vmatmul.msk.f32.gmra.mxu2 %vm350_vm0, %v2631_v61  ;;  %v1057_v61 = vpop.permute.xlu2 %1056 }
 0x180   : >> { %1385 = vmatmul.msk.f32.gmra.mxu0 %vm350_vm0, %v2632_v45 }
 0x181   : >> { %1370 = vmatmul.msk.f32.gmra.mxu3 %vm350_vm0, %v2633_v54 }
 0x182   : >> { %v2425_v3 = vpop.f32.mrf.mxu2 }
 0x184   : >> { %v2427_v35 = vpop.f32.mrf.mxu3  ;;  %v529_v62 = vpop.f32.mrf.mxu1 }
 0x185   : >> { %v425_v40 = vpop.f32.mrf.mxu0  ;;  %v530_v39 = vadd.f32 %v529_v62, %v416_v52 }
 0x188   : >> { %1386 = vmatmul.msk.f32.gmra.mxu0 %vm350_vm0, %v2634_v56 }
 0x18a   : >> { %v672_v5 = vpop.f32.mrf.mxu2 }
 0x18b   : >> { %v720_v51 = vadd.f32 %v672_v5, %v530_v39 }
 0x18c   : >> { %v532_v63 = vpop.f32.mrf.mxu1  ;;  %v831_v55 = vpop.f32.mrf.mxu3 }
 0x18d   : >> { %v879_v4 = vadd.f32 %v831_v55, %v720_v51  ;;  %v990_v20 = vpop.f32.mrf.mxu0  ;;  %v533_v54 = vadd.f32 %v532_v63, %v419_v38  ;;  %v1062_v51 = vpop.permute.xlu0 %1061 }
 0x18f   : >> { %v1038_v45 = vadd.f32 %v990_v20, %v879_v4 }
 0x191   : >> { %v1134_v0 = vadd.f32 %v1057_v61, %v1038_v45 }
 0x192   : >> { %v675_v1 = vpop.f32.mrf.mxu2 }
 0x193   : >> { %v1150_v2 = vmax.f32 %v1134_v0, 0.0  ;;  %v721_v9 = vadd.f32 %v675_v1, %v533_v54 }
 0x194   : >> { %v535_v52 = vpop.f32.mrf.mxu1  ;;  %v834_v62 = vpop.f32.mrf.mxu3 }
 0x195   : >> { %v1166_v56 = vpack.c.bf16 %v1150_v2, %v1150_v2  ;;  %v880_v39 = vadd.f32 %v834_v62, %v721_v9  ;;  %v993_v5 = vpop.f32.mrf.mxu0  ;;  %v536_v4 = vadd.f32 %v535_v52, %v422_v53 }
 0x197   : >> { %1188 = vst.msk [vmem:[%s2433_s26] sm:$0xf] %vm1187_vm1, %v1166_v56  ;;  %v1039_v55 = vadd.f32 %v993_v5, %v880_v39 }
 0x199   : >> { %v1135_v38 = vadd.f32 %v1062_v51, %v1039_v55 }
 0x19a   : >> { %v678_v63 = vpop.f32.mrf.mxu2 }
 0x19b   : >> { %v1151_v20 = vmax.f32 %v1135_v38, 0.0  ;;  %v722_v0 = vadd.f32 %v678_v63, %v536_v4  ;;  %v1072_v4 = vpop.permute.xlu2 %1071 }
 0x19c   : >> { %v538_v1 = vpop.f32.mrf.mxu1  ;;  %v837_v61 = vpop.f32.mrf.mxu3 }
 0x19d   : >> { %v1167_v45 = vpack.c.bf16 %v1151_v20, %v1151_v20  ;;  %v881_v54 = vadd.f32 %v837_v61, %v722_v0  ;;  %v996_v11 = vpop.f32.mrf.mxu0  ;;  %v539_v9 = vadd.f32 %v538_v1, %v425_v40 }
 0x19f   : >> { %1189 = vst.msk [vmem:[%s2433_s26 + $0x4] sm:$0xf] %vm1187_vm1, %v1167_v45  ;;  %v1040_v2 = vadd.f32 %v996_v11, %v881_v54  ;;  %v1077_v54 = vpop.permute.xlu1 %1076 }
 0x1a1   : >> { %v1136_v62 = vadd.f32 %v1067_v12, %v1040_v2 }
 0x1a2   : >> { %v681_v13 = vpop.f32.mrf.mxu2 }
 0x1a3   : >> { %v1152_v56 = vmax.f32 %v1136_v62, 0.0  ;;  %v723_v39 = vadd.f32 %v681_v13, %v539_v9 }
 0x1a4   : >> { %v541_v53 = vpop.f32.mrf.mxu1  ;;  %v840_v52 = vpop.f32.mrf.mxu3 }
 0x1a5   : >> { %v1168_v5 = vpack.c.bf16 %v1152_v56, %v1152_v56  ;;  %v882_v51 = vadd.f32 %v840_v52, %v723_v39  ;;  %v999_v55 = vpop.f32.mrf.mxu0  ;;  %v542_v63 = vadd.f32 %v541_v53, %v2373_v41 }
 0x1a7   : >> { %1190 = vst.msk [vmem:[%s2433_s26 + $0x8] sm:$0xf] %vm1187_vm1, %v1168_v5  ;;  %v1041_v38 = vadd.f32 %v999_v55, %v882_v51 }
 0x1a9   : >> { %v1137_v20 = vadd.f32 %v1072_v4, %v1041_v38  ;;  %v1082_v4 = vpop.permute.xlu2 %1081 }
 0x1aa   : >> { %v684_v0 = vpop.f32.mrf.mxu2 }
 0x1ab   : >> { %v1153_v11 = vmax.f32 %v1137_v20, 0.0  ;;  %v724_v40 = vadd.f32 %v684_v0, %v542_v63 }
 0x1ac   : >> { %v544_v12 = vpop.f32.mrf.mxu1  ;;  %v843_v1 = vpop.f32.mrf.mxu3 }
 0x1ad   : >> { %v1169_v61 = vpack.c.bf16 %v1153_v11, %v1153_v11  ;;  %v883_v13 = vadd.f32 %v843_v1, %v724_v40  ;;  %v1002_v45 = vpop.f32.mrf.mxu0  ;;  %v545_v9 = vadd.f32 %v544_v12, %v2385_v7 }
 0x1af   : >> { %1191 = vst.msk [vmem:[%s2433_s26 + $0xc] sm:$0xf] %vm1187_vm1, %v1169_v61  ;;  %v1042_v2 = vadd.f32 %v1002_v45, %v883_v13  ;;  %v1087_v45 = vpop.permute.xlu0 %1086 }
 0x1b1   : >> { %v1138_v62 = vadd.f32 %v1077_v54, %v1042_v2 }
 0x1b2   : >> { %v687_v56 = vpop.f32.mrf.mxu2 }
 0x1b3   : >> { %v1154_v39 = vmax.f32 %v1138_v62, 0.0  ;;  %v725_v41 = vadd.f32 %v687_v56, %v545_v9 }
 0x1b4   : >> { %v547_v53 = vpop.f32.mrf.mxu1  ;;  %v846_v52 = vpop.f32.mrf.mxu3 }
 0x1b5   : >> { %v1170_v5 = vpack.c.bf16 %v1154_v39, %v1154_v39  ;;  %v884_v51 = vadd.f32 %v846_v52, %v725_v41  ;;  %v1005_v55 = vpop.f32.mrf.mxu0  ;;  %v548_v63 = vadd.f32 %v547_v53, %v2399_v36 }
 0x1b7   : >> { %1192 = vst.msk [vmem:[%s2433_s26 + $0x10] sm:$0xf] %vm1187_vm1, %v1170_v5  ;;  %v1043_v38 = vadd.f32 %v1005_v55, %v884_v51  ;;  %v1092_v51 = vpop.permute.xlu1 %1091 }
 0x1b9   : >> { %v1139_v20 = vadd.f32 %v1082_v4, %v1043_v38 }
 0x1ba   : >> { %v690_v0 = vpop.f32.mrf.mxu2 }
 0x1bb   : >> { %v1155_v11 = vmax.f32 %v1139_v20, 0.0  ;;  %v726_v7 = vadd.f32 %v690_v0, %v548_v63 }
 0x1bc   : >> { %v550_v40 = vpop.f32.mrf.mxu1  ;;  %v849_v12 = vpop.f32.mrf.mxu3 }
 0x1bd   : >> { %v1171_v1 = vpack.c.bf16 %v1155_v11, %v1155_v11  ;;  %v885_v61 = vadd.f32 %v849_v12, %v726_v7  ;;  %v1008_v13 = vpop.f32.mrf.mxu0  ;;  %v551_v2 = vadd.f32 %v550_v40, %v2413_v8 }
 0x1bf   : >> { %1193 = vst.msk [vmem:[%s2433_s26 + $0x14] sm:$0xf] %vm1187_vm1, %v1171_v1  ;;  %v1044_v54 = vadd.f32 %v1008_v13, %v885_v61  ;;  %v1097_v1 = vpop.permute.xlu2 %1096 }
 0x1c1   : >> { %v1140_v9 = vadd.f32 %v1087_v45, %v1044_v54 }
 0x1c2   : >> { %v693_v62 = vpop.f32.mrf.mxu2 }
 0x1c3   : >> { %v1156_v56 = vmax.f32 %v1140_v9, 0.0  ;;  %v727_v36 = vadd.f32 %v693_v62, %v551_v2 }
 0x1c4   : >> { %v553_v39 = vpop.f32.mrf.mxu1  ;;  %v852_v41 = vpop.f32.mrf.mxu3 }
 0x1c5   : >> { %v1172_v53 = vpack.c.bf16 %v1156_v56, %v1156_v56  ;;  %v886_v52 = vadd.f32 %v852_v41, %v727_v36  ;;  %v1011_v5 = vpop.f32.mrf.mxu0  ;;  %v554_v4 = vadd.f32 %v553_v39, %v2383_v6  ;;  %v1102_v41 = vpop.permute.xlu0 %1101 }
 0x1c7   : >> { %1194 = vst.msk [vmem:[%s2433_s26 + $0x18] sm:$0xf] %vm1187_vm1, %v1172_v53  ;;  %v1045_v55 = vadd.f32 %v1011_v5, %v886_v52 }
 0x1c9   : >> { %v1141_v38 = vadd.f32 %v1092_v51, %v1045_v55 }
 0x1ca   : >> { %v696_v63 = vpop.f32.mrf.mxu2 }
 0x1cb   : >> { %v1157_v20 = vmax.f32 %v1141_v38, 0.0  ;;  %v728_v8 = vadd.f32 %v696_v63, %v554_v4 }
 0x1cc   : >> { %v556_v0 = vpop.f32.mrf.mxu1  ;;  %v855_v11 = vpop.f32.mrf.mxu3 }
 0x1cd   : >> { %v1173_v7 = vpack.c.bf16 %v1157_v20, %v1157_v20  ;;  %v887_v40 = vadd.f32 %v855_v11, %v728_v8  ;;  %v1014_v12 = vpop.f32.mrf.mxu0  ;;  %v557_v13 = vadd.f32 %v556_v0, %v2397_v37  ;;  %v1107_v0 = vpop.permute.xlu1 %1106 }
 0x1cf   : >> { %1195 = vst.msk [vmem:[%s2433_s26 + $0x1c] sm:$0xf] %vm1187_vm1, %v1173_v7  ;;  %v1046_v61 = vadd.f32 %v1014_v12, %v887_v40 }
 0x1d1   : >> { %v1142_v45 = vadd.f32 %v1097_v1, %v1046_v61 }
 0x1d2   : >> { %v699_v54 = vpop.f32.mrf.mxu2 }
 0x1d3   : >> { %v1158_v2 = vmax.f32 %v1142_v45, 0.0  ;;  %v729_v6 = vadd.f32 %v699_v54, %v557_v13 }
 0x1d4   : >> { %v559_v9 = vpop.f32.mrf.mxu1  ;;  %v858_v62 = vpop.f32.mrf.mxu3 }
 0x1d5   : >> { %v1174_v56 = vpack.c.bf16 %v1158_v2, %v1158_v2  ;;  %v888_v36 = vadd.f32 %v858_v62, %v729_v6  ;;  %v1017_v39 = vpop.f32.mrf.mxu0  ;;  %v560_v52 = vadd.f32 %v559_v9, %v2411_v46  ;;  %v1112_v9 = vpop.permute.xlu2 %1111 }
 0x1d7   : >> { %1196 = vst.msk [vmem:[%s2433_s26 + $0x20] sm:$0xf] %vm1187_vm1, %v1174_v56  ;;  %v1047_v53 = vadd.f32 %v1017_v39, %v888_v36 }
 0x1d9   : >> { %v1143_v5 = vadd.f32 %v1102_v41, %v1047_v53 }
 0x1da   : >> { %v702_v51 = vpop.f32.mrf.mxu2 }
 0x1db   : >> { %v1159_v55 = vmax.f32 %v1143_v5, 0.0  ;;  %v730_v37 = vadd.f32 %v702_v51, %v560_v52 }
 0x1dc   : >> { %v562_v4 = vpop.f32.mrf.mxu1  ;;  %v861_v38 = vpop.f32.mrf.mxu3 }
 0x1dd   : >> { %v1175_v63 = vpack.c.bf16 %v1159_v55, %v1159_v55  ;;  %v889_v20 = vadd.f32 %v861_v38, %v730_v37  ;;  %v1020_v8 = vpop.f32.mrf.mxu0  ;;  %v563_v7 = vadd.f32 %v562_v4, %v2425_v3  ;;  %v1117_v37 = vpop.permute.xlu0 %1116 }
 0x1df   : >> { %1197 = vst.msk [vmem:[%s2433_s26 + $0x24] sm:$0xf] %vm1187_vm1, %v1175_v63  ;;  %v1048_v11 = vadd.f32 %v1020_v8, %v889_v20 }
 0x1e1   : >> { %v1144_v40 = vadd.f32 %v1107_v0, %v1048_v11 }
 0x1e2   : >> { %v705_v12 = vpop.f32.mrf.mxu2 }
 0x1e3   : >> { %v1160_v1 = vmax.f32 %v1144_v40, 0.0  ;;  %v731_v46 = vadd.f32 %v705_v12, %v563_v7 }
 0x1e4   : >> { %v565_v61 = vpop.f32.mrf.mxu1  ;;  %v864_v13 = vpop.f32.mrf.mxu3 }
 0x1e5   : >> { %v1176_v45 = vpack.c.bf16 %v1160_v1, %v1160_v1  ;;  %v890_v54 = vadd.f32 %v864_v13, %v731_v46  ;;  %v1023_v2 = vpop.f32.mrf.mxu0  ;;  %v566_v62 = vadd.f32 %v565_v61, %v2387_v24  ;;  %v1122_v1 = vpop.permute.xlu1 %1121 }
 0x1e7   : >> { %1198 = vst.msk [vmem:[%s2433_s26 + $0x28] sm:$0xf] %vm1187_vm1, %v1176_v45  ;;  %v1049_v6 = vadd.f32 %v1023_v2, %v890_v54 }
 0x1e9   : >> { %v1145_v56 = vadd.f32 %v1112_v9, %v1049_v6 }
 0x1ea   : >> { %v708_v36 = vpop.f32.mrf.mxu2 }
 0x1eb   : >> { %v1161_v39 = vmax.f32 %v1145_v56, 0.0  ;;  %v732_v3 = vadd.f32 %v708_v36, %v566_v62  ;;  %v1127_v36 = vpop.permute.xlu2 %1126 }
 0x1ec   : >> { %v568_v41 = vpop.f32.mrf.mxu1  ;;  %v867_v53 = vpop.f32.mrf.mxu3 }
 0x1ed   : >> { %v1177_v52 = vpack.c.bf16 %v1161_v39, %v1161_v39  ;;  %v891_v5 = vadd.f32 %v867_v53, %v732_v3  ;;  %v1026_v51 = vpop.f32.mrf.mxu0  ;;  %v569_v4 = vadd.f32 %v568_v41, %v2401_v14 }
 0x1ef   : >> { %1199 = vst.msk [vmem:[%s2433_s26 + $0x2c] sm:$0xf] %vm1187_vm1, %v1177_v52  ;;  %v1050_v55 = vadd.f32 %v1026_v51, %v891_v5 }
 0x1f1   : >> { %v1146_v38 = vadd.f32 %v1117_v37, %v1050_v55 }
 0x1f2   : >> { %v711_v63 = vpop.f32.mrf.mxu2 }
 0x1f3   : >> { %v1162_v20 = vmax.f32 %v1146_v38, 0.0  ;;  %v733_v24 = vadd.f32 %v711_v63, %v569_v4  ;;  %v1132_v4 = vpop.permute.xlu0 %1131 }
 0x1f4   : >> { %v571_v8 = vpop.f32.mrf.mxu1  ;;  %v870_v0 = vpop.f32.mrf.mxu3 }
 0x1f5   : >> { %v1178_v11 = vpack.c.bf16 %v1162_v20, %v1162_v20  ;;  %v892_v7 = vadd.f32 %v870_v0, %v733_v24  ;;  %v1029_v40 = vpop.f32.mrf.mxu0  ;;  %v572_v46 = vadd.f32 %v571_v8, %v2415_v10 }
 0x1f7   : >> { %1200 = vst.msk [vmem:[%s2433_s26 + $0x30] sm:$0xf] %vm1187_vm1, %v1178_v11  ;;  %v1051_v12 = vadd.f32 %v1029_v40, %v892_v7 }
 0x1f9   : >> { %v1147_v61 = vadd.f32 %v1122_v1, %v1051_v12 }
 0x1fa   : >> { %v714_v13 = vpop.f32.mrf.mxu2 }
 0x1fb   : >> { %v1163_v45 = vmax.f32 %v1147_v61, 0.0  ;;  %v734_v14 = vadd.f32 %v714_v13, %v572_v46 }
 0x1fc   : >> { %v873_v54 = vpop.f32.mrf.mxu3  ;;  %v574_v62 = vpop.f32.mrf.mxu1 }
 0x1fd   : >> { %v1179_v2 = vpack.c.bf16 %v1163_v45, %v1163_v45  ;;  %v893_v6 = vadd.f32 %v873_v54, %v734_v14  ;;  %v1032_v9 = vpop.f32.mrf.mxu0  ;;  %v575_v39 = vadd.f32 %v574_v62, %v2427_v35 }
 0x1ff   : >> { %1201 = vst.msk [vmem:[%s2433_s26 + $0x34] sm:$0xf] %vm1187_vm1, %v1179_v2  ;;  %v1052_v56 = vadd.f32 %v1032_v9, %v893_v6 }
 0x201   : >> { %v1148_v3 = vadd.f32 %v1127_v36, %v1052_v56 }
 0x202   : >> { %v717_v41 = vpop.f32.mrf.mxu2 }
 0x203   : >> { %v1164_v10 = vmax.f32 %v1148_v3, 0.0  ;;  %v735_v53 = vadd.f32 %v717_v41, %v575_v39 }
 0x204   : >> { %v876_v52 = vpop.f32.mrf.mxu3 }
 0x205   : >> { %v1180_v5 = vpack.c.bf16 %v1164_v10, %v1164_v10  ;;  %v894_v51 = vadd.f32 %v876_v52, %v735_v53  ;;  %v1035_v55 = vpop.f32.mrf.mxu0 }
 0x207   : >> { %1202 = vst.msk [vmem:[%s2433_s26 + $0x38] sm:$0xf] %vm1187_vm1, %v1180_v5  ;;  %v1053_v37 = vadd.f32 %v1035_v55, %v894_v51 }
 0x209   : >> { %v1149_v38 = vadd.f32 %v1132_v4, %v1053_v37 }
 0x20b   : >> { %v1165_v63 = vmax.f32 %v1149_v38, 0.0  ;;  %294 = sbr.rel (!%p292_p7) target bundleno = 82 (0x52), region = 71 }
 0x20d   : >> { %v1181_v20 = vpack.c.bf16 %v1165_v63, %v1165_v63 }
 0x20f   : >> { %1203 = vst.msk [vmem:[%s2433_s26 + $0x3c] sm:$0xf] %vm1187_vm1, %v1181_v20 }
 0x210 PF: > { %s13_s16 = sadd.s32 1, %s1621_s16   ;;  %s2635_s12 = smov %s1613_s14 }
 0x211   : > { %p10_p8 = scmp.ge.s32.totalorder %s13_s16, 8   ;;  %s2636_s13 = smov %s1617_s15 }
 0x212   : > { %s2637_s14 = smov %s2640_s17  ;;  %s2638_s15 = smov %s2644_s18 }
 0x213   :  { %12 = sbr.rel (!%p10_p8) target bundleno = 3 (0x3), region = 82 }

// kernel: lenet_forward.6
= control target key start
LH: loop header
LB: loop body
LE: loop exit
PB: predicated region body
PF: predicated region fallthrough
CT: control target
= control target key end

     0   :  { %9 = vsyncpa [#allocation3], 0  ;;  %s1431_s15 = smov 0   ;;  %s1433_s16 = smov 0   ;;  %s1723_s0 = inlined_call_operand.vmem [shape: f32[2,240,15], index: 0, kind: input, shape index: {}]   ;;  %s1724_s1 = inlined_call_operand.vmem [shape: f32[2,240,15], index: 1, kind: input, shape index: {}]   ;;  %s1725_s2 = inlined_call_operand.hbm [shape: f32[5,16,40], index: 2, kind: input, shape index: {}]   ;;  %s1726_s3 = inlined_call_operand.vmem [shape: f32[16,1], index: 3, kind: input, shape index: {}]   ;;  %s1727_s4 = inlined_call_operand.vmem [shape: f32[2,208,13], index: 4, kind: output, shape index: {}]  }
   0x1   :  { %s1435_s17 = smov 0   ;;  %s1437_s18 = smov 0  }
   0x2   :  { %s1439_s19 = smov 0  }
   0x3 LB: > { %s1096_s20 = sadd.s32 4294967295, %s1398_s19   ;;  %s24_s21 = sadd.s32 1, %s1390_s17  ;;  %s1398_s19 = sphi %s1439_s19, %s15_s19   ;;  %s1394_s18 = sphi %s1437_s18, %s1733_s18   ;;  %s1390_s17 = sphi %s1435_s17, %s1732_s17   ;;  %s1386_s16 = sphi %s1433_s16, %s1731_s16   ;;  %s1382_s15 = sphi %s1431_s15, %s1730_s15  }
   0x4   : > { %p25_p0 = scmp.ge.s32.totalorder %s24_s21, 13  ;;  %s27_s22 = sadd.s32 1, %s1394_s18 }
   0x5   : > { %p1098_p1 = scmp.ge.s32.totalorder %s1398_s19, 1  ;;  %p154_p2 = scmp.lt.s32.totalorder %s1398_s19, 27 }
   0x6   : > { %s1735_s21 = smov (%p25_p0, %s24_s21), 0  ;;  %s1737_s22 = smov (!%p25_p0, %s27_s22), %s1394_s18 }
   0x7   : > { %p1464_p3 = pnand %p1098_p1, %p154_p2  ;;  %p29_p4 = scmp.ge.s32.totalorder %s1737_s22, 2 }
   0x8   : > { %p1468_p5 = scmp.eq.s32.totalorder %s1096_s20, 0  ;;  %s165_s27 = sshll.u32 %s1725_s2, 4  ;;  %s166_s27 = int_to_ptr.hbm [resolvable:$true] %s165_s27 }
   0x9   : > { %p1172_p6 = pneg %p1464_p3  ;;  %s1739_s22 = smov (%p29_p4, %s1737_s22), 0 }
   0xa   : > { %s1400_s28 = smov [#allocation2]   ;;  %s1401_s30 = smov 128  }
   0xb   : > { %s167_s29 = sshll.u32 %s1400_s28, 4  ;;  %p1173_p7 = pnand %p1468_p5, %p1172_p6  ;;  %s168_s29 = int_to_ptr.vmem [resolvable:$true] %s167_s29 }
   0xc   : > { %s1402_s5 = smov 8   ;;  %202 = sbr.rel (%p1464_p3) target bundleno = 374 (0x176), region = 36 }
   0xd   : > { %1175 = dma.hbm_to_vmem [thread:$0]  (!%p1173_p7), %s166_s27, 1280, %s168_s29, [#allocation3], %s1401_s30, %s1401_s30, %s1402_s5  }
  0x11   : > { %1377 = dma.done.wait (%p1468_p5), [#allocation3], 1280  }
  0x12   : > { %1379 = vsyncadd (%p1468_p5), [#allocation3], 4294966016  ;;  %p238_p8 = scmp.lt.s32.totalorder %s1386_s16, 1  ;;  %s1107_s7 = sshll.u32 %s1382_s15, 4  ;;  %v1575_v22 = vld [vmem:[#allocation2] sm:$0xff]  ;;  %vm283_vm0 = vcmask 326656  }
  0x13   : > { %s1403_s23 = smov 127   ;;  %s1404_s24 = smov 126   ;;  %v1581_v23 = vld [vmem:[#allocation2 + $0x10] sm:$0xff]  ;;  %v1585_v24 = vld [vmem:[#allocation2 + $0x8] sm:$0xff]  ;;  %v1591_v25 = vld [vmem:[#allocation2 + $0x18] sm:$0xff]  ;;  %vm973_vm1 = vcmask 105472  }
  0x14   : > { %s1741_s16 = smov (!%p238_p8, %s1386_s16), 1  ;;  %v1595_v44 = vld [vmem:[#allocation2 + $0x20] sm:$0xff]  ;;  %v1599_v50 = vld [vmem:[#allocation2 + $0x30] sm:$0xff]  ;;  %v1609_v54 = vld [vmem:[#allocation2 + $0x28] sm:$0xff]  ;;  %s1105_s29 = sshll.u32 %s1382_s15, 1 }
  0x15   : > { %s1166_s6 = smul.u32 240, %s1741_s16  ;;  %v1614_v59 = vld [vmem:[#allocation2 + $0x38] sm:$0xff]  ;;  %p251_p9 = scmp.lt.s32.totalorder %s1105_s29, 25 }
  0x16   : > { %s1167_s30 = smul.u32 26, %s1741_s16 }
  0x17   : > { %s242_s10 = scalar_lea.vmem %s1723_s0, %s1166_s6  ;;  %s247_s13 = scalar_lea.vmem %s1724_s1, %s1166_s6 }
  0x18   : > { %s1499_s14 = scalar_lea.vmem %s242_s10, %s1107_s7  ;;  %s1501_s20 = scalar_lea.vmem %s247_s13, %s1107_s7 }
  0x19   : > { %v1504_v0 = vld [vmem:[%s1499_s14 + $0x18] sm:$0xff]  ;;  %v1507_v1 = vld [vmem:[%s1499_s14 + $0x20] sm:$0xff]  ;;  %v1518_v6 = vld [vmem:[%s1501_s20 + $0x10] sm:$0xff]  ;;  %s1743_s29 = smov (!%p251_p9, %s1105_s29), 25 }
  0x1a   : > { %v272_v2 = vld [vmem:[%s1499_s14] sm:$0xff]  ;;  %v1224_v3 = vpack.i.bf16 %v1504_v0, %v1507_v1  ;;  %330 = vmatpush.msra.mxu1 %v1507_v1  ;;  %v1524_v7 = vld [vmem:[%s1501_s20 + $0x18] sm:$0xff]  ;;  %v1529_v8 = vld [vmem:[%s1499_s14 + $0x8] sm:$0xff]  ;;  %s254_s15 = sadd.s32 %s1167_s30, %s1743_s29 }
  0x1b   : > { %v1513_v4 = vld [vmem:[%s1501_s20 + $0x20] sm:$0xff]  ;;  %v1532_v9 = vld [vmem:[%s1499_s14 + $0x10] sm:$0xff]  ;;  %v1244_v10 = vpack.i.bf16 %v1518_v6, %v1524_v7  ;;  %v1545_v12 = vld [vmem:[%s1501_s20 + $0x8] sm:$0xff]  ;;  %v1284_v19 = vpack.i.bf16 %v1524_v7, %v1504_v0  ;;  %s1106_s16 = sshll.u32 %s254_s15, 3 }
  0x1c   : > { %v1234_v5 = vpack.i.bf16 %v1513_v4, %v272_v2  ;;  %301 = vmatpush.msra.mxu0 %v1513_v4  ;;  %396 = vmatpush.msra.mxu3 %v1513_v4  ;;  %v1229_v11 = vpack.i.bf16 %v1529_v8, %v1532_v9  ;;  %v278_v13 = vld [vmem:[%s1501_s20] sm:$0xff]  ;;  %v1555_v15 = vld [vmem:[%s1499_s14 + $0x28] sm:$0xff]  ;;  %v1304_v18 = vpack.i.bf16 %v1513_v4, %v1507_v1  ;;  %s256_s7 = scalar_lea.vmem %s1727_s4, %s1106_s16 }
  0x1d   : > { %1225 = vrot.lane.b32.xlu0 %v1224_v3, %s1403_s23  ;;  %331 = vmatpush.msra.mxu1 %v1504_v0  ;;  %v1254_v14 = vpack.i.bf16 %v278_v13, %v1545_v12  ;;  %v1558_v16 = vld [vmem:[%s1501_s20 + $0x28] sm:$0xff]  ;;  %v1289_v20 = vpack.i.bf16 %v1518_v6, %v1532_v9  ;;  %v1319_v21 = vpack.i.bf16 %v1545_v12, %v1529_v8 }
  0x1e   : > { %1235 = vrot.lane.b32.xlu1 %v1234_v5, %s1403_s23  ;;  %302 = vmatpush.msra.mxu0 %v1524_v7  ;;  %v1274_v17 = vpack.i.bf16 %v1558_v16, %v1555_v15 }
  0x1f   : > { %397 = vmatpush.msra.mxu3 %v1524_v7  ;;  %1245 = vrot.lane.b32.xlu2 %v1244_v10, %s1403_s23 }
  0x20   : > { %332 = vmatpush.msra.mxu1 %v1532_v9  ;;  %303 = vmatpush.msra.mxu0 %v1518_v6 }
  0x21   : > { %398 = vmatpush.msra.mxu3 %v1518_v6 }
  0x22   : > { %333 = vmatpush.msra.mxu1 %v1529_v8  ;;  %304 = vmatpush.msra.mxu0 %v1545_v12 }
  0x23   : > { %399 = vmatpush.msra.mxu3 %v1545_v12 }
  0x24   : > { %334 = vmatpush.msra.mxu1 %v272_v2  ;;  %305 = vmatpush.msra.mxu0 %v278_v13 }
  0x25   : > { %1230 = vrot.lane.b32.xlu0 %v1229_v11, %s1403_s23  ;;  %400 = vmatpush.msra.mxu3 %v278_v13 }
  0x26   : > { %1240 = vrot.lane.b32.xlu1 %v1224_v3, %s1404_s24  ;;  %1114 = vmatmul.msk.f32.vlgmr.msra.gmra.mxu3 %vm283_vm0, %v1575_v22 }
  0x27   : > { %1250 = vrot.lane.b32.xlu2 %v1229_v11, %s1404_s24  ;;  %1110 = vmatmul.msk.f32.vlgmr.msra.gmra.mxu1 %vm283_vm0, %v1575_v22 }
  0x28   : > { %1108 = vmatmul.msk.f32.vlgmr.msra.gmra.mxu0 %vm283_vm0, %v1581_v23 }
  0x2d   : > { %1255 = vrot.lane.b32.xlu0 %v1254_v14, %s1403_s23 }
  0x2e   : > { %1260 = vrot.lane.b32.xlu1 %v1234_v5, %s1404_s24  ;;  %1115 = vmatmul.msk.f32.gmra.mxu3 %vm283_vm0, %v1585_v24  ;;  %v1632_v5 = vld [vmem:[#allocation2 + $0x40] sm:$0xff] }
  0x2f   : > { %1265 = vrot.lane.b32.xlu2 %v1244_v10, %s1404_s24  ;;  %1111 = vmatmul.msk.f32.gmra.mxu1 %vm283_vm0, %v1585_v24 }
  0x30   : > { %1109 = vmatmul.msk.f32.gmra.mxu0 %vm283_vm0, %v1591_v25 }
  0x35   : > { %1270 = vrot.lane.b32.xlu0 %v1254_v14, %s1404_s24 }
  0x36   : > { %1275 = vrot.lane.b32.xlu1 %v1274_v17, %s1403_s23 }
  0x37   : > { %1280 = vrot.lane.b32.xlu2 %v1304_v18, %s1403_s23 }
  0x3d   : > { %1285 = vrot.lane.b32.xlu0 %v1284_v19, %s1403_s23 }
  0x3e   : > { %1290 = vrot.lane.b32.xlu1 %v1289_v20, %s1403_s23 }
  0x3f   : > { %1295 = vrot.lane.b32.xlu2 %v1319_v21, %s1403_s23 }
  0x45   : > { %1300 = vrot.lane.b32.xlu0 %v1274_v17, %s1404_s24 }
  0x46   : > { %1305 = vrot.lane.b32.xlu1 %v1304_v18, %s1404_s24  ;;  %v1646_v18 = vld [vmem:[#allocation2 + $0x48] sm:$0xff] }
  0x47   : > { %1310 = vrot.lane.b32.xlu2 %v1284_v19, %s1404_s24 }
  0x4d   : > { %1315 = vrot.lane.b32.xlu0 %v1289_v20, %s1404_s24 }
  0x4e   : > { %1320 = vrot.lane.b32.xlu1 %v1319_v21, %s1404_s24 }
  0x79   : > { %v1246_v26 = vpop.permute.xlu2 %1245 }
  0x7a   : > { %v1247_v31 = vunpack.i.l.bf16 %v1246_v26  ;;  %v1248_v33 = vunpack.i.h.bf16 %v1246_v26 }
  0x81   : > { %v1251_v35 = vpop.permute.xlu2 %1250 }
  0x82   : > { %v1252_v42 = vunpack.i.l.bf16 %v1251_v35  ;;  %v1253_v43 = vunpack.i.h.bf16 %v1251_v35 }
  0x89   : > { %v1266_v46 = vpop.permute.xlu2 %1265 }
  0x8a   : > { %v1267_v53 = vunpack.i.l.bf16 %v1266_v46  ;;  %v1268_v58 = vunpack.i.h.bf16 %v1266_v46 }
  0x8f   : > { %v1226_v27 = vpop.permute.xlu0 %1225 }
  0x90   : > { %v1236_v28 = vpop.permute.xlu1 %1235  ;;  %v1227_v29 = vunpack.i.l.bf16 %v1226_v27  ;;  %v1228_v32 = vunpack.i.h.bf16 %v1226_v27 }
  0x91   : > { %v1238_v30 = vunpack.i.h.bf16 %v1236_v28  ;;  %v1237_v41 = vunpack.i.l.bf16 %v1236_v28  ;;  %v1611_v56 = vpop.permute.xlu2 %1280 }
  0x92   : > { %373 = vmatpush.msra.mxu2 %v1227_v29  ;;  %425 = vmatpush.msrb.mxu0 %v1227_v29  ;;  %v1282_v62 = vunpack.i.l.bf16 %v1611_v56 }
  0x93   : > { %470 = vmatpush.msrb.mxu1 %v1238_v30 }
  0x94   : > { %374 = vmatpush.msra.mxu2 %v1228_v32  ;;  %426 = vmatpush.msrb.mxu0 %v1228_v32  ;;  %v269_v32 = vld [vmem:[%s1726_s3 + $0x8] sm:$0xff] }
  0x95   : > { %471 = vmatpush.msrb.mxu1 %v1247_v31 }
  0x97   : > { %v1231_v34 = vpop.permute.xlu0 %1230  ;;  %472 = vmatpush.msrb.mxu1 %v1248_v33 }
  0x98   : > { %v1241_v36 = vpop.permute.xlu1 %1240  ;;  %v1232_v37 = vunpack.i.l.bf16 %v1231_v34  ;;  %v1233_v40 = vunpack.i.h.bf16 %v1231_v34 }
  0x99   : > { %v1242_v38 = vunpack.i.l.bf16 %v1241_v36  ;;  %v1243_v39 = vunpack.i.h.bf16 %v1241_v36  ;;  %v1296_v10 = vpop.permute.xlu2 %1295 }
  0x9a   : > { %375 = vmatpush.msra.mxu2 %v1232_v37  ;;  %427 = vmatpush.msrb.mxu0 %v1232_v37  ;;  %v1297_v13 = vunpack.i.l.bf16 %v1296_v10  ;;  %v1298_v17 = vunpack.i.h.bf16 %v1296_v10 }
  0x9b   : > { %541 = vmatpush.msrb.mxu3 %v1242_v38 }
  0x9c   : > { %376 = vmatpush.msra.mxu2 %v1233_v40  ;;  %428 = vmatpush.msrb.mxu0 %v1233_v40 }
  0x9d   : > { %542 = vmatpush.msrb.mxu3 %v1243_v39 }
  0x9e   : > { %377 = vmatpush.msra.mxu2 %v1237_v41  ;;  %429 = vmatpush.msrb.mxu0 %v1237_v41 }
  0x9f   : > { %543 = vmatpush.msrb.mxu3 %v1252_v42  ;;  %v1256_v45 = vpop.permute.xlu0 %1255  ;;  %1112 = vmatmul.msk.f32.vlgmr.msra.gmra.mxu2 %vm283_vm0, %v1581_v23 }
  0xa0   : > { %v1261_v47 = vpop.permute.xlu1 %1260  ;;  %501 = vmatpush.msrb.mxu2 %v1238_v30  ;;  %572 = vmatpush.msra.mxu0 %v1242_v38  ;;  %v1257_v48 = vunpack.i.l.bf16 %v1256_v45  ;;  %v1258_v51 = vunpack.i.h.bf16 %v1256_v45 }
  0xa1   : > { %544 = vmatpush.msrb.mxu3 %v1253_v43  ;;  %v1262_v49 = vunpack.i.l.bf16 %v1261_v47  ;;  %1116 = vmatmul.msk.f32.vlgmr.msrb.gmra.mxu0 %vm283_vm0, %v1595_v44  ;;  %v1263_v52 = vunpack.i.h.bf16 %v1261_v47  ;;  %v1311_v20 = vpop.permute.xlu2 %1310 }
  0xa2   : > { %502 = vmatpush.msrb.mxu2 %v1247_v31  ;;  %573 = vmatpush.msra.mxu0 %v1243_v39  ;;  %v1312_v29 = vunpack.i.l.bf16 %v1311_v20  ;;  %v1405_v31 = vmov 0  }
  0xa3   : > { %473 = vmatpush.msrb.mxu1 %v1257_v48  ;;  %545 = vmatpush.msrb.mxu3 %v1262_v49 }
  0xa4   : > { %503 = vmatpush.msrb.mxu2 %v1248_v33  ;;  %1122 = vmatmul.msk.f32.vlgmr.msrb.gmra.mxu3 %vm283_vm0, %v1599_v50 }
  0xa5   : > { %474 = vmatpush.msrb.mxu1 %v1258_v51  ;;  %574 = vmatpush.msra.mxu0 %v1252_v42 }
  0xa6   : > { %1118 = vmatmul.msk.f32.vlgmr.msrb.gmra.mxu1 %vm283_vm0, %v1595_v44  ;;  %504 = vmatpush.msrb.mxu2 %v1257_v48 }
  0xa7   : > { %575 = vmatpush.msra.mxu0 %v1253_v43  ;;  %1113 = vmatmul.msk.f32.gmra.mxu2 %vm283_vm0, %v1591_v25  ;;  %v1271_v55 = vpop.permute.xlu0 %1270 }
  0xa8   : > { %505 = vmatpush.msrb.mxu2 %v1258_v51  ;;  %677 = vmatpush.msra.mxu3 %v1555_v15  ;;  %v1276_v57 = vpop.permute.xlu1 %1275  ;;  %v1272_v61 = vunpack.i.l.bf16 %v1271_v55  ;;  %v1273_v63 = vunpack.i.h.bf16 %v1271_v55 }
  0xa9   : > { %576 = vmatpush.msra.mxu0 %v1262_v49  ;;  %612 = vmatpush.msra.mxu1 %v1263_v52  ;;  %v1277_v60 = vunpack.i.l.bf16 %v1276_v57  ;;  %v1278_v3 = vunpack.i.h.bf16 %v1276_v57  ;;  %v402_v33 = vpop.f32.mrf.mxu3 }
  0xaa   : > { %678 = vmatpush.msra.mxu3 %v1507_v1  ;;  %1117 = vmatmul.msk.f32.gmra.mxu0 %vm283_vm0, %v1609_v54 }
  0xab   : > { %613 = vmatpush.msra.mxu1 %v1267_v53  ;;  %654 = vmatpush.msra.mxu2 %v1558_v16 }
  0xac   : > { %1123 = vmatmul.msk.f32.gmra.mxu3 %vm283_vm0, %v1614_v59  ;;  %720 = vmatpush.msrb.mxu0 %v1277_v60 }
  0xad   : > { %679 = vmatpush.msra.mxu3 %v1504_v0  ;;  %614 = vmatpush.msra.mxu1 %v1268_v58 }
  0xae   : > { %1119 = vmatmul.msk.f32.gmra.mxu1 %vm283_vm0, %v1609_v54  ;;  %655 = vmatpush.msra.mxu2 %v1513_v4 }
  0xaf   : > { %1120 = vmatmul.msk.f32.vlgmr.msrb.gmra.mxu2 %vm283_vm0, %v1599_v50  ;;  %680 = vmatpush.msra.mxu3 %v1532_v9  ;;  %v1286_v1 = vpop.permute.xlu0 %1285  ;;  %v1283_v9 = vunpack.i.h.bf16 %v1611_v56 }
  0xb0   : > { %615 = vmatpush.msra.mxu1 %v1272_v61  ;;  %656 = vmatpush.msra.mxu2 %v1524_v7  ;;  %v1287_v2 = vunpack.i.l.bf16 %v1286_v1  ;;  %v1291_v0 = vpop.permute.xlu1 %1290 }
  0xb1   : > { %681 = vmatpush.msra.mxu3 %v1529_v8  ;;  %721 = vmatpush.msrb.mxu0 %v1282_v62  ;;  %v1292_v11 = vunpack.i.l.bf16 %v1291_v0  ;;  %v1288_v8 = vunpack.i.h.bf16 %v1286_v1  ;;  %v1293_v14 = vunpack.i.h.bf16 %v1291_v0  ;;  %v405_v36 = vpop.f32.mrf.mxu3 }
  0xb2   : > { %616 = vmatpush.msra.mxu1 %v1273_v63  ;;  %1124 = vmatmul.msk.f32.vlgmr.msra.gmra.mxu0 %vm283_vm0, %v1632_v5 }
  0xb3   : > { %657 = vmatpush.msra.mxu2 %v1518_v6  ;;  %722 = vmatpush.msrb.mxu0 %v1287_v2 }
  0xb4   : > { %1144 = vmatmul.msk.f32.vlgmr.msra.gmra.mxu3 %vm283_vm0, %v1575_v22  ;;  %743 = vmatpush.msrb.mxu1 %v1558_v16 }
  0xb5   : > { %811 = vmatpush.msrb.mxu3 %v1278_v3  ;;  %658 = vmatpush.msra.mxu2 %v1545_v12 }
  0xb6   : > { %1126 = vmatmul.msk.f32.vlgmr.msra.gmra.mxu1 %vm283_vm0, %v1632_v5  ;;  %723 = vmatpush.msrb.mxu0 %v1292_v11 }
  0xb7   : > { %1121 = vmatmul.msk.f32.gmra.mxu2 %vm283_vm0, %v1614_v59  ;;  %812 = vmatpush.msrb.mxu3 %v1283_v9  ;;  %v1301_v15 = vpop.permute.xlu0 %1300 }
  0xb8   : > { %724 = vmatpush.msrb.mxu0 %v1297_v13  ;;  %766 = vmatpush.msrb.mxu2 %v1277_v60  ;;  %v1306_v16 = vpop.permute.xlu1 %1305  ;;  %v1303_v19 = vunpack.i.h.bf16 %v1301_v15  ;;  %v1302_v21 = vunpack.i.l.bf16 %v1301_v15 }
  0xb9   : > { %813 = vmatpush.msrb.mxu3 %v1288_v8  ;;  %744 = vmatpush.msrb.mxu1 %v1513_v4  ;;  %v1308_v4 = vunpack.i.h.bf16 %v1306_v16  ;;  %v1307_v27 = vunpack.i.l.bf16 %v1306_v16 }
  0xba   : > { %836 = vmatpush.msra.mxu0 %v1278_v3  ;;  %767 = vmatpush.msrb.mxu2 %v1282_v62 }
  0xbb   : > { %1125 = vmatmul.msk.f32.gmra.mxu0 %vm283_vm0, %v1646_v18  ;;  %814 = vmatpush.msrb.mxu3 %v1293_v14 }
  0xbc   : > { %1145 = vmatmul.msk.f32.gmra.mxu3 %vm283_vm0, %v1585_v24  ;;  %745 = vmatpush.msrb.mxu1 %v1524_v7  ;;  %v1313_v7 = vunpack.i.h.bf16 %v1311_v20 }
  0xbd   : > { %815 = vmatpush.msrb.mxu3 %v1298_v17  ;;  %837 = vmatpush.msra.mxu0 %v1283_v9 }
  0xbe   : > { %1127 = vmatmul.msk.f32.gmra.mxu1 %vm283_vm0, %v1646_v18  ;;  %768 = vmatpush.msrb.mxu2 %v1287_v2 }
  0xbf   : > { %1142 = vmatmul.msk.f32.vlgmr.msra.gmra.mxu2 %vm283_vm0, %v1581_v23  ;;  %746 = vmatpush.msrb.mxu1 %v1518_v6  ;;  %v1316_v26 = vpop.permute.xlu0 %1315 }
  0xc0   : > { %838 = vmatpush.msra.mxu0 %v1288_v8  ;;  %769 = vmatpush.msrb.mxu2 %v1292_v11  ;;  %v1321_v28 = vpop.permute.xlu1 %1320  ;;  %v1318_v6 = vunpack.i.h.bf16 %v1316_v26 }
  0xc1   : > { %747 = vmatpush.msrb.mxu1 %v1545_v12  ;;  %941 = vmatpush.msra.mxu3 %v1303_v19  ;;  %v1323_v12 = vunpack.i.h.bf16 %v1321_v28  ;;  %v1322_v30 = vunpack.i.l.bf16 %v1321_v28 }
  0xc2   : > { %770 = vmatpush.msrb.mxu2 %v1297_v13  ;;  %839 = vmatpush.msra.mxu0 %v1293_v14 }
  0xc3   : > { %1146 = vmatmul.msk.f32.vlgmr.msrb.gmra.mxu0 %vm283_vm0, %v1581_v23  ;;  %942 = vmatpush.msra.mxu3 %v1308_v4  ;;  %v1317_v23 = vunpack.i.l.bf16 %v1316_v26 }
  0xc4   : > { %1152 = vmatmul.msk.f32.vlgmr.msrb.gmra.mxu3 %vm283_vm0, %v1595_v44  ;;  %876 = vmatpush.msra.mxu1 %v1302_v21 }
  0xc5   : > { %840 = vmatpush.msra.mxu0 %v1298_v17  ;;  %943 = vmatpush.msra.mxu3 %v1313_v7 }
  0xc6   : > { %1148 = vmatmul.msk.f32.vlgmr.msrb.gmra.mxu1 %vm283_vm0, %v1575_v22  ;;  %901 = vmatpush.msra.mxu2 %v1302_v21  ;;  %v268_v22 = vld [vmem:[%s1726_s3] sm:$0xff] }
  0xc7   : > { %1143 = vmatmul.msk.f32.gmra.mxu2 %vm283_vm0, %v1591_v25  ;;  %877 = vmatpush.msra.mxu1 %v1307_v27 }
  0xc8   : > { %944 = vmatpush.msra.mxu3 %v1318_v6  ;;  %902 = vmatpush.msra.mxu2 %v1307_v27 }
  0xc9   : > { %878 = vmatpush.msra.mxu1 %v1312_v29  ;;  %1325 = vset.pattern.permute.xlu0 %v1405_v31 }
  0xca   : > { %945 = vmatpush.msra.mxu3 %v1323_v12  ;;  %903 = vmatpush.msra.mxu2 %v1312_v29 }
  0xcb   : > { %1147 = vmatmul.msk.f32.gmra.mxu0 %vm283_vm0, %v1591_v25  ;;  %879 = vmatpush.msra.mxu1 %v1317_v23  ;;  %v336_v25 = vpop.f32.mrf.mxu1 }
  0xcc   : > { %1153 = vmatmul.msk.f32.gmra.mxu3 %vm283_vm0, %v1609_v54  ;;  %966 = vperm.xlu0 %1325, %v269_v32  }
  0xcd   : > { %880 = vmatpush.msra.mxu1 %v1322_v30  ;;  %904 = vmatpush.msra.mxu2 %v1317_v23 }
  0xce   : > { %1149 = vmatmul.msk.f32.gmra.mxu1 %vm283_vm0, %v1585_v24  ;;  %1324 = vset.pattern.permute.xlu2 %v1405_v31  ;;  %v307_v24 = vpop.f32.mrf.mxu0 }
  0xcf   : > { %1150 = vmatmul.msk.f32.vlgmr.msrb.gmra.mxu2 %vm283_vm0, %v1595_v44  ;;  %961 = vperm.xlu2 %1324, %v268_v22   ;;  %v337_v62 = vadd.f32 %v336_v25, %v307_v24 }
  0xd0   : > { %905 = vmatpush.msra.mxu2 %v1322_v30 }
  0xd3   : > { %1154 = vmatmul.msk.f32.vlgmr.msra.gmra.mxu0 %vm283_vm0, %v1599_v50  ;;  %v339_v35 = vpop.f32.mrf.mxu1 }
  0xd4   : > { %1160 = vmatmul.msk.f32.vlgmr.msra.gmra.mxu3 %vm283_vm0, %v1632_v5 }
  0xd6   : > { %1156 = vmatmul.msk.f32.vlgmr.msra.gmra.mxu1 %vm283_vm0, %v1599_v50  ;;  %v310_v34 = vpop.f32.mrf.mxu0 }
  0xd7   : > { %1151 = vmatmul.msk.f32.gmra.mxu2 %vm283_vm0, %v1609_v54  ;;  %v340_v14 = vadd.f32 %v339_v35, %v310_v34 }
  0xdb   : > { %1155 = vmatmul.msk.f32.gmra.mxu0 %vm283_vm0, %v1614_v59 }
  0xdc   : > { %1161 = vmatmul.msk.f32.gmra.mxu3 %vm283_vm0, %v1646_v18 }
  0xde   : > { %1157 = vmatmul.msk.f32.gmra.mxu1 %vm283_vm0, %v1614_v59 }
  0xdf   : > { %1158 = vmatmul.msk.f32.vlgmr.msra.gmra.mxu2 %vm283_vm0, %v1632_v5 }
  0xe7   : > { %1159 = vmatmul.msk.f32.gmra.mxu2 %vm283_vm0, %v1646_v18 }
 0x11e   : > { %v431_v38 = vpop.f32.mrf.mxu0 }
 0x11f   : > { %v437_v3 = vadd.f32 %v431_v38, %v337_v62 }
 0x122   : > { %v379_v37 = vpop.f32.mrf.mxu2 }
 0x123   : > { %v476_v39 = vpop.f32.mrf.mxu1  ;;  %v403_v1 = vadd.f32 %v402_v33, %v379_v37 }
 0x125   : > { %v482_v11 = vadd.f32 %v476_v39, %v403_v1 }
 0x127   : > { %v547_v40 = vpop.f32.mrf.mxu3  ;;  %v434_v43 = vpop.f32.mrf.mxu0 }
 0x128   : > { %v553_v16 = vadd.f32 %v547_v40, %v482_v11  ;;  %v438_v21 = vadd.f32 %v434_v43, %v340_v14 }
 0x129   : > { %v962_v25 = vpop.permute.xlu2 %961 }
 0x12a   : > { %v382_v41 = vpop.f32.mrf.mxu2 }
 0x12b   : > { %v479_v42 = vpop.f32.mrf.mxu1  ;;  %v406_v19 = vadd.f32 %v405_v36, %v382_v41 }
 0x12d   : > { %v483_v12 = vadd.f32 %v479_v42, %v406_v19 }
 0x12f   : > { %v550_v44 = vpop.f32.mrf.mxu3  ;;  %v578_v47 = vpop.f32.mrf.mxu0 }
 0x130   : > { %v554_v36 = vadd.f32 %v550_v44, %v483_v12 }
 0x132   : > { %v507_v45 = vpop.f32.mrf.mxu2 }
 0x133   : > { %v618_v46 = vpop.f32.mrf.mxu1  ;;  %v513_v13 = vadd.f32 %v507_v45, %v437_v3 }
 0x134   : > { %v624_v7 = vadd.f32 %v618_v46, %v553_v16 }
 0x135   : > { %v584_v20 = vadd.f32 %v578_v47, %v513_v13 }
 0x137   : > { %v683_v48 = vpop.f32.mrf.mxu3  ;;  %v626_v30 = vmax.f32 %v584_v20, %v624_v7 }
 0x138   : > { %v581_v51 = vpop.f32.mrf.mxu0 }
 0x13a   : > { %v510_v49 = vpop.f32.mrf.mxu2 }
 0x13b   : > { %v1700_v50 = vpop.f32.mrf.mxu1  ;;  %v514_v31 = vadd.f32 %v510_v49, %v438_v21 }
 0x13c   : > { %v625_v41 = vadd.f32 %v1700_v50, %v554_v36 }
 0x13d   : > { %v585_v37 = vadd.f32 %v581_v51, %v514_v31 }
 0x13f   : > { %v686_v52 = vpop.f32.mrf.mxu3  ;;  %v627_v46 = vmax.f32 %v585_v37, %v625_v41 }
 0x140   : > { %v726_v55 = vpop.f32.mrf.mxu0 }
 0x142   : > { %v660_v53 = vpop.f32.mrf.mxu2 }
 0x143   : > { %v749_v54 = vpop.f32.mrf.mxu1  ;;  %v684_v5 = vadd.f32 %v683_v48, %v660_v53  ;;  %v967_v48 = vpop.permute.xlu0 %966 }
 0x144   : > { %v750_v63 = vadd.f32 %v749_v54, %v726_v55 }
 0x147   : > { %v817_v56 = vpop.f32.mrf.mxu3 }
 0x148   : > { %v729_v59 = vpop.f32.mrf.mxu0  ;;  %v823_v10 = vadd.f32 %v817_v56, %v750_v63 }
 0x14a   : > { %v663_v57 = vpop.f32.mrf.mxu2 }
 0x14b   : > { %v752_v58 = vpop.f32.mrf.mxu1  ;;  %v687_v27 = vadd.f32 %v686_v52, %v663_v57 }
 0x14c   : > { %v753_v17 = vadd.f32 %v752_v58, %v729_v59 }
 0x14f   : > { %v820_v61 = vpop.f32.mrf.mxu3 }
 0x150   : > { %v842_v9 = vpop.f32.mrf.mxu0  ;;  %v824_v28 = vadd.f32 %v820_v61, %v753_v17 }
 0x152   : > { %v772_v60 = vpop.f32.mrf.mxu2 }
 0x153   : > { %v882_v2 = vpop.f32.mrf.mxu1  ;;  %v778_v8 = vadd.f32 %v772_v60, %v684_v5 }
 0x154   : > { %v888_v18 = vadd.f32 %v882_v2, %v823_v10 }
 0x155   : > { %v848_v4 = vadd.f32 %v842_v9, %v778_v8 }
 0x157   : > { %v947_v15 = vpop.f32.mrf.mxu3 }
 0x158   : > { %v953_v6 = vadd.f32 %v947_v15, %v888_v18  ;;  %v845_v24 = vpop.f32.mrf.mxu0 }
 0x15a   : > { %v775_v0 = vpop.f32.mrf.mxu2 }
 0x15b   : > { %v885_v23 = vpop.f32.mrf.mxu1  ;;  %v779_v32 = vadd.f32 %v775_v0, %v687_v27 }
 0x15c   : > { %v889_v33 = vadd.f32 %v885_v23, %v824_v28 }
 0x15d   : > { %v849_v38 = vadd.f32 %v845_v24, %v779_v32 }
 0x15f   : > { %v950_v35 = vpop.f32.mrf.mxu3 }
 0x160   : > { %v954_v42 = vadd.f32 %v950_v35, %v889_v33 }
 0x162   : > { %v907_v26 = vpop.f32.mrf.mxu2 }
 0x163   : > { %v913_v29 = vadd.f32 %v907_v26, %v848_v4 }
 0x165   : > { %v955_v22 = vmax.f32 %v913_v29, %v953_v6 }
 0x167   : > { %v957_v34 = vmax.f32 %v626_v30, %v955_v22 }
 0x169   : > { %v969_v39 = vadd.f32 %v962_v25, %v957_v34 }
 0x16a   : > { %v910_v40 = vpop.f32.mrf.mxu2 }
 0x16b   : > { %v971_v43 = vmax.f32 %v969_v39, 0.0  ;;  %v914_v45 = vadd.f32 %v910_v40, %v849_v38 }
 0x16d   : > { %974 = vst.msk [vmem:[%s256_s7] sm:$0xff] %vm973_vm1, %v971_v43  ;;  %v956_v47 = vmax.f32 %v914_v45, %v954_v42 }
 0x16f   : > { %v958_v49 = vmax.f32 %v627_v46, %v956_v47 }
 0x171   : > { %v970_v44 = vadd.f32 %v967_v48, %v958_v49 }
 0x173   : > { %v972_v51 = vmax.f32 %v970_v44, 0.0 }
 0x175   : > { %975 = vst.msk [vmem:[%s256_s7 + $0x8] sm:$0xff] %vm973_vm1, %v972_v51 }
 0x176 PF: > { %s15_s19 = sadd.s32 1, %s1398_s19   ;;  %s1730_s15 = smov %s1390_s17 }
 0x177   : > { %p12_p10 = scmp.ge.s32.totalorder %s15_s19, 28   ;;  %s1731_s16 = smov %s1394_s18 }
 0x178   : > { %s1732_s17 = smov %s1735_s21  ;;  %s1733_s18 = smov %s1739_s22 }
 0x179   :  { %14 = sbr.rel (!%p12_p10) target bundleno = 3 (0x3), region = 78 }
 0x17e   :  { %1006 = vsyncpa [#allocation3], 1 }
 0x17f   :  { %1008 = vsyncpa [#allocation3 + $0x1], 1 }

// kernel: lenet_forward.9
= control target key start
LH: loop header
LB: loop body
LE: loop exit
PB: predicated region body
PF: predicated region fallthrough
CT: control target
= control target key end

     0   :  { %9 = vsyncpa [#allocation3], 0  ;;  %s291_s0 = inlined_call_operand.vmem [shape: f32[2,2,128], index: 0, kind: input, shape index: {}]   ;;  %s292_s1 = inlined_call_operand.hbm [shape: f32[1,128], index: 1, kind: input, shape index: {}]   ;;  %s293_s2 = inlined_call_operand.vmem [shape: f32[128,2], index: 2, kind: input, shape index: {}]   ;;  %s294_s3 = inlined_call_operand.hbm [shape: f32[1,2], index: 3, kind: input, shape index: {}]   ;;  %s295_s4 = inlined_call_operand.hbm [shape: f32[2,2], index: 4, kind: output, shape index: {}]  }
   0x1   :  { %10 = vsyncpa [#allocation6], 0 }
   0x2   :  { %11 = vsyncpa [#allocation4], 0  ;;  %s19_s17 = sshll.u32 %s292_s1, 4  ;;  %s200_s18 = smov [#allocation2]   ;;  %s20_s17 = int_to_ptr.hbm [resolvable:$true] %s19_s17 }
   0x3   :  { %s21_s19 = sshll.u32 %s200_s18, 4  ;;  %s32_s22 = sshll.u32 %s294_s3, 4  ;;  %s22_s19 = int_to_ptr.vmem [resolvable:$true] %s21_s19  ;;  %s33_s22 = int_to_ptr.hbm [resolvable:$true] %s32_s22 }
   0x4   :  { %24 = dma.hbm_to_vmem [thread:$0]  %s20_s17, 16, %s22_s19, [#allocation3]  }
   0x5   :  { %s201_s23 = smov [#allocation5]  }
   0x6   :  { %s34_s24 = sshll.u32 %s201_s23, 4  ;;  %s35_s24 = int_to_ptr.vmem [resolvable:$true] %s34_s24 }
   0x7   :  { %37 = dma.hbm_to_vmem [thread:$0]  %s33_s22, 16, %s35_s24, [#allocation6]  }
   0x8   :  { %194 = dma.done.wait [#allocation3], 16  }
   0x9   :  { %195 = vsyncadd [#allocation3], 4294967280 }
   0xa   :  { %196 = dma.done.wait [#allocation6], 16  }
   0xb   :  { %197 = vsyncadd [#allocation6], 4294967280  ;;  %v71_v0 = vld [vmem:[%s293_s2 + $0x78] sm:$0xff]  ;;  %v70_v1 = vld [vmem:[%s293_s2 + $0x70] sm:$0xff]  ;;  %s202_s30 = smov [#allocation7]   ;;  %s105_s8 = sshll.u32 %s295_s4, 4  ;;  %s106_s8 = int_to_ptr.hbm [resolvable:$true] %s105_s8 }
   0xc   :  { %76 = vmatpush.msra.mxu0 %v71_v0  ;;  %v69_v2 = vld [vmem:[%s293_s2 + $0x68] sm:$0xff]  ;;  %v68_v3 = vld [vmem:[%s293_s2 + $0x60] sm:$0xff]  ;;  %v67_v4 = vld [vmem:[%s293_s2 + $0x58] sm:$0xff]  ;;  %s103_s5 = sshll.u32 %s202_s30, 4  ;;  %vm96_vm0 = vcmask 9216   ;;  %s104_s5 = int_to_ptr.vmem [resolvable:$true] %s103_s5 }
   0xd   :  { %v66_v5 = vld [vmem:[%s293_s2 + $0x50] sm:$0xff]  ;;  %v65_v6 = vld [vmem:[%s293_s2 + $0x48] sm:$0xff]  ;;  %v64_v7 = vld [vmem:[%s293_s2 + $0x40] sm:$0xff] }
   0xe   :  { %77 = vmatpush.msra.mxu0 %v70_v1  ;;  %v63_v8 = vld [vmem:[%s293_s2 + $0x38] sm:$0xff]  ;;  %v62_v9 = vld [vmem:[%s293_s2 + $0x30] sm:$0xff]  ;;  %v46_v10 = vld [vmem:[%s291_s0] sm:$0x3] }
   0xf   :  { %v116_v11 = vld [vmem:[%s291_s0 + $0x2] sm:$0x3]  ;;  %v61_v12 = vld [vmem:[%s293_s2 + $0x28] sm:$0xff]  ;;  %v120_v15 = vld [vmem:[#allocation2] ss:$0 sm:$0xff] }
  0x10   :  { %78 = vmatpush.msra.mxu0 %v69_v2  ;;  %v60_v13 = vld [vmem:[%s293_s2 + $0x20] sm:$0xff]  ;;  %v49_v14 = vadd.f32 %v116_v11, %v46_v10  ;;  %v59_v16 = vld [vmem:[%s293_s2 + $0x18] sm:$0xff]  ;;  %v58_v17 = vld [vmem:[%s293_s2 + $0x10] sm:$0xff] }
  0x11   :  { %v57_v19 = vld [vmem:[%s293_s2 + $0x8] sm:$0xff]  ;;  %v56_v20 = vld [vmem:[%s293_s2] sm:$0xff] }
  0x12   :  { %79 = vmatpush.msra.mxu0 %v68_v3  ;;  %v54_v18 = vadd.f32 %v120_v15, %v49_v14  ;;  %v121_v22 = vld [vmem:[#allocation5] ss:$0 sm:$0xff] }
  0x14   :  { %80 = vmatpush.msra.mxu0 %v67_v4  ;;  %v55_v21 = vmax.f32 %v54_v18, 0.0 }
  0x16   :  { %81 = vmatpush.msra.mxu0 %v66_v5 }
  0x18   :  { %82 = vmatpush.msra.mxu0 %v65_v6 }
  0x1a   :  { %83 = vmatpush.msra.mxu0 %v64_v7 }
  0x1c   :  { %84 = vmatpush.msra.mxu0 %v63_v8 }
  0x1e   :  { %85 = vmatpush.msra.mxu0 %v62_v9 }
  0x20   :  { %86 = vmatpush.msra.mxu0 %v61_v12 }
  0x22   :  { %87 = vmatpush.msra.mxu0 %v60_v13 }
  0x24   :  { %88 = vmatpush.msra.mxu0 %v59_v16 }
  0x26   :  { %89 = vmatpush.msra.mxu0 %v58_v17 }
  0x28   :  { %90 = vmatpush.msra.mxu0 %v57_v19 }
  0x2a   :  { %91 = vmatpush.msra.mxu0 %v56_v20 }
  0x2b   :  { %92 = vmatmul.f32.vlgmr.msra.gmra.mxu0 %v55_v21 }
  0xa8   :  { %v93_v23 = vpop.f32.mrf.mxu0 }
  0xa9   :  { %v94_v24 = vadd.f32 %v121_v22, %v93_v23 }
  0xab   :  { %97 = vst.msk [vmem:[#allocation7] sm:$0x3] %vm96_vm0, %v94_v24 }
  0xac   :  { %108 = dma.vmem_to_hbm [thread:$0]  %s104_s5, 32, %s106_s8, [#allocation4]  }
  0xad   :  { %198 = dma.done.wait [#allocation4], 32  }
  0xae   :  { %199 = vsyncadd [#allocation4], 4294967264 }
  0xaf   :  { %113 = vsyncpa [#allocation3], 1 }
  0xb0   :  { %114 = vsyncpa [#allocation6], 1 }
  0xb1   :  { %115 = vsyncpa [#allocation4], 1 }

// kernel: lenet_forward.8
= control target key start
LH: loop header
LB: loop body
LE: loop exit
PB: predicated region body
PF: predicated region fallthrough
CT: control target
= control target key end

     0   :  { %7 = vsyncpa [#allocation3], 0  ;;  %s4122_s0 = inlined_call_operand.vmem [shape: bf16[2,10368], index: 0, kind: input, shape index: {}]   ;;  %s4123_s1 = inlined_call_operand.hbm [shape: bf16[10368,128], index: 1, kind: input, shape index: {}]   ;;  %s4124_s2 = inlined_call_operand.vmem [shape: f32[2,2,128], index: 2, kind: output, shape index: {}]  }
   0x1   :  { %9 = vsyncpa [#allocation3 + $0x1], 0  ;;  %s3775_s9 = smov 0   ;;  %s3777_s10 = smov 0  }
   0x2   :  { %s3779_s11 = smov 0   ;;  %s3781_s12 = smov 0  }
   0x3   :  { %s3783_s13 = smov 0   ;;  %s3785_s14 = smov 0  }
   0x4   :  { %s3787_s15 = smov 0   ;;  %s3789_s16 = smov 0  }
   0x5 LB: > { %s2484_s17 = sadd.s32 4294967295, %s3755_s16   ;;  %s24_s18 = sadd.s32 1, %s3747_s14  ;;  %s3755_s16 = sphi %s3789_s16, %s15_s16   ;;  %s3751_s15 = sphi %s3787_s15, %s4133_s15   ;;  %s3747_s14 = sphi %s3785_s14, %s4132_s14   ;;  %s3743_s13 = sphi %s3783_s13, %s4131_s13   ;;  %s3739_s12 = sphi %s3781_s12, %s4130_s12   ;;  %s3735_s11 = sphi %s3779_s11, %s4129_s11   ;;  %s3731_s10 = sphi %s3777_s10, %s4128_s10   ;;  %s3727_s9 = sphi %s3775_s9, %s4127_s9  }
   0x6   : > { %p25_p0 = scmp.ge.s32.totalorder %s24_s18, 2  ;;  %s27_s19 = sadd.s32 1, %s3751_s15 }
   0x7   : > { %s2488_s20 = sshll.u32 %s3751_s15, 1  ;;  %s76_s21 = sadd.s32 1, %s3735_s11 }
   0x8   : > { %s4135_s18 = smov (%p25_p0, %s24_s18), 0  ;;  %s4137_s19 = smov (!%p25_p0, %s27_s19), %s3751_s15 }
   0x9   : > { %s66_s22 = sadd.s32 %s3747_s14, %s2488_s20  ;;  %p83_p1 = scmp.ne.s32.totalorder %s3735_s11, %s3731_s10 }
   0xa   : > { %p29_p2 = scmp.ge.s32.totalorder %s4137_s19, 2  ;;  %p67_p3 = scmp.lt.s32.totalorder %s66_s22, 2 }
   0xb   : > { %p84_p4 = scmp.eq.s32.totalorder %s3755_s16, 0  ;;  %p89_p5 = scmp.ne.s32.totalorder %s3731_s10, %s3727_s9 }
   0xc   : > { %s4139_s19 = smov (%p29_p2, %s4137_s19), 0  ;;  %s4141_s22 = smov (!%p67_p3, %s66_s22), 2 }
   0xd   : > { %s2489_s23 = sshll.u32 %s4139_s19, 1  ;;  %p3829_p6 = por %p84_p4, %p83_p1 }
   0xe   : > { %s70_s25 = sadd.s32 %s2489_s23, %s4135_s18  ;;  %p90_p7 = scmp.eq.s32.totalorder %s2484_s17, 0 }
   0xf   : > { %p71_p8 = scmp.lt.s32.totalorder %s70_s25, 2  ;;  %p3591_p10 = scmp.lt.s32.totalorder %s3755_s16, 4 }
  0x10   : > { %p3834_p9 = por %p90_p7, %p89_p5  ;;  %s155_s27 = sand.u32 1, %s3735_s11  }
  0x11   : > { %s4143_s25 = smov (!%p71_p8, %s70_s25), 2  ;;  %s3366_s28 = smul.u32 1728, %s4141_s22 }
  0x12   : > { %s73_s29 = ssub.s32 %s4141_s22, %s4143_s25  ;;  %s3583_s30 = smul.u32 1728, %s155_s27 }
  0x13   : > { %p74_p11 = scmp.eq.s32.totalorder %s73_s29, 0  ;;  %s168_s5 = scalar_lea.hbm %s4123_s1, %s3366_s28 }
  0x14   : > { %p3588_p12 = pnand %p3591_p10, %p3829_p6  ;;  %s169_s7 = sshll.u32 %s168_s5, 4  ;;  %s170_s7 = int_to_ptr.hbm [resolvable:$true] %s169_s7 }
  0x15   : > { %s3846_s6 = scalar_select %p74_p11, %s3735_s11, %s76_s21  }
  0x16   : > { %s159_s8 = scalar_lea.vmem [#allocation2], %s3583_s30  ;;  %s156_s17 = scalar_lea.sflag [#allocation3], %s155_s27 }
  0x17   : > { %s171_s9 = sshll.u32 %s159_s8, 4  ;;  %s3757_s20 = smov 64   ;;  %s172_s9 = int_to_ptr.vmem [resolvable:$true] %s171_s9 }
  0x18   : > { %s3758_s23 = smov 4   ;;  %p2494_p13 = scmp.ge.s32.totalorder %s3755_s16, 1 }
  0x19   : > { %3590 = dma.hbm_to_vmem [thread:$0]  (!%p3588_p12), %s170_s7, 27648, %s172_s9, %s156_s17, %s3757_s20, %s3757_s20, %s3758_s23  }
  0x1a   : > { %p179_p0 = scmp.lt.s32.totalorder %s3755_s16, 5 }
  0x1c   : > { %p180_p1 = pnand %p2494_p13, %p179_p0 }
  0x1d   : > { %s185_s22 = sand.u32 (!%p180_p1), 1, %s3731_s10  }
  0x1e   : > { %183 = sbr.rel (%p180_p1) target bundleno = 423 (0x1a7), region = 28  ;;  %s186_s25 = scalar_lea.sflag (!%p180_p1), [#allocation3], %s185_s22 }
  0x1f   : > { %s3584_s24 = smul.u32 (!%p180_p1), 1728, %s185_s22 }
  0x21   : > { %s3851_s21 = scalar_lea.vmem (!%p180_p1), [#allocation2], %s3584_s24 }
  0x23   : > { %3722 = dma.done.wait (%p3834_p9), %s186_s25, 27648  }
  0x24   : > { %3724 = vsyncadd (%p3834_p9), %s186_s25, 4294939648  ;;  %s2495_s27 = sshll.u32 %s3743_s13, 1  ;;  %p236_p2 = scmp.lt.s32.totalorder %s3743_s13, 1 }
  0x25   : > { %s219_s28 = sadd.s32 %s3739_s12, %s2495_s27  ;;  %p2497_p5 = scmp.ne.s32.totalorder %s3739_s12, 0 }
  0x26   : > { %p220_p3 = scmp.lt.s32.totalorder %s219_s28, 2  ;;  %s4145_s13 = smov (!%p236_p2, %s3743_s13), 1 }
  0x27   : > { %s2496_s30 = sshll.u32 %s4145_s13, 1 }
  0x28   : > { %s221_s29 = scalar_select %p220_p3, %s219_s28, 2 }
  0x29   : > { %s3864_s7 = scalar_lea.vmem %s4124_s2, %s2496_s30 }
  0x2a   : > { %s222_s3 = smul.u32 27, %s221_s29 }
  0x2b   : > { %243 = sbr.rel (%p2497_p5) target bundleno = 50 (0x32), region = 36 }
  0x2c   : > { %p223_p4 = scmp.lt.s32.totalorder %s222_s3, 80 }
  0x2e   : > { %s4147_s3 = smov (!%p223_p4, %s222_s3), 80 }
  0x2f   : > { %s3869_s9 = scalar_lea.vmem %s4122_s0, %s4147_s3 }
  0x30   : > { %v3759_v0 = vmov 0.0  }
  0x31   : > { %244 = vst [vmem:[%s3864_s7] sm:$0x3] %v3759_v0 }
  0x32 PF: > { %p2499_p6 = scmp.ge.s32.totalorder %s219_s28, 3 }
  0x34   : > { %250 = sbr.rel (%p2499_p6) target bundleno = 423 (0x1a7), region = 40 }
  0x39   : > { %v3374_v1 = vld [vmem:[%s3851_s21 + $0x38] sm:$0xff]  ;;  %v3373_v5 = vld [vmem:[%s3851_s21 + $0x30] sm:$0xff]  ;;  %v3372_v9 = vld [vmem:[%s3851_s21 + $0x28] sm:$0xff] }
  0x3a   : > { %v3382_v2 = vld [vmem:[%s3851_s21 + $0x78] sm:$0xff]  ;;  %2046 = vmatpush.bf16.msra.mxu0 %v3374_v1  ;;  %v3381_v6 = vld [vmem:[%s3851_s21 + $0x70] sm:$0xff]  ;;  %v3380_v10 = vld [vmem:[%s3851_s21 + $0x68] sm:$0xff] }
  0x3b   : > { %v3390_v3 = vld [vmem:[%s3851_s21 + $0xb8] sm:$0xff]  ;;  %2059 = vmatpush.bf16.msra.mxu1 %v3382_v2  ;;  %v3389_v7 = vld [vmem:[%s3851_s21 + $0xb0] sm:$0xff]  ;;  %v3388_v11 = vld [vmem:[%s3851_s21 + $0xa8] sm:$0xff] }
  0x3c   : > { %v3398_v4 = vld [vmem:[%s3851_s21 + $0xf8] sm:$0xff]  ;;  %2072 = vmatpush.bf16.msra.mxu2 %v3390_v3  ;;  %v3397_v8 = vld [vmem:[%s3851_s21 + $0xf0] sm:$0xff]  ;;  %v3396_v12 = vld [vmem:[%s3851_s21 + $0xe8] sm:$0xff] }
  0x3d   : > { %2085 = vmatpush.bf16.msra.mxu3 %v3398_v4  ;;  %v3371_v13 = vld [vmem:[%s3851_s21 + $0x20] sm:$0xff]  ;;  %v3370_v17 = vld [vmem:[%s3851_s21 + $0x18] sm:$0xff]  ;;  %v3369_v22 = vld [vmem:[%s3851_s21 + $0x10] sm:$0xff] }
  0x3e   : > { %2047 = vmatpush.bf16.msra.mxu0 %v3373_v5  ;;  %v3379_v14 = vld [vmem:[%s3851_s21 + $0x60] sm:$0xff]  ;;  %v3378_v18 = vld [vmem:[%s3851_s21 + $0x58] sm:$0xff]  ;;  %v3377_v23 = vld [vmem:[%s3851_s21 + $0x50] sm:$0xff] }
  0x3f   : > { %2060 = vmatpush.bf16.msra.mxu1 %v3381_v6  ;;  %v3387_v15 = vld [vmem:[%s3851_s21 + $0xa0] sm:$0xff]  ;;  %v3386_v19 = vld [vmem:[%s3851_s21 + $0x98] sm:$0xff]  ;;  %v3385_v24 = vld [vmem:[%s3851_s21 + $0x90] sm:$0xff] }
  0x40   : > { %2073 = vmatpush.bf16.msra.mxu2 %v3389_v7  ;;  %v3395_v16 = vld [vmem:[%s3851_s21 + $0xe0] sm:$0xff]  ;;  %v3394_v20 = vld [vmem:[%s3851_s21 + $0xd8] sm:$0xff]  ;;  %v3393_v25 = vld [vmem:[%s3851_s21 + $0xd0] sm:$0xff] }
  0x41   : > { %2086 = vmatpush.bf16.msra.mxu3 %v3397_v8  ;;  %v252_v21 = vld [vmem:[%s3869_s9] sm:$0xff]  ;;  %v3368_v26 = vld [vmem:[%s3851_s21 + $0x8] sm:$0xff]  ;;  %v3367_v30 = vld [vmem:[%s3851_s21] sm:$0xff] }
  0x42   : > { %2048 = vmatpush.bf16.msra.mxu0 %v3372_v9  ;;  %689 = vst [vmem:[#allocation1] ss:$9 sm:$0xff] %v252_v21  ;;  %v3376_v27 = vld [vmem:[%s3851_s21 + $0x48] sm:$0xff]  ;;  %v3375_v31 = vld [vmem:[%s3851_s21 + $0x40] sm:$0xff]  ;;  %v3406_v33 = vld [vmem:[%s3851_s21 + $0x138] sm:$0xff] }
  0x43   : > { %2061 = vmatpush.bf16.msra.mxu1 %v3380_v10  ;;  %v3384_v28 = vld [vmem:[%s3851_s21 + $0x88] sm:$0xff]  ;;  %v3383_v32 = vld [vmem:[%s3851_s21 + $0x80] sm:$0xff]  ;;  %v3414_v34 = vld [vmem:[%s3851_s21 + $0x178] sm:$0xff] }
  0x44   : > { %2074 = vmatpush.bf16.msra.mxu2 %v3388_v11  ;;  %v3392_v29 = vld [vmem:[%s3851_s21 + $0xc8] sm:$0xff]  ;;  %v3422_v35 = vld [vmem:[%s3851_s21 + $0x1b8] sm:$0xff]  ;;  %v3391_v36 = vld [vmem:[%s3851_s21 + $0xc0] sm:$0xff] }
  0x45   : > { %2087 = vmatpush.bf16.msra.mxu3 %v3396_v12  ;;  %v3430_v37 = vld [vmem:[%s3851_s21 + $0x1f8] sm:$0xff]  ;;  %v3405_v39 = vld [vmem:[%s3851_s21 + $0x130] sm:$0xff]  ;;  %v3404_v46 = vld [vmem:[%s3851_s21 + $0x128] sm:$0xff] }
  0x46   : > { %2049 = vmatpush.bf16.msra.mxu0 %v3371_v13  ;;  %v3413_v41 = vld [vmem:[%s3851_s21 + $0x170] sm:$0xff]  ;;  %v3412_v47 = vld [vmem:[%s3851_s21 + $0x168] sm:$0xff]  ;;  %v3403_v50 = vld [vmem:[%s3851_s21 + $0x120] sm:$0xff] }
  0x47   : > { %2062 = vmatpush.bf16.msra.mxu1 %v3379_v14  ;;  %v3421_v42 = vld [vmem:[%s3851_s21 + $0x1b0] sm:$0xff]  ;;  %v3420_v48 = vld [vmem:[%s3851_s21 + $0x1a8] sm:$0xff]  ;;  %v253_v54 = vld [vmem:[%s3869_s9 + $0x8] sm:$0xff] }
  0x48   : > { %2075 = vmatpush.bf16.msra.mxu2 %v3387_v15  ;;  %v3429_v44 = vld [vmem:[%s3851_s21 + $0x1f0] sm:$0xff]  ;;  %v3428_v49 = vld [vmem:[%s3851_s21 + $0x1e8] sm:$0xff]  ;;  %v3411_v56 = vld [vmem:[%s3851_s21 + $0x160] sm:$0xff] }
  0x49   : > { %2088 = vmatpush.bf16.msra.mxu3 %v3395_v16  ;;  %v690_v38 = vld [vmem:[#allocation1] sm:$0xff]  ;;  %v692_v40 = vld [vmem:[#allocation1 + $0x12] sm:$0xff]  ;;  %v691_v43 = vld [vmem:[#allocation1 + $0x9] sm:$0xff] }
  0x4a   : > { %2050 = vmatpush.bf16.msra.mxu0 %v3370_v17  ;;  %v693_v45 = vld [vmem:[#allocation1 + $0x1b] sm:$0xff]  ;;  %v694_v52 = vld [vmem:[#allocation1 + $0x24] sm:$0xff]  ;;  %v695_v55 = vld [vmem:[#allocation1 + $0x2d] sm:$0xff] }
  0x4b   : > { %2063 = vmatpush.bf16.msra.mxu1 %v3378_v18  ;;  %v696_v51 = vld [vmem:[#allocation1 + $0x36] sm:$0xff]  ;;  %v3919_v53 = vld [vmem:[#allocation1 + $0x3f] sm:$0xff]  ;;  %v3419_v57 = vld [vmem:[%s3851_s21 + $0x1a0] sm:$0xff] }
  0x4c   : > { %2076 = vmatpush.bf16.msra.mxu2 %v3386_v19  ;;  %699 = vst [vmem:[#allocation1] ss:$9 sm:$0xff] %v253_v54  ;;  %v3427_v58 = vld [vmem:[%s3851_s21 + $0x1e0] sm:$0xff]  ;;  %v3402_v59 = vld [vmem:[%s3851_s21 + $0x118] sm:$0xff]  ;;  %v3401_v63 = vld [vmem:[%s3851_s21 + $0x110] sm:$0xff] }
  0x4d   : > { %2089 = vmatpush.bf16.msra.mxu3 %v3394_v20  ;;  %v3410_v60 = vld [vmem:[%s3851_s21 + $0x158] sm:$0xff]  ;;  %v3409_v0 = vld [vmem:[%s3851_s21 + $0x150] sm:$0xff]  ;;  %v3400_v3 = vld [vmem:[%s3851_s21 + $0x108] sm:$0xff] }
  0x4e   : > { %2051 = vmatpush.bf16.msra.mxu0 %v3369_v22  ;;  %v3418_v61 = vld [vmem:[%s3851_s21 + $0x198] sm:$0xff]  ;;  %v3417_v1 = vld [vmem:[%s3851_s21 + $0x190] sm:$0xff]  ;;  %v3408_v4 = vld [vmem:[%s3851_s21 + $0x148] sm:$0xff] }
  0x4f   : > { %2064 = vmatpush.bf16.msra.mxu1 %v3377_v23  ;;  %v3426_v62 = vld [vmem:[%s3851_s21 + $0x1d8] sm:$0xff]  ;;  %v3425_v2 = vld [vmem:[%s3851_s21 + $0x1d0] sm:$0xff]  ;;  %v3416_v5 = vld [vmem:[%s3851_s21 + $0x188] sm:$0xff] }
  0x50   : > { %2077 = vmatpush.bf16.msra.mxu2 %v3385_v24  ;;  %v3424_v6 = vld [vmem:[%s3851_s21 + $0x1c8] sm:$0xff]  ;;  %v3399_v7 = vld [vmem:[%s3851_s21 + $0x100] sm:$0xff]  ;;  %v3438_v10 = vld [vmem:[%s3851_s21 + $0x238] sm:$0xff] }
  0x51   : > { %2090 = vmatpush.bf16.msra.mxu3 %v3393_v25  ;;  %v3407_v8 = vld [vmem:[%s3851_s21 + $0x140] sm:$0xff]  ;;  %v3446_v11 = vld [vmem:[%s3851_s21 + $0x278] sm:$0xff]  ;;  %v3437_v15 = vld [vmem:[%s3851_s21 + $0x230] sm:$0xff] }
  0x52   : > { %2052 = vmatpush.bf16.msra.mxu0 %v3368_v26  ;;  %v3415_v9 = vld [vmem:[%s3851_s21 + $0x180] sm:$0xff]  ;;  %v3454_v12 = vld [vmem:[%s3851_s21 + $0x2b8] sm:$0xff]  ;;  %v3445_v16 = vld [vmem:[%s3851_s21 + $0x270] sm:$0xff] }
  0x53   : > { %2065 = vmatpush.bf16.msra.mxu1 %v3376_v27  ;;  %v3423_v13 = vld [vmem:[%s3851_s21 + $0x1c0] sm:$0xff]  ;;  %v3462_v14 = vld [vmem:[%s3851_s21 + $0x2f8] sm:$0xff]  ;;  %v3453_v17 = vld [vmem:[%s3851_s21 + $0x2b0] sm:$0xff] }
  0x54   : > { %2078 = vmatpush.bf16.msra.mxu2 %v3384_v28  ;;  %v3461_v18 = vld [vmem:[%s3851_s21 + $0x2f0] sm:$0xff]  ;;  %v3436_v19 = vld [vmem:[%s3851_s21 + $0x228] sm:$0xff]  ;;  %v3435_v23 = vld [vmem:[%s3851_s21 + $0x220] sm:$0xff] }
  0x55   : > { %2091 = vmatpush.bf16.msra.mxu3 %v3392_v29  ;;  %v3444_v20 = vld [vmem:[%s3851_s21 + $0x268] sm:$0xff]  ;;  %v3443_v24 = vld [vmem:[%s3851_s21 + $0x260] sm:$0xff]  ;;  %v3434_v27 = vld [vmem:[%s3851_s21 + $0x218] sm:$0xff] }
  0x56   : > { %2053 = vmatpush.bf16.msra.mxu0 %v3367_v30  ;;  %v3452_v21 = vld [vmem:[%s3851_s21 + $0x2a8] sm:$0xff]  ;;  %v3451_v25 = vld [vmem:[%s3851_s21 + $0x2a0] sm:$0xff]  ;;  %v3442_v28 = vld [vmem:[%s3851_s21 + $0x258] sm:$0xff] }
  0x57   : > { %2066 = vmatpush.bf16.msra.mxu1 %v3375_v31  ;;  %v3460_v22 = vld [vmem:[%s3851_s21 + $0x2e8] sm:$0xff]  ;;  %v3459_v26 = vld [vmem:[%s3851_s21 + $0x2e0] sm:$0xff]  ;;  %v3450_v29 = vld [vmem:[%s3851_s21 + $0x298] sm:$0xff] }
  0x58   : > { %2079 = vmatpush.bf16.msra.mxu2 %v3383_v32  ;;  %v3458_v30 = vld [vmem:[%s3851_s21 + $0x2d8] sm:$0xff]  ;;  %v3433_v31 = vld [vmem:[%s3851_s21 + $0x210] sm:$0xff] }
  0x59   : > { %2092 = vmatpush.bf16.msra.mxu3 %v3391_v36  ;;  %2054 = vmatmul.bf16.vlgmr.msra.gmra.mxu0 %v690_v38  ;;  %v3441_v32 = vld [vmem:[%s3851_s21 + $0x250] sm:$0xff]  ;;  %v3440_v36 = vld [vmem:[%s3851_s21 + $0x248] sm:$0xff] }
  0x5a   : > { %2098 = vmatpush.bf16.msrb.mxu0 %v3406_v33  ;;  %2067 = vmatmul.bf16.vlgmr.msra.gmra.mxu1 %v691_v43  ;;  %v3449_v33 = vld [vmem:[%s3851_s21 + $0x290] sm:$0xff]  ;;  %v3456_v38 = vld [vmem:[%s3851_s21 + $0x2c8] sm:$0xff]  ;;  %v3478_v43 = vld [vmem:[%s3851_s21 + $0x378] sm:$0xff] }
  0x5b   : > { %2111 = vmatpush.bf16.msrb.mxu1 %v3414_v34  ;;  %2080 = vmatmul.bf16.vlgmr.msra.gmra.mxu2 %v692_v40  ;;  %v3457_v34 = vld [vmem:[%s3851_s21 + $0x2d0] sm:$0xff]  ;;  %v3439_v40 = vld [vmem:[%s3851_s21 + $0x240] sm:$0xff] }
  0x5c   : > { %2124 = vmatpush.bf16.msrb.mxu2 %v3422_v35  ;;  %2093 = vmatmul.bf16.vlgmr.msra.gmra.mxu3 %v693_v45  ;;  %v3432_v35 = vld [vmem:[%s3851_s21 + $0x208] sm:$0xff]  ;;  %v3455_v45 = vld [vmem:[%s3851_s21 + $0x2c0] sm:$0xff]  ;;  %v3493_v54 = vld [vmem:[%s3851_s21 + $0x3f0] sm:$0xff] }
  0x5d   : > { %2137 = vmatpush.bf16.msrb.mxu3 %v3430_v37  ;;  %v3448_v37 = vld [vmem:[%s3851_s21 + $0x288] sm:$0xff] }
  0x5e   : > { %2099 = vmatpush.bf16.msrb.mxu0 %v3405_v39  ;;  %v3431_v39 = vld [vmem:[%s3851_s21 + $0x200] sm:$0xff] }
  0x5f   : > { %2112 = vmatpush.bf16.msrb.mxu1 %v3413_v41  ;;  %v3447_v41 = vld [vmem:[%s3851_s21 + $0x280] sm:$0xff] }
  0x60   : > { %2125 = vmatpush.bf16.msrb.mxu2 %v3421_v42  ;;  %v3470_v42 = vld [vmem:[%s3851_s21 + $0x338] sm:$0xff] }
  0x61   : > { %2138 = vmatpush.bf16.msrb.mxu3 %v3429_v44  ;;  %v3486_v44 = vld [vmem:[%s3851_s21 + $0x3b8] sm:$0xff] }
  0x62   : > { %2100 = vmatpush.bf16.msrb.mxu0 %v3404_v46  ;;  %v700_v46 = vld [vmem:[#allocation1] sm:$0xff] }
  0x63   : > { %2113 = vmatpush.bf16.msrb.mxu1 %v3412_v47  ;;  %v3494_v47 = vld [vmem:[%s3851_s21 + $0x3f8] sm:$0xff] }
  0x64   : > { %2126 = vmatpush.bf16.msrb.mxu2 %v3420_v48  ;;  %v702_v48 = vld [vmem:[#allocation1 + $0x12] sm:$0xff] }
  0x65   : > { %2139 = vmatpush.bf16.msrb.mxu3 %v3428_v49  ;;  %v3469_v49 = vld [vmem:[%s3851_s21 + $0x330] sm:$0xff] }
  0x66   : > { %2101 = vmatpush.bf16.msrb.mxu0 %v3403_v50  ;;  %v701_v50 = vld [vmem:[#allocation1 + $0x9] sm:$0xff] }
  0x67   : > { %2114 = vmatpush.bf16.msrb.mxu1 %v3411_v56  ;;  %v3476_v56 = vld [vmem:[%s3851_s21 + $0x368] sm:$0xff] }
  0x68   : > { %2127 = vmatpush.bf16.msrb.mxu2 %v3419_v57  ;;  %v3484_v57 = vld [vmem:[%s3851_s21 + $0x3a8] sm:$0xff] }
  0x69   : > { %2140 = vmatpush.bf16.msrb.mxu3 %v3427_v58  ;;  %v3492_v58 = vld [vmem:[%s3851_s21 + $0x3e8] sm:$0xff] }
  0x6a   : > { %2102 = vmatpush.bf16.msrb.mxu0 %v3402_v59  ;;  %v3467_v59 = vld [vmem:[%s3851_s21 + $0x320] sm:$0xff] }
  0x6b   : > { %2115 = vmatpush.bf16.msrb.mxu1 %v3410_v60  ;;  %v3475_v60 = vld [vmem:[%s3851_s21 + $0x360] sm:$0xff] }
  0x6c   : > { %2128 = vmatpush.bf16.msrb.mxu2 %v3418_v61  ;;  %v3483_v61 = vld [vmem:[%s3851_s21 + $0x3a0] sm:$0xff] }
  0x6d   : > { %2141 = vmatpush.bf16.msrb.mxu3 %v3426_v62  ;;  %v3491_v62 = vld [vmem:[%s3851_s21 + $0x3e0] sm:$0xff] }
  0x6e   : > { %2103 = vmatpush.bf16.msrb.mxu0 %v3401_v63  ;;  %v3466_v63 = vld [vmem:[%s3851_s21 + $0x318] sm:$0xff] }
  0x6f   : > { %2116 = vmatpush.bf16.msrb.mxu1 %v3409_v0  ;;  %v3474_v0 = vld [vmem:[%s3851_s21 + $0x358] sm:$0xff] }
  0x70   : > { %2129 = vmatpush.bf16.msrb.mxu2 %v3417_v1  ;;  %v3482_v1 = vld [vmem:[%s3851_s21 + $0x398] sm:$0xff] }
  0x71   : > { %2142 = vmatpush.bf16.msrb.mxu3 %v3425_v2  ;;  %v3490_v2 = vld [vmem:[%s3851_s21 + $0x3d8] sm:$0xff] }
  0x72   : > { %2104 = vmatpush.bf16.msrb.mxu0 %v3400_v3  ;;  %v3465_v3 = vld [vmem:[%s3851_s21 + $0x310] sm:$0xff] }
  0x73   : > { %2117 = vmatpush.bf16.msrb.mxu1 %v3408_v4  ;;  %v3473_v4 = vld [vmem:[%s3851_s21 + $0x350] sm:$0xff] }
  0x74   : > { %2130 = vmatpush.bf16.msrb.mxu2 %v3416_v5  ;;  %v3481_v5 = vld [vmem:[%s3851_s21 + $0x390] sm:$0xff] }
  0x75   : > { %2143 = vmatpush.bf16.msrb.mxu3 %v3424_v6  ;;  %v3489_v6 = vld [vmem:[%s3851_s21 + $0x3d0] sm:$0xff] }
  0x76   : > { %2105 = vmatpush.bf16.msrb.mxu0 %v3399_v7  ;;  %v3464_v7 = vld [vmem:[%s3851_s21 + $0x308] sm:$0xff] }
  0x77   : > { %2118 = vmatpush.bf16.msrb.mxu1 %v3407_v8  ;;  %v3472_v8 = vld [vmem:[%s3851_s21 + $0x348] sm:$0xff] }
  0x78   : > { %2131 = vmatpush.bf16.msrb.mxu2 %v3415_v9  ;;  %v3480_v9 = vld [vmem:[%s3851_s21 + $0x388] sm:$0xff] }
  0x79   : > { %2144 = vmatpush.bf16.msrb.mxu3 %v3423_v13  ;;  %2106 = vmatmul.bf16.vlgmr.msrb.gmra.mxu0 %v694_v52  ;;  %v703_v52 = vld [vmem:[#allocation1 + $0x1b] sm:$0xff] }
  0x7a   : > { %2150 = vmatpush.bf16.msra.mxu0 %v3438_v10  ;;  %2119 = vmatmul.bf16.vlgmr.msrb.gmra.mxu1 %v695_v55  ;;  %v3468_v55 = vld [vmem:[%s3851_s21 + $0x328] sm:$0xff]  ;;  %v704_v10 = vld [vmem:[#allocation1 + $0x24] sm:$0xff] }
  0x7b   : > { %2163 = vmatpush.bf16.msra.mxu1 %v3446_v11  ;;  %2132 = vmatmul.bf16.vlgmr.msrb.gmra.mxu2 %v696_v51  ;;  %v3477_v51 = vld [vmem:[%s3851_s21 + $0x370] sm:$0xff] }
  0x7c   : > { %2176 = vmatpush.bf16.msra.mxu2 %v3454_v12  ;;  %2145 = vmatmul.bf16.vlgmr.msrb.gmra.mxu3 %v3919_v53  ;;  %v3485_v53 = vld [vmem:[%s3851_s21 + $0x3b0] sm:$0xff]  ;;  %v705_v12 = vld [vmem:[#allocation1 + $0x2d] sm:$0xff] }
  0x7d   : > { %2189 = vmatpush.bf16.msra.mxu3 %v3462_v14  ;;  %v706_v11 = vld [vmem:[#allocation1 + $0x36] sm:$0xff]  ;;  %v707_v13 = vld [vmem:[#allocation1 + $0x3f] sm:$0xff] }
  0x7e   : > { %2151 = vmatpush.bf16.msra.mxu0 %v3437_v15  ;;  %v254_v14 = vld [vmem:[%s3869_s9 + $0x10] sm:$0xff] }
  0x7f   : > { %2164 = vmatpush.bf16.msra.mxu1 %v3445_v16  ;;  %v3488_v15 = vld [vmem:[%s3851_s21 + $0x3c8] sm:$0xff]  ;;  %709 = vst [vmem:[#allocation1] ss:$9 sm:$0xff] %v254_v14  ;;  %v3463_v16 = vld [vmem:[%s3851_s21 + $0x300] sm:$0xff]  ;;  %v3554_v14 = vld [vmem:[%s3851_s21 + $0x5d8] sm:$0xff] }
  0x80   : > { %2177 = vmatpush.bf16.msra.mxu2 %v3453_v17  ;;  %v3471_v17 = vld [vmem:[%s3851_s21 + $0x340] sm:$0xff] }
  0x81   : > { %2190 = vmatpush.bf16.msra.mxu3 %v3461_v18  ;;  %v3502_v18 = vld [vmem:[%s3851_s21 + $0x438] sm:$0xff] }
  0x82   : > { %2152 = vmatpush.bf16.msra.mxu0 %v3436_v19  ;;  %v3479_v19 = vld [vmem:[%s3851_s21 + $0x380] sm:$0xff] }
  0x83   : > { %2165 = vmatpush.bf16.msra.mxu1 %v3444_v20  ;;  %v3510_v20 = vld [vmem:[%s3851_s21 + $0x478] sm:$0xff] }
  0x84   : > { %2178 = vmatpush.bf16.msra.mxu2 %v3452_v21  ;;  %v3518_v21 = vld [vmem:[%s3851_s21 + $0x4b8] sm:$0xff] }
  0x85   : > { %2191 = vmatpush.bf16.msra.mxu3 %v3460_v22  ;;  %v3487_v22 = vld [vmem:[%s3851_s21 + $0x3c0] sm:$0xff] }
  0x86   : > { %2153 = vmatpush.bf16.msra.mxu0 %v3435_v23  ;;  %v3526_v23 = vld [vmem:[%s3851_s21 + $0x4f8] sm:$0xff] }
  0x87   : > { %2166 = vmatpush.bf16.msra.mxu1 %v3443_v24  ;;  %v3501_v24 = vld [vmem:[%s3851_s21 + $0x430] sm:$0xff] }
  0x88   : > { %2179 = vmatpush.bf16.msra.mxu2 %v3451_v25  ;;  %v3509_v25 = vld [vmem:[%s3851_s21 + $0x470] sm:$0xff] }
  0x89   : > { %2192 = vmatpush.bf16.msra.mxu3 %v3459_v26  ;;  %v3517_v26 = vld [vmem:[%s3851_s21 + $0x4b0] sm:$0xff] }
  0x8a   : > { %2154 = vmatpush.bf16.msra.mxu0 %v3434_v27  ;;  %v3525_v27 = vld [vmem:[%s3851_s21 + $0x4f0] sm:$0xff] }
  0x8b   : > { %2167 = vmatpush.bf16.msra.mxu1 %v3442_v28  ;;  %v3500_v28 = vld [vmem:[%s3851_s21 + $0x428] sm:$0xff] }
  0x8c   : > { %2180 = vmatpush.bf16.msra.mxu2 %v3450_v29  ;;  %v3508_v29 = vld [vmem:[%s3851_s21 + $0x468] sm:$0xff] }
  0x8d   : > { %2193 = vmatpush.bf16.msra.mxu3 %v3458_v30  ;;  %v3516_v30 = vld [vmem:[%s3851_s21 + $0x4a8] sm:$0xff] }
  0x8e   : > { %2155 = vmatpush.bf16.msra.mxu0 %v3433_v31  ;;  %v3524_v31 = vld [vmem:[%s3851_s21 + $0x4e8] sm:$0xff] }
  0x8f   : > { %2168 = vmatpush.bf16.msra.mxu1 %v3441_v32  ;;  %v3499_v32 = vld [vmem:[%s3851_s21 + $0x420] sm:$0xff] }
  0x90   : > { %2181 = vmatpush.bf16.msra.mxu2 %v3449_v33  ;;  %v3507_v33 = vld [vmem:[%s3851_s21 + $0x460] sm:$0xff] }
  0x91   : > { %2194 = vmatpush.bf16.msra.mxu3 %v3457_v34  ;;  %v3515_v34 = vld [vmem:[%s3851_s21 + $0x4a0] sm:$0xff] }
  0x92   : > { %2156 = vmatpush.bf16.msra.mxu0 %v3432_v35  ;;  %v3523_v35 = vld [vmem:[%s3851_s21 + $0x4e0] sm:$0xff] }
  0x93   : > { %2169 = vmatpush.bf16.msra.mxu1 %v3440_v36  ;;  %v3498_v36 = vld [vmem:[%s3851_s21 + $0x418] sm:$0xff] }
  0x94   : > { %2182 = vmatpush.bf16.msra.mxu2 %v3448_v37  ;;  %v3506_v37 = vld [vmem:[%s3851_s21 + $0x458] sm:$0xff] }
  0x95   : > { %2195 = vmatpush.bf16.msra.mxu3 %v3456_v38  ;;  %v3514_v38 = vld [vmem:[%s3851_s21 + $0x498] sm:$0xff] }
  0x96   : > { %2157 = vmatpush.bf16.msra.mxu0 %v3431_v39  ;;  %v3522_v39 = vld [vmem:[%s3851_s21 + $0x4d8] sm:$0xff] }
  0x97   : > { %2170 = vmatpush.bf16.msra.mxu1 %v3439_v40  ;;  %v3497_v40 = vld [vmem:[%s3851_s21 + $0x410] sm:$0xff] }
  0x98   : > { %2183 = vmatpush.bf16.msra.mxu2 %v3447_v41  ;;  %v3505_v41 = vld [vmem:[%s3851_s21 + $0x450] sm:$0xff] }
  0x99   : > { %2196 = vmatpush.bf16.msra.mxu3 %v3455_v45  ;;  %2158 = vmatmul.bf16.vlgmr.msra.gmra.mxu0 %v700_v46  ;;  %v3504_v45 = vld [vmem:[%s3851_s21 + $0x448] sm:$0xff] }
  0x9a   : > { %2202 = vmatpush.bf16.msrb.mxu0 %v3470_v42  ;;  %2171 = vmatmul.bf16.vlgmr.msra.gmra.mxu1 %v701_v50  ;;  %v3513_v42 = vld [vmem:[%s3851_s21 + $0x490] sm:$0xff]  ;;  %v3512_v46 = vld [vmem:[%s3851_s21 + $0x488] sm:$0xff]  ;;  %v3511_v50 = vld [vmem:[%s3851_s21 + $0x480] sm:$0xff] }
  0x9b   : > { %2215 = vmatpush.bf16.msrb.mxu1 %v3478_v43  ;;  %2184 = vmatmul.bf16.vlgmr.msra.gmra.mxu2 %v702_v48  ;;  %v3521_v43 = vld [vmem:[%s3851_s21 + $0x4d0] sm:$0xff]  ;;  %v3495_v48 = vld [vmem:[%s3851_s21 + $0x400] sm:$0xff] }
  0x9c   : > { %2228 = vmatpush.bf16.msrb.mxu2 %v3486_v44  ;;  %2197 = vmatmul.bf16.vlgmr.msra.gmra.mxu3 %v703_v52  ;;  %v3496_v44 = vld [vmem:[%s3851_s21 + $0x408] sm:$0xff]  ;;  %v3542_v52 = vld [vmem:[%s3851_s21 + $0x578] sm:$0xff] }
  0x9d   : > { %2241 = vmatpush.bf16.msrb.mxu3 %v3494_v47  ;;  %v3520_v47 = vld [vmem:[%s3851_s21 + $0x4c8] sm:$0xff] }
  0x9e   : > { %2203 = vmatpush.bf16.msrb.mxu0 %v3469_v49  ;;  %v3503_v49 = vld [vmem:[%s3851_s21 + $0x440] sm:$0xff] }
  0x9f   : > { %2216 = vmatpush.bf16.msrb.mxu1 %v3477_v51  ;;  %v3534_v51 = vld [vmem:[%s3851_s21 + $0x538] sm:$0xff] }
  0xa0   : > { %2229 = vmatpush.bf16.msrb.mxu2 %v3485_v53  ;;  %v3550_v53 = vld [vmem:[%s3851_s21 + $0x5b8] sm:$0xff] }
  0xa1   : > { %2242 = vmatpush.bf16.msrb.mxu3 %v3493_v54  ;;  %v3519_v54 = vld [vmem:[%s3851_s21 + $0x4c0] sm:$0xff] }
  0xa2   : > { %2204 = vmatpush.bf16.msrb.mxu0 %v3468_v55  ;;  %v710_v55 = vld [vmem:[#allocation1] sm:$0xff] }
  0xa3   : > { %2217 = vmatpush.bf16.msrb.mxu1 %v3476_v56  ;;  %v712_v56 = vld [vmem:[#allocation1 + $0x12] sm:$0xff] }
  0xa4   : > { %2230 = vmatpush.bf16.msrb.mxu2 %v3484_v57  ;;  %v3558_v57 = vld [vmem:[%s3851_s21 + $0x5f8] sm:$0xff] }
  0xa5   : > { %2243 = vmatpush.bf16.msrb.mxu3 %v3492_v58  ;;  %v711_v58 = vld [vmem:[#allocation1 + $0x9] sm:$0xff] }
  0xa6   : > { %2205 = vmatpush.bf16.msrb.mxu0 %v3467_v59  ;;  %v3533_v59 = vld [vmem:[%s3851_s21 + $0x530] sm:$0xff] }
  0xa7   : > { %2218 = vmatpush.bf16.msrb.mxu1 %v3475_v60  ;;  %v713_v60 = vld [vmem:[#allocation1 + $0x1b] sm:$0xff] }
  0xa8   : > { %2231 = vmatpush.bf16.msrb.mxu2 %v3483_v61  ;;  %v3541_v61 = vld [vmem:[%s3851_s21 + $0x570] sm:$0xff] }
  0xa9   : > { %2244 = vmatpush.bf16.msrb.mxu3 %v3491_v62  ;;  %v3549_v62 = vld [vmem:[%s3851_s21 + $0x5b0] sm:$0xff] }
  0xaa   : > { %2206 = vmatpush.bf16.msrb.mxu0 %v3466_v63  ;;  %v3557_v63 = vld [vmem:[%s3851_s21 + $0x5f0] sm:$0xff] }
  0xab   : > { %2219 = vmatpush.bf16.msrb.mxu1 %v3474_v0  ;;  %v3532_v0 = vld [vmem:[%s3851_s21 + $0x528] sm:$0xff] }
  0xac   : > { %2232 = vmatpush.bf16.msrb.mxu2 %v3482_v1  ;;  %v3540_v1 = vld [vmem:[%s3851_s21 + $0x568] sm:$0xff] }
  0xad   : > { %2245 = vmatpush.bf16.msrb.mxu3 %v3490_v2  ;;  %v3548_v2 = vld [vmem:[%s3851_s21 + $0x5a8] sm:$0xff] }
  0xae   : > { %2207 = vmatpush.bf16.msrb.mxu0 %v3465_v3  ;;  %v3556_v3 = vld [vmem:[%s3851_s21 + $0x5e8] sm:$0xff] }
  0xaf   : > { %2220 = vmatpush.bf16.msrb.mxu1 %v3473_v4  ;;  %v3531_v4 = vld [vmem:[%s3851_s21 + $0x520] sm:$0xff] }
  0xb0   : > { %2233 = vmatpush.bf16.msrb.mxu2 %v3481_v5 }
  0xb1   : > { %2246 = vmatpush.bf16.msrb.mxu3 %v3489_v6  ;;  %v3539_v6 = vld [vmem:[%s3851_s21 + $0x560] sm:$0xff] }
  0xb2   : > { %2208 = vmatpush.bf16.msrb.mxu0 %v3464_v7  ;;  %v3547_v7 = vld [vmem:[%s3851_s21 + $0x5a0] sm:$0xff] }
  0xb3   : > { %2221 = vmatpush.bf16.msrb.mxu1 %v3472_v8 }
  0xb4   : > { %2234 = vmatpush.bf16.msrb.mxu2 %v3480_v9  ;;  %v3555_v9 = vld [vmem:[%s3851_s21 + $0x5e0] sm:$0xff] }
  0xb5   : > { %2247 = vmatpush.bf16.msrb.mxu3 %v3488_v15 }
  0xb6   : > { %2209 = vmatpush.bf16.msrb.mxu0 %v3463_v16  ;;  %v3529_v16 = vld [vmem:[%s3851_s21 + $0x510] sm:$0xff] }
  0xb7   : > { %2222 = vmatpush.bf16.msrb.mxu1 %v3471_v17 }
  0xb8   : > { %2235 = vmatpush.bf16.msrb.mxu2 %v3479_v19  ;;  %v3537_v19 = vld [vmem:[%s3851_s21 + $0x550] sm:$0xff] }
  0xb9   : > { %2248 = vmatpush.bf16.msrb.mxu3 %v3487_v22  ;;  %2210 = vmatmul.bf16.vlgmr.msrb.gmra.mxu0 %v704_v10 }
  0xba   : > { %2254 = vmatpush.bf16.msra.mxu0 %v3502_v18  ;;  %2223 = vmatmul.bf16.vlgmr.msrb.gmra.mxu1 %v705_v12  ;;  %v3538_v12 = vld [vmem:[%s3851_s21 + $0x558] sm:$0xff] }
  0xbb   : > { %2267 = vmatpush.bf16.msra.mxu1 %v3510_v20  ;;  %2236 = vmatmul.bf16.vlgmr.msrb.gmra.mxu2 %v706_v11  ;;  %v3530_v11 = vld [vmem:[%s3851_s21 + $0x518] sm:$0xff]  ;;  %v3545_v20 = vld [vmem:[%s3851_s21 + $0x590] sm:$0xff] }
  0xbc   : > { %2280 = vmatpush.bf16.msra.mxu2 %v3518_v21  ;;  %2249 = vmatmul.bf16.vlgmr.msrb.gmra.mxu3 %v707_v13  ;;  %v3546_v13 = vld [vmem:[%s3851_s21 + $0x598] sm:$0xff] }
  0xbd   : > { %2293 = vmatpush.bf16.msra.mxu3 %v3526_v23  ;;  %v3553_v23 = vld [vmem:[%s3851_s21 + $0x5d0] sm:$0xff] }
  0xbe   : > { %2255 = vmatpush.bf16.msra.mxu0 %v3501_v24  ;;  %v3528_v24 = vld [vmem:[%s3851_s21 + $0x508] sm:$0xff] }
  0xbf   : > { %2268 = vmatpush.bf16.msra.mxu1 %v3509_v25  ;;  %v3536_v25 = vld [vmem:[%s3851_s21 + $0x548] sm:$0xff] }
  0xc0   : > { %2281 = vmatpush.bf16.msra.mxu2 %v3517_v26 }
  0xc1   : > { %2294 = vmatpush.bf16.msra.mxu3 %v3525_v27  ;;  %v3544_v27 = vld [vmem:[%s3851_s21 + $0x588] sm:$0xff] }
  0xc2   : > { %2256 = vmatpush.bf16.msra.mxu0 %v3500_v28  ;;  %v714_v28 = vld [vmem:[#allocation1 + $0x24] sm:$0xff] }
  0xc3   : > { %2269 = vmatpush.bf16.msra.mxu1 %v3508_v29  ;;  %v716_v29 = vld [vmem:[#allocation1 + $0x36] sm:$0xff] }
  0xc4   : > { %2282 = vmatpush.bf16.msra.mxu2 %v3516_v30  ;;  %v715_v30 = vld [vmem:[#allocation1 + $0x2d] sm:$0xff] }
  0xc5   : > { %2295 = vmatpush.bf16.msra.mxu3 %v3524_v31  ;;  %v717_v31 = vld [vmem:[#allocation1 + $0x3f] sm:$0xff] }
  0xc6   : > { %2257 = vmatpush.bf16.msra.mxu0 %v3499_v32  ;;  %v255_v32 = vld [vmem:[%s3869_s9 + $0x18] sm:$0x7] }
  0xc7   : > { %2270 = vmatpush.bf16.msra.mxu1 %v3507_v33  ;;  %719 = vst [vmem:[#allocation1] ss:$9 sm:$0xff] %v255_v32  ;;  %v3552_v33 = vld [vmem:[%s3851_s21 + $0x5c8] sm:$0xff] }
  0xc8   : > { %2283 = vmatpush.bf16.msra.mxu2 %v3515_v34 }
  0xc9   : > { %2296 = vmatpush.bf16.msra.mxu3 %v3523_v35  ;;  %v3527_v35 = vld [vmem:[%s3851_s21 + $0x500] sm:$0xff] }
  0xca   : > { %2258 = vmatpush.bf16.msra.mxu0 %v3498_v36  ;;  %v3535_v36 = vld [vmem:[%s3851_s21 + $0x540] sm:$0xff] }
  0xcb   : > { %2271 = vmatpush.bf16.msra.mxu1 %v3506_v37  ;;  %v3543_v37 = vld [vmem:[%s3851_s21 + $0x580] sm:$0xff] }
  0xcc   : > { %2284 = vmatpush.bf16.msra.mxu2 %v3514_v38  ;;  %v3566_v38 = vld [vmem:[%s3851_s21 + $0x638] sm:$0xff] }
  0xcd   : > { %2297 = vmatpush.bf16.msra.mxu3 %v3522_v39  ;;  %v3574_v39 = vld [vmem:[%s3851_s21 + $0x678] sm:$0xff] }
  0xce   : > { %2259 = vmatpush.bf16.msra.mxu0 %v3497_v40 }
  0xcf   : > { %2272 = vmatpush.bf16.msra.mxu1 %v3505_v41  ;;  %v3582_v41 = vld [vmem:[%s3851_s21 + $0x6b8] sm:$0xff] }
  0xd0   : > { %2285 = vmatpush.bf16.msra.mxu2 %v3513_v42  ;;  %v3551_v42 = vld [vmem:[%s3851_s21 + $0x5c0] sm:$0xff] }
  0xd1   : > { %2298 = vmatpush.bf16.msra.mxu3 %v3521_v43  ;;  %v3565_v43 = vld [vmem:[%s3851_s21 + $0x630] sm:$0xff] }
  0xd2   : > { %2260 = vmatpush.bf16.msra.mxu0 %v3496_v44  ;;  %v3573_v44 = vld [vmem:[%s3851_s21 + $0x670] sm:$0xff] }
  0xd3   : > { %2273 = vmatpush.bf16.msra.mxu1 %v3504_v45  ;;  %v3581_v45 = vld [vmem:[%s3851_s21 + $0x6b0] sm:$0xff] }
  0xd4   : > { %2286 = vmatpush.bf16.msra.mxu2 %v3512_v46  ;;  %v3564_v46 = vld [vmem:[%s3851_s21 + $0x628] sm:$0xff] }
  0xd5   : > { %2299 = vmatpush.bf16.msra.mxu3 %v3520_v47  ;;  %v3572_v47 = vld [vmem:[%s3851_s21 + $0x668] sm:$0xff] }
  0xd6   : > { %2261 = vmatpush.bf16.msra.mxu0 %v3495_v48  ;;  %v2055_v5 = vpop.f32.mrf.mxu0  ;;  %v3580_v48 = vld [vmem:[%s3851_s21 + $0x6a8] sm:$0xff] }
  0xd7   : > { %2274 = vmatpush.bf16.msra.mxu1 %v3503_v49  ;;  %v2068_v8 = vpop.f32.mrf.mxu1  ;;  %v3563_v49 = vld [vmem:[%s3851_s21 + $0x620] sm:$0xff] }
  0xd8   : > { %2287 = vmatpush.bf16.msra.mxu2 %v3511_v50  ;;  %v2069_v10 = vadd.f32 %v2068_v8, %v2055_v5  ;;  %v3571_v50 = vld [vmem:[%s3851_s21 + $0x660] sm:$0xff]  ;;  %v3568_v5 = vld [vmem:[%s3851_s21 + $0x648] sm:$0xff] }
  0xd9   : > { %2300 = vmatpush.bf16.msra.mxu3 %v3519_v54  ;;  %2262 = vmatmul.bf16.vlgmr.msra.gmra.mxu0 %v710_v55  ;;  %v3562_v55 = vld [vmem:[%s3851_s21 + $0x618] sm:$0xff]  ;;  %v3559_v8 = vld [vmem:[%s3851_s21 + $0x600] sm:$0xff] }
  0xda   : > { %2306 = vmatpush.bf16.msrb.mxu0 %v3534_v51  ;;  %2275 = vmatmul.bf16.vlgmr.msra.gmra.mxu1 %v711_v58  ;;  %v3579_v51 = vld [vmem:[%s3851_s21 + $0x6a0] sm:$0xff]  ;;  %v3578_v58 = vld [vmem:[%s3851_s21 + $0x698] sm:$0xff] }
  0xdb   : > { %2319 = vmatpush.bf16.msrb.mxu1 %v3542_v52  ;;  %2288 = vmatmul.bf16.vlgmr.msra.gmra.mxu2 %v712_v56 }
  0xdc   : > { %2332 = vmatpush.bf16.msrb.mxu2 %v3550_v53  ;;  %2301 = vmatmul.bf16.vlgmr.msra.gmra.mxu3 %v713_v60 }
  0xdd   : > { %2345 = vmatpush.bf16.msrb.mxu3 %v3558_v57  ;;  %v3570_v57 = vld [vmem:[%s3851_s21 + $0x658] sm:$0xff] }
  0xde   : > { %2307 = vmatpush.bf16.msrb.mxu0 %v3533_v59  ;;  %v2081_v15 = vpop.f32.mrf.mxu2  ;;  %v2057_v18 = vpop.f32.mrf.mxu0 }
  0xdf   : > { %2320 = vmatpush.bf16.msrb.mxu1 %v3541_v61  ;;  %v2082_v17 = vadd.f32 %v2081_v15, %v2069_v10  ;;  %v2094_v21 = vpop.f32.mrf.mxu3  ;;  %v2070_v22 = vpop.f32.mrf.mxu1  ;;  %v3561_v61 = vld [vmem:[%s3851_s21 + $0x610] sm:$0xff]  ;;  %v3575_v10 = vld [vmem:[%s3851_s21 + $0x680] sm:$0xff] }
  0xe0   : > { %2333 = vmatpush.bf16.msrb.mxu2 %v3549_v62  ;;  %v3569_v62 = vld [vmem:[%s3851_s21 + $0x650] sm:$0xff] }
  0xe1   : > { %2346 = vmatpush.bf16.msrb.mxu3 %v3557_v63  ;;  %v2095_v26 = vadd.f32 %v2094_v21, %v2082_v17  ;;  %v3577_v63 = vld [vmem:[%s3851_s21 + $0x690] sm:$0xff] }
  0xe2   : > { %2308 = vmatpush.bf16.msrb.mxu0 %v3532_v0 }
  0xe3   : > { %2321 = vmatpush.bf16.msrb.mxu1 %v3540_v1 }
  0xe4   : > { %2334 = vmatpush.bf16.msrb.mxu2 %v3548_v2 }
  0xe5   : > { %2347 = vmatpush.bf16.msrb.mxu3 %v3556_v3 }
  0xe6   : > { %2309 = vmatpush.bf16.msrb.mxu0 %v3531_v4  ;;  %v2083_v34 = vpop.f32.mrf.mxu2  ;;  %v3560_v4 = vld [vmem:[%s3851_s21 + $0x608] sm:$0xff] }
  0xe7   : > { %2322 = vmatpush.bf16.msrb.mxu1 %v3539_v6  ;;  %v2096_v40 = vpop.f32.mrf.mxu3  ;;  %v3576_v6 = vld [vmem:[%s3851_s21 + $0x688] sm:$0xff] }
  0xe8   : > { %2335 = vmatpush.bf16.msrb.mxu2 %v3547_v7 }
  0xe9   : > { %2348 = vmatpush.bf16.msrb.mxu3 %v3555_v9  ;;  %v3567_v9 = vld [vmem:[%s3851_s21 + $0x640] sm:$0xff] }
  0xea   : > { %2310 = vmatpush.bf16.msrb.mxu0 %v3530_v11 }
  0xeb   : > { %2323 = vmatpush.bf16.msrb.mxu1 %v3538_v12  ;;  %v720_v12 = vld [vmem:[#allocation1] sm:$0xff] }
  0xec   : > { %2336 = vmatpush.bf16.msrb.mxu2 %v3546_v13  ;;  %v721_v13 = vld [vmem:[#allocation1 + $0x9] sm:$0xff] }
  0xed   : > { %2349 = vmatpush.bf16.msrb.mxu3 %v3554_v14  ;;  %v722_v14 = vld [vmem:[#allocation1 + $0x12] sm:$0xff] }
  0xee   : > { %2311 = vmatpush.bf16.msrb.mxu0 %v3529_v16 }
  0xef   : > { %2324 = vmatpush.bf16.msrb.mxu1 %v3537_v19 }
  0xf0   : > { %2337 = vmatpush.bf16.msrb.mxu2 %v3545_v20 }
  0xf1   : > { %2350 = vmatpush.bf16.msrb.mxu3 %v3553_v23 }
  0xf2   : > { %2312 = vmatpush.bf16.msrb.mxu0 %v3528_v24 }
  0xf3   : > { %2325 = vmatpush.bf16.msrb.mxu1 %v3536_v25 }
  0xf4   : > { %2338 = vmatpush.bf16.msrb.mxu2 %v3544_v27 }
  0xf5   : > { %2351 = vmatpush.bf16.msrb.mxu3 %v3552_v33 }
  0xf6   : > { %2313 = vmatpush.bf16.msrb.mxu0 %v3527_v35  ;;  %v2107_v52 = vpop.f32.mrf.mxu0 }
  0xf7   : > { %2326 = vmatpush.bf16.msrb.mxu1 %v3535_v36  ;;  %v2120_v53 = vpop.f32.mrf.mxu1  ;;  %v2108_v54 = vadd.f32 %v2107_v52, %v2095_v26 }
  0xf8   : > { %2339 = vmatpush.bf16.msrb.mxu2 %v3543_v37 }
  0xf9   : > { %2352 = vmatpush.bf16.msrb.mxu3 %v3551_v42  ;;  %2314 = vmatmul.bf16.vlgmr.msrb.gmra.mxu0 %v714_v28  ;;  %v2121_v56 = vadd.f32 %v2120_v53, %v2108_v54 }
  0xfa   : > { %2358 = vmatpush.bf16.msra.mxu0 %v3566_v38  ;;  %2327 = vmatmul.bf16.vlgmr.msrb.gmra.mxu1 %v715_v30 }
  0xfb   : > { %2371 = vmatpush.bf16.msra.mxu1 %v3574_v39  ;;  %2340 = vmatmul.bf16.vlgmr.msrb.gmra.mxu2 %v716_v29 }
  0xfc   : > { %2384 = vmatpush.bf16.msra.mxu2 %v3582_v41  ;;  %2353 = vmatmul.bf16.vlgmr.msrb.gmra.mxu3 %v717_v31 }
  0xfe   : > { %2359 = vmatpush.bf16.msra.mxu0 %v3565_v43  ;;  %v2133_v59 = vpop.f32.mrf.mxu2  ;;  %v2109_v1 = vpop.f32.mrf.mxu0 }
  0xff   : > { %2372 = vmatpush.bf16.msra.mxu1 %v3573_v44  ;;  %v2134_v60 = vadd.f32 %v2133_v59, %v2121_v56  ;;  %v2146_v0 = vpop.f32.mrf.mxu3  ;;  %v2122_v3 = vpop.f32.mrf.mxu1 }
 0x100   : > { %2385 = vmatpush.bf16.msra.mxu2 %v3581_v45  ;;  %v251_v3 = vld [vmem:[%s3864_s7] sm:$0x3] }
 0x101   : > { %v2147_v2 = vadd.f32 %v2146_v0, %v2134_v60 }
 0x102   : > { %2360 = vmatpush.bf16.msra.mxu0 %v3564_v46 }
 0x103   : > { %2373 = vmatpush.bf16.msra.mxu1 %v3572_v47 }
 0x104   : > { %2386 = vmatpush.bf16.msra.mxu2 %v3580_v48 }
 0x106   : > { %2361 = vmatpush.bf16.msra.mxu0 %v3563_v49  ;;  %v2135_v7 = vpop.f32.mrf.mxu2 }
 0x107   : > { %2374 = vmatpush.bf16.msra.mxu1 %v3571_v50  ;;  %v2148_v11 = vpop.f32.mrf.mxu3 }
 0x108   : > { %2387 = vmatpush.bf16.msra.mxu2 %v3579_v51 }
 0x10a   : > { %2362 = vmatpush.bf16.msra.mxu0 %v3562_v55 }
 0x10b   : > { %2375 = vmatpush.bf16.msra.mxu1 %v3570_v57 }
 0x10c   : > { %2388 = vmatpush.bf16.msra.mxu2 %v3578_v58 }
 0x10e   : > { %2363 = vmatpush.bf16.msra.mxu0 %v3561_v61 }
 0x10f   : > { %2376 = vmatpush.bf16.msra.mxu1 %v3569_v62 }
 0x110   : > { %2389 = vmatpush.bf16.msra.mxu2 %v3577_v63 }
 0x112   : > { %2364 = vmatpush.bf16.msra.mxu0 %v3560_v4 }
 0x113   : > { %2377 = vmatpush.bf16.msra.mxu1 %v3568_v5 }
 0x114   : > { %2390 = vmatpush.bf16.msra.mxu2 %v3576_v6 }
 0x116   : > { %2365 = vmatpush.bf16.msra.mxu0 %v3559_v8  ;;  %v2159_v15 = vpop.f32.mrf.mxu0 }
 0x117   : > { %2378 = vmatpush.bf16.msra.mxu1 %v3567_v9  ;;  %v2160_v16 = vadd.f32 %v2159_v15, %v2147_v2  ;;  %v2172_v17 = vpop.f32.mrf.mxu1 }
 0x118   : > { %2391 = vmatpush.bf16.msra.mxu2 %v3575_v10 }
 0x119   : > { %2366 = vmatmul.bf16.vlgmr.msra.gmra.mxu0 %v720_v12  ;;  %v2173_v18 = vadd.f32 %v2172_v17, %v2160_v16 }
 0x11a   : > { %2379 = vmatmul.bf16.vlgmr.msra.gmra.mxu1 %v721_v13 }
 0x11b   : > { %2392 = vmatmul.bf16.vlgmr.msra.gmra.mxu2 %v722_v14 }
 0x11e   : > { %v2185_v19 = vpop.f32.mrf.mxu2  ;;  %v2161_v21 = vpop.f32.mrf.mxu0 }
 0x11f   : > { %v2186_v20 = vadd.f32 %v2185_v19, %v2173_v18  ;;  %v2198_v22 = vpop.f32.mrf.mxu3  ;;  %v2174_v24 = vpop.f32.mrf.mxu1 }
 0x121   : > { %v2199_v23 = vadd.f32 %v2198_v22, %v2186_v20 }
 0x126   : > { %v2187_v25 = vpop.f32.mrf.mxu2 }
 0x127   : > { %v2200_v26 = vpop.f32.mrf.mxu3 }
 0x136   : > { %v2211_v27 = vpop.f32.mrf.mxu0 }
 0x137   : > { %v2212_v28 = vadd.f32 %v2211_v27, %v2199_v23  ;;  %v2224_v29 = vpop.f32.mrf.mxu1 }
 0x139   : > { %v2225_v30 = vadd.f32 %v2224_v29, %v2212_v28 }
 0x13e   : > { %v2237_v31 = vpop.f32.mrf.mxu2  ;;  %v2213_v34 = vpop.f32.mrf.mxu0 }
 0x13f   : > { %v2238_v32 = vadd.f32 %v2237_v31, %v2225_v30  ;;  %v2250_v33 = vpop.f32.mrf.mxu3  ;;  %v2226_v35 = vpop.f32.mrf.mxu1 }
 0x141   : > { %v2251_v36 = vadd.f32 %v2250_v33, %v2238_v32 }
 0x146   : > { %v2239_v37 = vpop.f32.mrf.mxu2 }
 0x147   : > { %v2252_v38 = vpop.f32.mrf.mxu3 }
 0x156   : > { %v2263_v39 = vpop.f32.mrf.mxu0 }
 0x157   : > { %v2276_v40 = vpop.f32.mrf.mxu1  ;;  %v2264_v50 = vadd.f32 %v2263_v39, %v2251_v36 }
 0x159   : > { %v2277_v54 = vadd.f32 %v2276_v40, %v2264_v50 }
 0x15e   : > { %v2289_v41 = vpop.f32.mrf.mxu2  ;;  %v2265_v43 = vpop.f32.mrf.mxu0 }
 0x15f   : > { %v2302_v42 = vpop.f32.mrf.mxu3  ;;  %v2278_v44 = vpop.f32.mrf.mxu1  ;;  %v2290_v55 = vadd.f32 %v2289_v41, %v2277_v54 }
 0x161   : > { %v2303_v58 = vadd.f32 %v2302_v42, %v2290_v55 }
 0x166   : > { %v2291_v45 = vpop.f32.mrf.mxu2 }
 0x167   : > { %v2304_v46 = vpop.f32.mrf.mxu3 }
 0x176   : > { %v2315_v47 = vpop.f32.mrf.mxu0 }
 0x177   : > { %v2328_v48 = vpop.f32.mrf.mxu1  ;;  %v2316_v59 = vadd.f32 %v2315_v47, %v2303_v58 }
 0x179   : > { %v2329_v60 = vadd.f32 %v2328_v48, %v2316_v59 }
 0x17e   : > { %v2341_v49 = vpop.f32.mrf.mxu2  ;;  %v2317_v52 = vpop.f32.mrf.mxu0 }
 0x17f   : > { %v2354_v51 = vpop.f32.mrf.mxu3  ;;  %v2330_v53 = vpop.f32.mrf.mxu1  ;;  %v2342_v61 = vadd.f32 %v2341_v49, %v2329_v60 }
 0x181   : > { %v2355_v62 = vadd.f32 %v2354_v51, %v2342_v61 }
 0x186   : > { %v2343_v56 = vpop.f32.mrf.mxu2 }
 0x187   : > { %v2356_v57 = vpop.f32.mrf.mxu3 }
 0x196   : > { %v2367_v63 = vpop.f32.mrf.mxu0 }
 0x197   : > { %v2380_v0 = vpop.f32.mrf.mxu1  ;;  %v2368_v1 = vadd.f32 %v2367_v63, %v2355_v62 }
 0x199   : > { %v2381_v2 = vadd.f32 %v2380_v0, %v2368_v1 }
 0x19e   : > { %v2393_v4 = vpop.f32.mrf.mxu2  ;;  %v2369_v6 = vpop.f32.mrf.mxu0 }
 0x19f   : > { %v2394_v5 = vadd.f32 %v2393_v4, %v2381_v2  ;;  %v2382_v7 = vpop.f32.mrf.mxu1 }
 0x1a1   : > { %v2397_v8 = vadd.f32 %v2394_v5, %v251_v3 }
 0x1a3   : > { %2398 = vst [vmem:[%s3864_s7] sm:$0x3] %v2397_v8 }
 0x1a6   : > { %v2395_v9 = vpop.f32.mrf.mxu2 }
 0x1a7 PF: > { %s15_s16 = sadd.s32 1, %s3755_s16   ;;  %s4127_s9 = smov %s3731_s10 }
 0x1a8   : > { %p12_p7 = scmp.ge.s32.totalorder %s15_s16, 6   ;;  %s4128_s10 = smov %s3735_s11 }
 0x1a9   : > { %s4129_s11 = smov %s3846_s6  ;;  %s4130_s12 = smov %s3747_s14 }
 0x1aa   : > { %s4131_s13 = smov %s3751_s15  ;;  %s4132_s14 = smov %s4135_s18 }
 0x1ab   : > { %s4133_s15 = smov %s4139_s19  ;;  %14 = sbr.rel (!%p12_p7) target bundleno = 5 (0x5), region = 79 }
 0x1b0   :  { %2418 = vsyncpa [#allocation3], 1 }
 0x1b1   :  { %2420 = vsyncpa [#allocation3 + $0x1], 1 }

</bundles_post_ra>
